<compile_context>
chip_gen: v5e
topology: v5e:2x2
jax: 0.10.0
libtpu: 0.0.40
codegen_flags: <defaults>
</compile_context>

<pallas_src>
import functools

import jax
import jax.numpy as jnp
from jax import lax
from jax.experimental import pallas as pl
from jax.experimental.pallas import tpu as pltpu


def sam_kernel(w_ref, x_ref, o_ref, pmap_ref, *, H, W, K, NB):
    """SAM forward for NB batch elements.

    w_ref:    SMEM f32[2*K*K]            conv1 weight, flattened [in_c, ky, kx].
    x_ref:    VMEM x.dtype[NB, C, H*W]   lane-dense input block.
    o_ref:    VMEM x.dtype[NB, C, H*W]   lane-dense output block.
    pmap_ref: VMEM f32[2, (H+2P)*W+2P]   zero-padded flat [avg, max] maps.
    """
    P = K // 2
    HW = H * W
    BASE = P * W + P  # flat offset of stat[0, 0] inside a pmap_ref row

    # Zero the scratch (halo stays zero; the interior is rewritten per batch).
    pmap_ref[...] = jnp.zeros_like(pmap_ref)

    # Column-validity masks, one per kx: a lane shift by (kx - P) in the flat
    # layout bleeds across row boundaries, so zero those columns' contribution.
    col = lax.broadcasted_iota(jnp.int32, (1, HW), 1) % W
    col_masks = [(col + (kx - P) >= 0) & (col + (kx - P) < W) for kx in range(K)]

    for b in range(NB):
        # ---- channel statistics on the lane-dense (C, H*W) slab ----
        xf = x_ref[b].astype(jnp.float32)                 # (C, HW)
        avg = jnp.mean(xf, axis=0, keepdims=True)         # (1, HW)
        mx = jnp.max(xf, axis=0, keepdims=True)           # (1, HW)

        # Interior of the padded flat maps is one contiguous store per map
        # (rows are contiguous in the flat layout).
        pmap_ref[pl.ds(0, 1), pl.ds(BASE, HW)] = avg
        pmap_ref[pl.ds(1, 1), pl.ds(BASE, HW)] = mx

        # ---- 7x7 cross-correlation, 2 in-channels -> 1 out-channel, no bias.
        # Tap (c, ky, kx) at output flat index i lives at
        # pmap[c, BASE + (ky-P)*W + (kx-P) + i]; physical zero rows handle
        # out-of-range rows, col_masks[kx] removes cross-row bleed.
        acc = jnp.zeros((1, HW), jnp.float32)
        for kx in range(K):
            part = jnp.zeros((1, HW), jnp.float32)
            for c in range(2):
                for ky in range(K):
                    wt = w_ref[c * K * K + ky * K + kx]            # SMEM scalar
                    start = BASE + (ky - P) * W + (kx - P)         # static
                    tap = pmap_ref[pl.ds(c, 1), pl.ds(start, HW)]  # (1, HW) vld
                    part = part + wt * tap
            acc = acc + jnp.where(col_masks[kx], part, 0.0)

        gate = jax.nn.sigmoid(acc)                                 # (1, HW)

        # ---- modulate and store, lane-dense; gate broadcasts over channels.
        o_ref[b] = (x_ref[b].astype(jnp.float32) * gate).astype(o_ref.dtype)


def sam_forward(x, conv1_weight, kernel_size=7, block_bytes=4 * 1024 * 1024):
    """x: [N, C, H, W]; conv1_weight: [1, 2, K, K] (bias=False)."""
    N, C, H, W = x.shape
    K = kernel_size
    P = K // 2
    HW = H * W

    x_flat = x.reshape(N, C, HW)                              # lane-dense layout
    w_flat = conv1_weight.astype(jnp.float32).reshape(-1)     # [in_c, ky, kx]

    # Pack as many batch elements per grid step as fit a small VMEM budget
    # (bigger DMAs, fewer grid steps); keep nb a divisor of N.
    per_elem = C * HW * x.dtype.itemsize
    nb = max(1, min(N, block_bytes // max(per_elem, 1)))
    while N % nb:
        nb -= 1

    kernel = functools.partial(sam_kernel, H=H, W=W, K=K, NB=nb)
    out_flat = pl.pallas_call(
        kernel,
        out_shape=jax.ShapeDtypeStruct((N, C, HW), x.dtype),
        grid=(N // nb,),
        in_specs=[
            pl.BlockSpec(memory_space=pltpu.MemorySpace.SMEM),     # conv weights
            pl.BlockSpec((nb, C, HW), lambda n: (n, 0, 0)),        # x block
        ],
        out_specs=pl.BlockSpec((nb, C, HW), lambda n: (n, 0, 0)),
        scratch_shapes=[pltpu.VMEM((2, HW + 2 * P * W + 2 * P), jnp.float32)],
        input_output_aliases={1: 0},                               # out overwrites x
        compiler_params=pltpu.CompilerParams(
            dimension_semantics=("parallel",),
            vmem_limit_bytes=32 * 1024 * 1024,
        ),
    )(w_flat, x_flat)
    return out_flat.reshape(N, C, H, W)


def sam_reference(x, conv1_weight):
    """Pure-JAX reference mirroring the PyTorch forward."""
    avg = jnp.mean(x, axis=1, keepdims=True)
    mx = jnp.max(x, axis=1, keepdims=True)
    m = jnp.concatenate([avg, mx], axis=1)
    pad = conv1_weight.shape[-1] // 2
    m = lax.conv_general_dilated(
        m, conv1_weight, window_strides=(1, 1),
        padding=[(pad, pad), (pad, pad)],
        dimension_numbers=("NCHW", "OIHW", "NCHW"))
    return x * jax.nn.sigmoid(m)


if __name__ == "__main__":
    key = jax.random.PRNGKey(0)
    kx_key, kw_key = jax.random.split(key)

    # Small shapes consistent with the module's forward: NCHW input.
    N, C, H, W = 2, 4, 16, 16
    K = 7
    x = jax.random.normal(kx_key, (N, C, H, W), dtype=jnp.float32)
    conv1_weight = jax.random.normal(kw_key, (1, 2, K, K), dtype=jnp.float32) * 0.05

    # Reference first (kernel output aliases x's buffer at the XLA level).
    ref = jax.block_until_ready(sam_reference(x, conv1_weight))

    out = sam_forward(x, conv1_weight, kernel_size=K)
    out = jax.block_until_ready(out)

    assert out.shape == x.shape and out.dtype == x.dtype
    max_err = float(jnp.max(jnp.abs(out - ref)))
    assert jnp.allclose(out, ref, atol=1e-5, rtol=1e-5), max_err

    print("KERNEL_OK")
</pallas_src>

<mosaic_0001>
module attributes {stable_mosaic.version = 11 : i64} {
  func.func @sam_kernel(%arg0: i32, %arg1: memref<98xf32, #tpu.memory_space<smem>>, %arg2: memref<2x4x256xf32, #tpu.memory_space<vmem>>, %arg3: memref<2x4x256xf32, #tpu.memory_space<vmem>>, %arg4: memref<2x358xf32, #tpu.memory_space<vmem>>) attributes {dimension_semantics = [#tpu.dimension_semantics<parallel>], iteration_bounds = array<i64: 1>, scalar_prefetch = 0 : i64, scratch_operands = 1 : i64, tpu.core_type = #tpu.core_type<tc>, window_params = [{transform_indices = @transform_0, window_bounds = array<i64: 98>}, {transform_indices = @transform_1, window_bounds = array<i64: 2, 4, 256>}, {transform_indices = @transform_2, window_bounds = array<i64: 2, 4, 256>}]} {
    %cst = arith.constant 0.000000e+00 : f32
    %0 = vector.broadcast %cst : f32 to vector<2x358xf32>
    %c0 = arith.constant 0 : index
    %c0_0 = arith.constant 0 : index
    %1 = vector.load %arg4[%c0, %c0_0] : memref<2x358xf32, #tpu.memory_space<vmem>>, vector<2x358xf32>
    tpu.vector_store %arg4[%c0, %c0_0], %0 {strides = array<i32>} : memref<2x358xf32, #tpu.memory_space<vmem>>, vector<2x358xf32>,
    %2 = tpu.iota {dimensions = array<i32: 1>} : vector<1x256xi32>
    %c16_i32 = arith.constant 16 : i32
    %c0_i32 = arith.constant 0 : i32
    %3 = arith.cmpi eq, %c16_i32, %c0_i32 : i32
    %c1_i32 = arith.constant 1 : i32
    %4 = arith.select %3, %c1_i32, %c16_i32 : i32
    %5 = vector.broadcast %4 : i32 to vector<1x256xi32>
    %6 = arith.remsi %2, %5 : vector<1x256xi32>
    %c0_i32_1 = arith.constant 0 : i32
    %7 = vector.broadcast %c0_i32_1 : i32 to vector<1x256xi32>
    %8 = arith.cmpi ne, %6, %7 : vector<1x256xi32>
    %c0_i32_2 = arith.constant 0 : i32
    %9 = vector.broadcast %c0_i32_2 : i32 to vector<1x256xi32>
    %10 = arith.cmpi slt, %6, %9 : vector<1x256xi32>
    %c0_i32_3 = arith.constant 0 : i32
    %11 = arith.cmpi slt, %4, %c0_i32_3 : i32
    %12 = vector.broadcast %11 : i1 to vector<1x256xi1>
    %13 = vector.broadcast %12 : vector<1x256xi1> to vector<1x256xi1>
    %14 = arith.xori %10, %13 : vector<1x256xi1>
    %15 = arith.andi %14, %8 : vector<1x256xi1>
    %16 = vector.broadcast %4 : i32 to vector<1x256xi32>
    %17 = arith.addi %6, %16 : vector<1x256xi32>
    %18 = arith.select %15, %17, %6 : vector<1x256xi1>, vector<1x256xi32>
    %c-3_i32 = arith.constant -3 : i32
    %19 = vector.broadcast %c-3_i32 : i32 to vector<1x256xi32>
    %20 = arith.addi %18, %19 : vector<1x256xi32>
    %c0_i32_4 = arith.constant 0 : i32
    %21 = vector.broadcast %c0_i32_4 : i32 to vector<1x256xi32>
    %22 = arith.cmpi sge, %20, %21 : vector<1x256xi32>
    %c-3_i32_5 = arith.constant -3 : i32
    %23 = vector.broadcast %c-3_i32_5 : i32 to vector<1x256xi32>
    %24 = arith.addi %18, %23 : vector<1x256xi32>
    %c16_i32_6 = arith.constant 16 : i32
    %25 = vector.broadcast %c16_i32_6 : i32 to vector<1x256xi32>
    %26 = arith.cmpi slt, %24, %25 : vector<1x256xi32>
    %27 = arith.andi %22, %26 : vector<1x256xi1>
    %c-2_i32 = arith.constant -2 : i32
    %28 = vector.broadcast %c-2_i32 : i32 to vector<1x256xi32>
    %29 = arith.addi %18, %28 : vector<1x256xi32>
    %c0_i32_7 = arith.constant 0 : i32
    %30 = vector.broadcast %c0_i32_7 : i32 to vector<1x256xi32>
    %31 = arith.cmpi sge, %29, %30 : vector<1x256xi32>
    %c-2_i32_8 = arith.constant -2 : i32
    %32 = vector.broadcast %c-2_i32_8 : i32 to vector<1x256xi32>
    %33 = arith.addi %18, %32 : vector<1x256xi32>
    %c16_i32_9 = arith.constant 16 : i32
    %34 = vector.broadcast %c16_i32_9 : i32 to vector<1x256xi32>
    %35 = arith.cmpi slt, %33, %34 : vector<1x256xi32>
    %36 = arith.andi %31, %35 : vector<1x256xi1>
    %c-1_i32 = arith.constant -1 : i32
    %37 = vector.broadcast %c-1_i32 : i32 to vector<1x256xi32>
    %38 = arith.addi %18, %37 : vector<1x256xi32>
    %c0_i32_10 = arith.constant 0 : i32
    %39 = vector.broadcast %c0_i32_10 : i32 to vector<1x256xi32>
    %40 = arith.cmpi sge, %38, %39 : vector<1x256xi32>
    %c-1_i32_11 = arith.constant -1 : i32
    %41 = vector.broadcast %c-1_i32_11 : i32 to vector<1x256xi32>
    %42 = arith.addi %18, %41 : vector<1x256xi32>
    %c16_i32_12 = arith.constant 16 : i32
    %43 = vector.broadcast %c16_i32_12 : i32 to vector<1x256xi32>
    %44 = arith.cmpi slt, %42, %43 : vector<1x256xi32>
    %45 = arith.andi %40, %44 : vector<1x256xi1>
    %c0_i32_13 = arith.constant 0 : i32
    %46 = vector.broadcast %c0_i32_13 : i32 to vector<1x256xi32>
    %47 = arith.addi %18, %46 : vector<1x256xi32>
    %c0_i32_14 = arith.constant 0 : i32
    %48 = vector.broadcast %c0_i32_14 : i32 to vector<1x256xi32>
    %49 = arith.cmpi sge, %47, %48 : vector<1x256xi32>
    %c0_i32_15 = arith.constant 0 : i32
    %50 = vector.broadcast %c0_i32_15 : i32 to vector<1x256xi32>
    %51 = arith.addi %18, %50 : vector<1x256xi32>
    %c16_i32_16 = arith.constant 16 : i32
    %52 = vector.broadcast %c16_i32_16 : i32 to vector<1x256xi32>
    %53 = arith.cmpi slt, %51, %52 : vector<1x256xi32>
    %54 = arith.andi %49, %53 : vector<1x256xi1>
    %c1_i32_17 = arith.constant 1 : i32
    %55 = vector.broadcast %c1_i32_17 : i32 to vector<1x256xi32>
    %56 = arith.addi %18, %55 : vector<1x256xi32>
    %c0_i32_18 = arith.constant 0 : i32
    %57 = vector.broadcast %c0_i32_18 : i32 to vector<1x256xi32>
    %58 = arith.cmpi sge, %56, %57 : vector<1x256xi32>
    %c1_i32_19 = arith.constant 1 : i32
    %59 = vector.broadcast %c1_i32_19 : i32 to vector<1x256xi32>
    %60 = arith.addi %18, %59 : vector<1x256xi32>
    %c16_i32_20 = arith.constant 16 : i32
    %61 = vector.broadcast %c16_i32_20 : i32 to vector<1x256xi32>
    %62 = arith.cmpi slt, %60, %61 : vector<1x256xi32>
    %63 = arith.andi %58, %62 : vector<1x256xi1>
    %c2_i32 = arith.constant 2 : i32
    %64 = vector.broadcast %c2_i32 : i32 to vector<1x256xi32>
    %65 = arith.addi %18, %64 : vector<1x256xi32>
    %c0_i32_21 = arith.constant 0 : i32
    %66 = vector.broadcast %c0_i32_21 : i32 to vector<1x256xi32>
    %67 = arith.cmpi sge, %65, %66 : vector<1x256xi32>
    %c2_i32_22 = arith.constant 2 : i32
    %68 = vector.broadcast %c2_i32_22 : i32 to vector<1x256xi32>
    %69 = arith.addi %18, %68 : vector<1x256xi32>
    %c16_i32_23 = arith.constant 16 : i32
    %70 = vector.broadcast %c16_i32_23 : i32 to vector<1x256xi32>
    %71 = arith.cmpi slt, %69, %70 : vector<1x256xi32>
    %72 = arith.andi %67, %71 : vector<1x256xi1>
    %c3_i32 = arith.constant 3 : i32
    %73 = vector.broadcast %c3_i32 : i32 to vector<1x256xi32>
    %74 = arith.addi %18, %73 : vector<1x256xi32>
    %c0_i32_24 = arith.constant 0 : i32
    %75 = vector.broadcast %c0_i32_24 : i32 to vector<1x256xi32>
    %76 = arith.cmpi sge, %74, %75 : vector<1x256xi32>
    %c3_i32_25 = arith.constant 3 : i32
    %77 = vector.broadcast %c3_i32_25 : i32 to vector<1x256xi32>
    %78 = arith.addi %18, %77 : vector<1x256xi32>
    %c16_i32_26 = arith.constant 16 : i32
    %79 = vector.broadcast %c16_i32_26 : i32 to vector<1x256xi32>
    %80 = arith.cmpi slt, %78, %79 : vector<1x256xi32>
    %81 = arith.andi %76, %80 : vector<1x256xi1>
    %c0_27 = arith.constant 0 : index
    %c0_28 = arith.constant 0 : index
    %c0_29 = arith.constant 0 : index
    %82 = vector.load %arg2[%c0_27, %c0_28, %c0_29] : memref<2x4x256xf32, #tpu.memory_space<vmem>>, vector<1x4x256xf32>
    %83 = vector.shape_cast %82 : vector<1x4x256xf32> to vector<4x256xf32>
    %cst_30 = arith.constant dense<0.000000e+00> : vector<256xf32>
    %84 = vector.multi_reduction <add>, %83, %cst_30 [0] : vector<4x256xf32> to vector<256xf32>
    %85 = vector.shape_cast %84 : vector<256xf32> to vector<1x256xf32>
    %cst_31 = arith.constant 4.000000e+00 : f32
    %86 = vector.broadcast %cst_31 : f32 to vector<1x256xf32>
    %87 = arith.divf %85, %86 : vector<1x256xf32>
    %cst_32 = arith.constant dense<0xFF800000> : vector<256xf32>
    %88 = vector.multi_reduction <maximumf>, %83, %cst_32 [0] : vector<4x256xf32> to vector<256xf32>
    %89 = vector.shape_cast %88 : vector<256xf32> to vector<1x256xf32>
    %c0_33 = arith.constant 0 : index
    %c51 = arith.constant 51 : index
    %90 = vector.load %arg4[%c0_33, %c51] : memref<2x358xf32, #tpu.memory_space<vmem>>, vector<1x256xf32>
    tpu.vector_store %arg4[%c0_33, %c51], %87 {strides = array<i32>} : memref<2x358xf32, #tpu.memory_space<vmem>>, vector<1x256xf32>,
    %c1 = arith.constant 1 : index
    %c51_34 = arith.constant 51 : index
    %91 = vector.load %arg4[%c1, %c51_34] : memref<2x358xf32, #tpu.memory_space<vmem>>, vector<1x256xf32>
    tpu.vector_store %arg4[%c1, %c51_34], %89 {strides = array<i32>} : memref<2x358xf32, #tpu.memory_space<vmem>>, vector<1x256xf32>,
    %cst_35 = arith.constant 0.000000e+00 : f32
    %92 = vector.broadcast %cst_35 : f32 to vector<1x256xf32>
    %cst_36 = arith.constant 0.000000e+00 : f32
    %93 = vector.broadcast %cst_36 : f32 to vector<1x256xf32>
    %c0_37 = arith.constant 0 : index
    %94 = memref.load %arg1[%c0_37] : memref<98xf32, #tpu.memory_space<smem>>
    %c0_38 = arith.constant 0 : index
    %c0_39 = arith.constant 0 : index
    %95 = vector.load %arg4[%c0_38, %c0_39] : memref<2x358xf32, #tpu.memory_space<vmem>>, vector<1x256xf32>
    %96 = vector.broadcast %94 : f32 to vector<1x256xf32>
    %97 = arith.mulf %96, %95 : vector<1x256xf32>
    %98 = arith.addf %93, %97 : vector<1x256xf32>
    %c7 = arith.constant 7 : index
    %99 = memref.load %arg1[%c7] : memref<98xf32, #tpu.memory_space<smem>>
    %c0_40 = arith.constant 0 : index
    %c16 = arith.constant 16 : index
    %100 = vector.load %arg4[%c0_40, %c16] : memref<2x358xf32, #tpu.memory_space<vmem>>, vector<1x256xf32>
    %101 = vector.broadcast %99 : f32 to vector<1x256xf32>
    %102 = arith.mulf %101, %100 : vector<1x256xf32>
    %103 = arith.addf %98, %102 : vector<1x256xf32>
    %c14 = arith.constant 14 : index
    %104 = memref.load %arg1[%c14] : memref<98xf32, #tpu.memory_space<smem>>
    %c0_41 = arith.constant 0 : index
    %c32 = arith.constant 32 : index
    %105 = vector.load %arg4[%c0_41, %c32] : memref<2x358xf32, #tpu.memory_space<vmem>>, vector<1x256xf32>
    %106 = vector.broadcast %104 : f32 to vector<1x256xf32>
    %107 = arith.mulf %106, %105 : vector<1x256xf32>
    %108 = arith.addf %103, %107 : vector<1x256xf32>
    %c21 = arith.constant 21 : index
    %109 = memref.load %arg1[%c21] : memref<98xf32, #tpu.memory_space<smem>>
    %c0_42 = arith.constant 0 : index
    %c48 = arith.constant 48 : index
    %110 = vector.load %arg4[%c0_42, %c48] : memref<2x358xf32, #tpu.memory_space<vmem>>, vector<1x256xf32>
    %111 = vector.broadcast %109 : f32 to vector<1x256xf32>
    %112 = arith.mulf %111, %110 : vector<1x256xf32>
    %113 = arith.addf %108, %112 : vector<1x256xf32>
    %c28 = arith.constant 28 : index
    %114 = memref.load %arg1[%c28] : memref<98xf32, #tpu.memory_space<smem>>
    %c0_43 = arith.constant 0 : index
    %c64 = arith.constant 64 : index
    %115 = vector.load %arg4[%c0_43, %c64] : memref<2x358xf32, #tpu.memory_space<vmem>>, vector<1x256xf32>
    %116 = vector.broadcast %114 : f32 to vector<1x256xf32>
    %117 = arith.mulf %116, %115 : vector<1x256xf32>
    %118 = arith.addf %113, %117 : vector<1x256xf32>
    %c35 = arith.constant 35 : index
    %119 = memref.load %arg1[%c35] : memref<98xf32, #tpu.memory_space<smem>>
    %c0_44 = arith.constant 0 : index
    %c80 = arith.constant 80 : index
    %120 = vector.load %arg4[%c0_44, %c80] : memref<2x358xf32, #tpu.memory_space<vmem>>, vector<1x256xf32>
    %121 = vector.broadcast %119 : f32 to vector<1x256xf32>
    %122 = arith.mulf %121, %120 : vector<1x256xf32>
    %123 = arith.addf %118, %122 : vector<1x256xf32>
    %c42 = arith.constant 42 : index
    %124 = memref.load %arg1[%c42] : memref<98xf32, #tpu.memory_space<smem>>
    %c0_45 = arith.constant 0 : index
    %c96 = arith.constant 96 : index
    %125 = vector.load %arg4[%c0_45, %c96] : memref<2x358xf32, #tpu.memory_space<vmem>>, vector<1x256xf32>
    %126 = vector.broadcast %124 : f32 to vector<1x256xf32>
    %127 = arith.mulf %126, %125 : vector<1x256xf32>
    %128 = arith.addf %123, %127 : vector<1x256xf32>
    %c49 = arith.constant 49 : index
    %129 = memref.load %arg1[%c49] : memref<98xf32, #tpu.memory_space<smem>>
    %c1_46 = arith.constant 1 : index
    %c0_47 = arith.constant 0 : index
    %130 = vector.load %arg4[%c1_46, %c0_47] : memref<2x358xf32, #tpu.memory_space<vmem>>, vector<1x256xf32>
    %131 = vector.broadcast %129 : f32 to vector<1x256xf32>
    %132 = arith.mulf %131, %130 : vector<1x256xf32>
    %133 = arith.addf %128, %132 : vector<1x256xf32>
    %c56 = arith.constant 56 : index
    %134 = memref.load %arg1[%c56] : memref<98xf32, #tpu.memory_space<smem>>
    %c1_48 = arith.constant 1 : index
    %c16_49 = arith.constant 16 : index
    %135 = vector.load %arg4[%c1_48, %c16_49] : memref<2x358xf32, #tpu.memory_space<vmem>>, vector<1x256xf32>
    %136 = vector.broadcast %134 : f32 to vector<1x256xf32>
    %137 = arith.mulf %136, %135 : vector<1x256xf32>
    %138 = arith.addf %133, %137 : vector<1x256xf32>
    %c63 = arith.constant 63 : index
    %139 = memref.load %arg1[%c63] : memref<98xf32, #tpu.memory_space<smem>>
    %c1_50 = arith.constant 1 : index
    %c32_51 = arith.constant 32 : index
    %140 = vector.load %arg4[%c1_50, %c32_51] : memref<2x358xf32, #tpu.memory_space<vmem>>, vector<1x256xf32>
    %141 = vector.broadcast %139 : f32 to vector<1x256xf32>
    %142 = arith.mulf %141, %140 : vector<1x256xf32>
    %143 = arith.addf %138, %142 : vector<1x256xf32>
    %c70 = arith.constant 70 : index
    %144 = memref.load %arg1[%c70] : memref<98xf32, #tpu.memory_space<smem>>
    %c1_52 = arith.constant 1 : index
    %c48_53 = arith.constant 48 : index
    %145 = vector.load %arg4[%c1_52, %c48_53] : memref<2x358xf32, #tpu.memory_space<vmem>>, vector<1x256xf32>
    %146 = vector.broadcast %144 : f32 to vector<1x256xf32>
    %147 = arith.mulf %146, %145 : vector<1x256xf32>
    %148 = arith.addf %143, %147 : vector<1x256xf32>
    %c77 = arith.constant 77 : index
    %149 = memref.load %arg1[%c77] : memref<98xf32, #tpu.memory_space<smem>>
    %c1_54 = arith.constant 1 : index
    %c64_55 = arith.constant 64 : index
    %150 = vector.load %arg4[%c1_54, %c64_55] : memref<2x358xf32, #tpu.memory_space<vmem>>, vector<1x256xf32>
    %151 = vector.broadcast %149 : f32 to vector<1x256xf32>
    %152 = arith.mulf %151, %150 : vector<1x256xf32>
    %153 = arith.addf %148, %152 : vector<1x256xf32>
    %c84 = arith.constant 84 : index
    %154 = memref.load %arg1[%c84] : memref<98xf32, #tpu.memory_space<smem>>
    %c1_56 = arith.constant 1 : index
    %c80_57 = arith.constant 80 : index
    %155 = vector.load %arg4[%c1_56, %c80_57] : memref<2x358xf32, #tpu.memory_space<vmem>>, vector<1x256xf32>
    %156 = vector.broadcast %154 : f32 to vector<1x256xf32>
    %157 = arith.mulf %156, %155 : vector<1x256xf32>
    %158 = arith.addf %153, %157 : vector<1x256xf32>
    %c91 = arith.constant 91 : index
    %159 = memref.load %arg1[%c91] : memref<98xf32, #tpu.memory_space<smem>>
    %c1_58 = arith.constant 1 : index
    %c96_59 = arith.constant 96 : index
    %160 = vector.load %arg4[%c1_58, %c96_59] : memref<2x358xf32, #tpu.memory_space<vmem>>, vector<1x256xf32>
    %161 = vector.broadcast %159 : f32 to vector<1x256xf32>
    %162 = arith.mulf %161, %160 : vector<1x256xf32>
    %163 = arith.addf %158, %162 : vector<1x256xf32>
    %cst_60 = arith.constant 0.000000e+00 : f32
    %164 = vector.broadcast %cst_60 : f32 to vector<1x256xf32>
    %165 = arith.select %27, %163, %164 : vector<1x256xi1>, vector<1x256xf32>
    %166 = arith.addf %92, %165 : vector<1x256xf32>
    %cst_61 = arith.constant 0.000000e+00 : f32
    %167 = vector.broadcast %cst_61 : f32 to vector<1x256xf32>
    %c1_62 = arith.constant 1 : index
    %168 = memref.load %arg1[%c1_62] : memref<98xf32, #tpu.memory_space<smem>>
    %c0_63 = arith.constant 0 : index
    %c1_64 = arith.constant 1 : index
    %169 = vector.load %arg4[%c0_63, %c1_64] : memref<2x358xf32, #tpu.memory_space<vmem>>, vector<1x256xf32>
    %170 = vector.broadcast %168 : f32 to vector<1x256xf32>
    %171 = arith.mulf %170, %169 : vector<1x256xf32>
    %172 = arith.addf %167, %171 : vector<1x256xf32>
    %c8 = arith.constant 8 : index
    %173 = memref.load %arg1[%c8] : memref<98xf32, #tpu.memory_space<smem>>
    %c0_65 = arith.constant 0 : index
    %c17 = arith.constant 17 : index
    %174 = vector.load %arg4[%c0_65, %c17] : memref<2x358xf32, #tpu.memory_space<vmem>>, vector<1x256xf32>
    %175 = vector.broadcast %173 : f32 to vector<1x256xf32>
    %176 = arith.mulf %175, %174 : vector<1x256xf32>
    %177 = arith.addf %172, %176 : vector<1x256xf32>
    %c15 = arith.constant 15 : index
    %178 = memref.load %arg1[%c15] : memref<98xf32, #tpu.memory_space<smem>>
    %c0_66 = arith.constant 0 : index
    %c33 = arith.constant 33 : index
    %179 = vector.load %arg4[%c0_66, %c33] : memref<2x358xf32, #tpu.memory_space<vmem>>, vector<1x256xf32>
    %180 = vector.broadcast %178 : f32 to vector<1x256xf32>
    %181 = arith.mulf %180, %179 : vector<1x256xf32>
    %182 = arith.addf %177, %181 : vector<1x256xf32>
    %c22 = arith.constant 22 : index
    %183 = memref.load %arg1[%c22] : memref<98xf32, #tpu.memory_space<smem>>
    %c0_67 = arith.constant 0 : index
    %c49_68 = arith.constant 49 : index
    %184 = vector.load %arg4[%c0_67, %c49_68] : memref<2x358xf32, #tpu.memory_space<vmem>>, vector<1x256xf32>
    %185 = vector.broadcast %183 : f32 to vector<1x256xf32>
    %186 = arith.mulf %185, %184 : vector<1x256xf32>
    %187 = arith.addf %182, %186 : vector<1x256xf32>
    %c29 = arith.constant 29 : index
    %188 = memref.load %arg1[%c29] : memref<98xf32, #tpu.memory_space<smem>>
    %c0_69 = arith.constant 0 : index
    %c65 = arith.constant 65 : index
    %189 = vector.load %arg4[%c0_69, %c65] : memref<2x358xf32, #tpu.memory_space<vmem>>, vector<1x256xf32>
    %190 = vector.broadcast %188 : f32 to vector<1x256xf32>
    %191 = arith.mulf %190, %189 : vector<1x256xf32>
    %192 = arith.addf %187, %191 : vector<1x256xf32>
    %c36 = arith.constant 36 : index
    %193 = memref.load %arg1[%c36] : memref<98xf32, #tpu.memory_space<smem>>
    %c0_70 = arith.constant 0 : index
    %c81 = arith.constant 81 : index
    %194 = vector.load %arg4[%c0_70, %c81] : memref<2x358xf32, #tpu.memory_space<vmem>>, vector<1x256xf32>
    %195 = vector.broadcast %193 : f32 to vector<1x256xf32>
    %196 = arith.mulf %195, %194 : vector<1x256xf32>
    %197 = arith.addf %192, %196 : vector<1x256xf32>
    %c43 = arith.constant 43 : index
    %198 = memref.load %arg1[%c43] : memref<98xf32, #tpu.memory_space<smem>>
    %c0_71 = arith.constant 0 : index
    %c97 = arith.constant 97 : index
    %199 = vector.load %arg4[%c0_71, %c97] : memref<2x358xf32, #tpu.memory_space<vmem>>, vector<1x256xf32>
    %200 = vector.broadcast %198 : f32 to vector<1x256xf32>
    %201 = arith.mulf %200, %199 : vector<1x256xf32>
    %202 = arith.addf %197, %201 : vector<1x256xf32>
    %c50 = arith.constant 50 : index
    %203 = memref.load %arg1[%c50] : memref<98xf32, #tpu.memory_space<smem>>
    %c1_72 = arith.constant 1 : index
    %c1_73 = arith.constant 1 : index
    %204 = vector.load %arg4[%c1_72, %c1_73] : memref<2x358xf32, #tpu.memory_space<vmem>>, vector<1x256xf32>
    %205 = vector.broadcast %203 : f32 to vector<1x256xf32>
    %206 = arith.mulf %205, %204 : vector<1x256xf32>
    %207 = arith.addf %202, %206 : vector<1x256xf32>
    %c57 = arith.constant 57 : index
    %208 = memref.load %arg1[%c57] : memref<98xf32, #tpu.memory_space<smem>>
    %c1_74 = arith.constant 1 : index
    %c17_75 = arith.constant 17 : index
    %209 = vector.load %arg4[%c1_74, %c17_75] : memref<2x358xf32, #tpu.memory_space<vmem>>, vector<1x256xf32>
    %210 = vector.broadcast %208 : f32 to vector<1x256xf32>
    %211 = arith.mulf %210, %209 : vector<1x256xf32>
    %212 = arith.addf %207, %211 : vector<1x256xf32>
    %c64_76 = arith.constant 64 : index
    %213 = memref.load %arg1[%c64_76] : memref<98xf32, #tpu.memory_space<smem>>
    %c1_77 = arith.constant 1 : index
    %c33_78 = arith.constant 33 : index
    %214 = vector.load %arg4[%c1_77, %c33_78] : memref<2x358xf32, #tpu.memory_space<vmem>>, vector<1x256xf32>
    %215 = vector.broadcast %213 : f32 to vector<1x256xf32>
    %216 = arith.mulf %215, %214 : vector<1x256xf32>
    %217 = arith.addf %212, %216 : vector<1x256xf32>
    %c71 = arith.constant 71 : index
    %218 = memref.load %arg1[%c71] : memref<98xf32, #tpu.memory_space<smem>>
    %c1_79 = arith.constant 1 : index
    %c49_80 = arith.constant 49 : index
    %219 = vector.load %arg4[%c1_79, %c49_80] : memref<2x358xf32, #tpu.memory_space<vmem>>, vector<1x256xf32>
    %220 = vector.broadcast %218 : f32 to vector<1x256xf32>
    %221 = arith.mulf %220, %219 : vector<1x256xf32>
    %222 = arith.addf %217, %221 : vector<1x256xf32>
    %c78 = arith.constant 78 : index
    %223 = memref.load %arg1[%c78] : memref<98xf32, #tpu.memory_space<smem>>
    %c1_81 = arith.constant 1 : index
    %c65_82 = arith.constant 65 : index
    %224 = vector.load %arg4[%c1_81, %c65_82] : memref<2x358xf32, #tpu.memory_space<vmem>>, vector<1x256xf32>
    %225 = vector.broadcast %223 : f32 to vector<1x256xf32>
    %226 = arith.mulf %225, %224 : vector<1x256xf32>
    %227 = arith.addf %222, %226 : vector<1x256xf32>
    %c85 = arith.constant 85 : index
    %228 = memref.load %arg1[%c85] : memref<98xf32, #tpu.memory_space<smem>>
    %c1_83 = arith.constant 1 : index
    %c81_84 = arith.constant 81 : index
    %229 = vector.load %arg4[%c1_83, %c81_84] : memref<2x358xf32, #tpu.memory_space<vmem>>, vector<1x256xf32>
    %230 = vector.broadcast %228 : f32 to vector<1x256xf32>
    %231 = arith.mulf %230, %229 : vector<1x256xf32>
    %232 = arith.addf %227, %231 : vector<1x256xf32>
    %c92 = arith.constant 92 : index
    %233 = memref.load %arg1[%c92] : memref<98xf32, #tpu.memory_space<smem>>
    %c1_85 = arith.constant 1 : index
    %c97_86 = arith.constant 97 : index
    %234 = vector.load %arg4[%c1_85, %c97_86] : memref<2x358xf32, #tpu.memory_space<vmem>>, vector<1x256xf32>
    %235 = vector.broadcast %233 : f32 to vector<1x256xf32>
    %236 = arith.mulf %235, %234 : vector<1x256xf32>
    %237 = arith.addf %232, %236 : vector<1x256xf32>
    %cst_87 = arith.constant 0.000000e+00 : f32
    %238 = vector.broadcast %cst_87 : f32 to vector<1x256xf32>
    %239 = arith.select %36, %237, %238 : vector<1x256xi1>, vector<1x256xf32>
    %240 = arith.addf %166, %239 : vector<1x256xf32>
    %cst_88 = arith.constant 0.000000e+00 : f32
    %241 = vector.broadcast %cst_88 : f32 to vector<1x256xf32>
    %c2 = arith.constant 2 : index
    %242 = memref.load %arg1[%c2] : memref<98xf32, #tpu.memory_space<smem>>
    %c0_89 = arith.constant 0 : index
    %c2_90 = arith.constant 2 : index
    %243 = vector.load %arg4[%c0_89, %c2_90] : memref<2x358xf32, #tpu.memory_space<vmem>>, vector<1x256xf32>
    %244 = vector.broadcast %242 : f32 to vector<1x256xf32>
    %245 = arith.mulf %244, %243 : vector<1x256xf32>
    %246 = arith.addf %241, %245 : vector<1x256xf32>
    %c9 = arith.constant 9 : index
    %247 = memref.load %arg1[%c9] : memref<98xf32, #tpu.memory_space<smem>>
    %c0_91 = arith.constant 0 : index
    %c18 = arith.constant 18 : index
    %248 = vector.load %arg4[%c0_91, %c18] : memref<2x358xf32, #tpu.memory_space<vmem>>, vector<1x256xf32>
    %249 = vector.broadcast %247 : f32 to vector<1x256xf32>
    %250 = arith.mulf %249, %248 : vector<1x256xf32>
    %251 = arith.addf %246, %250 : vector<1x256xf32>
    %c16_92 = arith.constant 16 : index
    %252 = memref.load %arg1[%c16_92] : memref<98xf32, #tpu.memory_space<smem>>
    %c0_93 = arith.constant 0 : index
    %c34 = arith.constant 34 : index
    %253 = vector.load %arg4[%c0_93, %c34] : memref<2x358xf32, #tpu.memory_space<vmem>>, vector<1x256xf32>
    %254 = vector.broadcast %252 : f32 to vector<1x256xf32>
    %255 = arith.mulf %254, %253 : vector<1x256xf32>
    %256 = arith.addf %251, %255 : vector<1x256xf32>
    %c23 = arith.constant 23 : index
    %257 = memref.load %arg1[%c23] : memref<98xf32, #tpu.memory_space<smem>>
    %c0_94 = arith.constant 0 : index
    %c50_95 = arith.constant 50 : index
    %258 = vector.load %arg4[%c0_94, %c50_95] : memref<2x358xf32, #tpu.memory_space<vmem>>, vector<1x256xf32>
    %259 = vector.broadcast %257 : f32 to vector<1x256xf32>
    %260 = arith.mulf %259, %258 : vector<1x256xf32>
    %261 = arith.addf %256, %260 : vector<1x256xf32>
    %c30 = arith.constant 30 : index
    %262 = memref.load %arg1[%c30] : memref<98xf32, #tpu.memory_space<smem>>
    %c0_96 = arith.constant 0 : index
    %c66 = arith.constant 66 : index
    %263 = vector.load %arg4[%c0_96, %c66] : memref<2x358xf32, #tpu.memory_space<vmem>>, vector<1x256xf32>
    %264 = vector.broadcast %262 : f32 to vector<1x256xf32>
    %265 = arith.mulf %264, %263 : vector<1x256xf32>
    %266 = arith.addf %261, %265 : vector<1x256xf32>
    %c37 = arith.constant 37 : index
    %267 = memref.load %arg1[%c37] : memref<98xf32, #tpu.memory_space<smem>>
    %c0_97 = arith.constant 0 : index
    %c82 = arith.constant 82 : index
    %268 = vector.load %arg4[%c0_97, %c82] : memref<2x358xf32, #tpu.memory_space<vmem>>, vector<1x256xf32>
    %269 = vector.broadcast %267 : f32 to vector<1x256xf32>
    %270 = arith.mulf %269, %268 : vector<1x256xf32>
    %271 = arith.addf %266, %270 : vector<1x256xf32>
    %c44 = arith.constant 44 : index
    %272 = memref.load %arg1[%c44] : memref<98xf32, #tpu.memory_space<smem>>
    %c0_98 = arith.constant 0 : index
    %c98 = arith.constant 98 : index
    %273 = vector.load %arg4[%c0_98, %c98] : memref<2x358xf32, #tpu.memory_space<vmem>>, vector<1x256xf32>
    %274 = vector.broadcast %272 : f32 to vector<1x256xf32>
    %275 = arith.mulf %274, %273 : vector<1x256xf32>
    %276 = arith.addf %271, %275 : vector<1x256xf32>
    %c51_99 = arith.constant 51 : index
    %277 = memref.load %arg1[%c51_99] : memref<98xf32, #tpu.memory_space<smem>>
    %c1_100 = arith.constant 1 : index
    %c2_101 = arith.constant 2 : index
    %278 = vector.load %arg4[%c1_100, %c2_101] : memref<2x358xf32, #tpu.memory_space<vmem>>, vector<1x256xf32>
    %279 = vector.broadcast %277 : f32 to vector<1x256xf32>
    %280 = arith.mulf %279, %278 : vector<1x256xf32>
    %281 = arith.addf %276, %280 : vector<1x256xf32>
    %c58 = arith.constant 58 : index
    %282 = memref.load %arg1[%c58] : memref<98xf32, #tpu.memory_space<smem>>
    %c1_102 = arith.constant 1 : index
    %c18_103 = arith.constant 18 : index
    %283 = vector.load %arg4[%c1_102, %c18_103] : memref<2x358xf32, #tpu.memory_space<vmem>>, vector<1x256xf32>
    %284 = vector.broadcast %282 : f32 to vector<1x256xf32>
    %285 = arith.mulf %284, %283 : vector<1x256xf32>
    %286 = arith.addf %281, %285 : vector<1x256xf32>
    %c65_104 = arith.constant 65 : index
    %287 = memref.load %arg1[%c65_104] : memref<98xf32, #tpu.memory_space<smem>>
    %c1_105 = arith.constant 1 : index
    %c34_106 = arith.constant 34 : index
    %288 = vector.load %arg4[%c1_105, %c34_106] : memref<2x358xf32, #tpu.memory_space<vmem>>, vector<1x256xf32>
    %289 = vector.broadcast %287 : f32 to vector<1x256xf32>
    %290 = arith.mulf %289, %288 : vector<1x256xf32>
    %291 = arith.addf %286, %290 : vector<1x256xf32>
    %c72 = arith.constant 72 : index
    %292 = memref.load %arg1[%c72] : memref<98xf32, #tpu.memory_space<smem>>
    %c1_107 = arith.constant 1 : index
    %c50_108 = arith.constant 50 : index
    %293 = vector.load %arg4[%c1_107, %c50_108] : memref<2x358xf32, #tpu.memory_space<vmem>>, vector<1x256xf32>
    %294 = vector.broadcast %292 : f32 to vector<1x256xf32>
    %295 = arith.mulf %294, %293 : vector<1x256xf32>
    %296 = arith.addf %291, %295 : vector<1x256xf32>
    %c79 = arith.constant 79 : index
    %297 = memref.load %arg1[%c79] : memref<98xf32, #tpu.memory_space<smem>>
    %c1_109 = arith.constant 1 : index
    %c66_110 = arith.constant 66 : index
    %298 = vector.load %arg4[%c1_109, %c66_110] : memref<2x358xf32, #tpu.memory_space<vmem>>, vector<1x256xf32>
    %299 = vector.broadcast %297 : f32 to vector<1x256xf32>
    %300 = arith.mulf %299, %298 : vector<1x256xf32>
    %301 = arith.addf %296, %300 : vector<1x256xf32>
    %c86 = arith.constant 86 : index
    %302 = memref.load %arg1[%c86] : memref<98xf32, #tpu.memory_space<smem>>
    %c1_111 = arith.constant 1 : index
    %c82_112 = arith.constant 82 : index
    %303 = vector.load %arg4[%c1_111, %c82_112] : memref<2x358xf32, #tpu.memory_space<vmem>>, vector<1x256xf32>
    %304 = vector.broadcast %302 : f32 to vector<1x256xf32>
    %305 = arith.mulf %304, %303 : vector<1x256xf32>
    %306 = arith.addf %301, %305 : vector<1x256xf32>
    %c93 = arith.constant 93 : index
    %307 = memref.load %arg1[%c93] : memref<98xf32, #tpu.memory_space<smem>>
    %c1_113 = arith.constant 1 : index
    %c98_114 = arith.constant 98 : index
    %308 = vector.load %arg4[%c1_113, %c98_114] : memref<2x358xf32, #tpu.memory_space<vmem>>, vector<1x256xf32>
    %309 = vector.broadcast %307 : f32 to vector<1x256xf32>
    %310 = arith.mulf %309, %308 : vector<1x256xf32>
    %311 = arith.addf %306, %310 : vector<1x256xf32>
    %cst_115 = arith.constant 0.000000e+00 : f32
    %312 = vector.broadcast %cst_115 : f32 to vector<1x256xf32>
    %313 = arith.select %45, %311, %312 : vector<1x256xi1>, vector<1x256xf32>
    %314 = arith.addf %240, %313 : vector<1x256xf32>
    %cst_116 = arith.constant 0.000000e+00 : f32
    %315 = vector.broadcast %cst_116 : f32 to vector<1x256xf32>
    %c3 = arith.constant 3 : index
    %316 = memref.load %arg1[%c3] : memref<98xf32, #tpu.memory_space<smem>>
    %c0_117 = arith.constant 0 : index
    %c3_118 = arith.constant 3 : index
    %317 = vector.load %arg4[%c0_117, %c3_118] : memref<2x358xf32, #tpu.memory_space<vmem>>, vector<1x256xf32>
    %318 = vector.broadcast %316 : f32 to vector<1x256xf32>
    %319 = arith.mulf %318, %317 : vector<1x256xf32>
    %320 = arith.addf %315, %319 : vector<1x256xf32>
    %c10 = arith.constant 10 : index
    %321 = memref.load %arg1[%c10] : memref<98xf32, #tpu.memory_space<smem>>
    %c0_119 = arith.constant 0 : index
    %c19 = arith.constant 19 : index
    %322 = vector.load %arg4[%c0_119, %c19] : memref<2x358xf32, #tpu.memory_space<vmem>>, vector<1x256xf32>
    %323 = vector.broadcast %321 : f32 to vector<1x256xf32>
    %324 = arith.mulf %323, %322 : vector<1x256xf32>
    %325 = arith.addf %320, %324 : vector<1x256xf32>
    %c17_120 = arith.constant 17 : index
    %326 = memref.load %arg1[%c17_120] : memref<98xf32, #tpu.memory_space<smem>>
    %c0_121 = arith.constant 0 : index
    %c35_122 = arith.constant 35 : index
    %327 = vector.load %arg4[%c0_121, %c35_122] : memref<2x358xf32, #tpu.memory_space<vmem>>, vector<1x256xf32>
    %328 = vector.broadcast %326 : f32 to vector<1x256xf32>
    %329 = arith.mulf %328, %327 : vector<1x256xf32>
    %330 = arith.addf %325, %329 : vector<1x256xf32>
    %c24 = arith.constant 24 : index
    %331 = memref.load %arg1[%c24] : memref<98xf32, #tpu.memory_space<smem>>
    %c0_123 = arith.constant 0 : index
    %c51_124 = arith.constant 51 : index
    %332 = vector.load %arg4[%c0_123, %c51_124] : memref<2x358xf32, #tpu.memory_space<vmem>>, vector<1x256xf32>
    %333 = vector.broadcast %331 : f32 to vector<1x256xf32>
    %334 = arith.mulf %333, %332 : vector<1x256xf32>
    %335 = arith.addf %330, %334 : vector<1x256xf32>
    %c31 = arith.constant 31 : index
    %336 = memref.load %arg1[%c31] : memref<98xf32, #tpu.memory_space<smem>>
    %c0_125 = arith.constant 0 : index
    %c67 = arith.constant 67 : index
    %337 = vector.load %arg4[%c0_125, %c67] : memref<2x358xf32, #tpu.memory_space<vmem>>, vector<1x256xf32>
    %338 = vector.broadcast %336 : f32 to vector<1x256xf32>
    %339 = arith.mulf %338, %337 : vector<1x256xf32>
    %340 = arith.addf %335, %339 : vector<1x256xf32>
    %c38 = arith.constant 38 : index
    %341 = memref.load %arg1[%c38] : memref<98xf32, #tpu.memory_space<smem>>
    %c0_126 = arith.constant 0 : index
    %c83 = arith.constant 83 : index
    %342 = vector.load %arg4[%c0_126, %c83] : memref<2x358xf32, #tpu.memory_space<vmem>>, vector<1x256xf32>
    %343 = vector.broadcast %341 : f32 to vector<1x256xf32>
    %344 = arith.mulf %343, %342 : vector<1x256xf32>
    %345 = arith.addf %340, %344 : vector<1x256xf32>
    %c45 = arith.constant 45 : index
    %346 = memref.load %arg1[%c45] : memref<98xf32, #tpu.memory_space<smem>>
    %c0_127 = arith.constant 0 : index
    %c99 = arith.constant 99 : index
    %347 = vector.load %arg4[%c0_127, %c99] : memref<2x358xf32, #tpu.memory_space<vmem>>, vector<1x256xf32>
    %348 = vector.broadcast %346 : f32 to vector<1x256xf32>
    %349 = arith.mulf %348, %347 : vector<1x256xf32>
    %350 = arith.addf %345, %349 : vector<1x256xf32>
    %c52 = arith.constant 52 : index
    %351 = memref.load %arg1[%c52] : memref<98xf32, #tpu.memory_space<smem>>
    %c1_128 = arith.constant 1 : index
    %c3_129 = arith.constant 3 : index
    %352 = vector.load %arg4[%c1_128, %c3_129] : memref<2x358xf32, #tpu.memory_space<vmem>>, vector<1x256xf32>
    %353 = vector.broadcast %351 : f32 to vector<1x256xf32>
    %354 = arith.mulf %353, %352 : vector<1x256xf32>
    %355 = arith.addf %350, %354 : vector<1x256xf32>
    %c59 = arith.constant 59 : index
    %356 = memref.load %arg1[%c59] : memref<98xf32, #tpu.memory_space<smem>>
    %c1_130 = arith.constant 1 : index
    %c19_131 = arith.constant 19 : index
    %357 = vector.load %arg4[%c1_130, %c19_131] : memref<2x358xf32, #tpu.memory_space<vmem>>, vector<1x256xf32>
    %358 = vector.broadcast %356 : f32 to vector<1x256xf32>
    %359 = arith.mulf %358, %357 : vector<1x256xf32>
    %360 = arith.addf %355, %359 : vector<1x256xf32>
    %c66_132 = arith.constant 66 : index
    %361 = memref.load %arg1[%c66_132] : memref<98xf32, #tpu.memory_space<smem>>
    %c1_133 = arith.constant 1 : index
    %c35_134 = arith.constant 35 : index
    %362 = vector.load %arg4[%c1_133, %c35_134] : memref<2x358xf32, #tpu.memory_space<vmem>>, vector<1x256xf32>
    %363 = vector.broadcast %361 : f32 to vector<1x256xf32>
    %364 = arith.mulf %363, %362 : vector<1x256xf32>
    %365 = arith.addf %360, %364 : vector<1x256xf32>
    %c73 = arith.constant 73 : index
    %366 = memref.load %arg1[%c73] : memref<98xf32, #tpu.memory_space<smem>>
    %c1_135 = arith.constant 1 : index
    %c51_136 = arith.constant 51 : index
    %367 = vector.load %arg4[%c1_135, %c51_136] : memref<2x358xf32, #tpu.memory_space<vmem>>, vector<1x256xf32>
    %368 = vector.broadcast %366 : f32 to vector<1x256xf32>
    %369 = arith.mulf %368, %367 : vector<1x256xf32>
    %370 = arith.addf %365, %369 : vector<1x256xf32>
    %c80_137 = arith.constant 80 : index
    %371 = memref.load %arg1[%c80_137] : memref<98xf32, #tpu.memory_space<smem>>
    %c1_138 = arith.constant 1 : index
    %c67_139 = arith.constant 67 : index
    %372 = vector.load %arg4[%c1_138, %c67_139] : memref<2x358xf32, #tpu.memory_space<vmem>>, vector<1x256xf32>
    %373 = vector.broadcast %371 : f32 to vector<1x256xf32>
    %374 = arith.mulf %373, %372 : vector<1x256xf32>
    %375 = arith.addf %370, %374 : vector<1x256xf32>
    %c87 = arith.constant 87 : index
    %376 = memref.load %arg1[%c87] : memref<98xf32, #tpu.memory_space<smem>>
    %c1_140 = arith.constant 1 : index
    %c83_141 = arith.constant 83 : index
    %377 = vector.load %arg4[%c1_140, %c83_141] : memref<2x358xf32, #tpu.memory_space<vmem>>, vector<1x256xf32>
    %378 = vector.broadcast %376 : f32 to vector<1x256xf32>
    %379 = arith.mulf %378, %377 : vector<1x256xf32>
    %380 = arith.addf %375, %379 : vector<1x256xf32>
    %c94 = arith.constant 94 : index
    %381 = memref.load %arg1[%c94] : memref<98xf32, #tpu.memory_space<smem>>
    %c1_142 = arith.constant 1 : index
    %c99_143 = arith.constant 99 : index
    %382 = vector.load %arg4[%c1_142, %c99_143] : memref<2x358xf32, #tpu.memory_space<vmem>>, vector<1x256xf32>
    %383 = vector.broadcast %381 : f32 to vector<1x256xf32>
    %384 = arith.mulf %383, %382 : vector<1x256xf32>
    %385 = arith.addf %380, %384 : vector<1x256xf32>
    %cst_144 = arith.constant 0.000000e+00 : f32
    %386 = vector.broadcast %cst_144 : f32 to vector<1x256xf32>
    %387 = arith.select %54, %385, %386 : vector<1x256xi1>, vector<1x256xf32>
    %388 = arith.addf %314, %387 : vector<1x256xf32>
    %cst_145 = arith.constant 0.000000e+00 : f32
    %389 = vector.broadcast %cst_145 : f32 to vector<1x256xf32>
    %c4 = arith.constant 4 : index
    %390 = memref.load %arg1[%c4] : memref<98xf32, #tpu.memory_space<smem>>
    %c0_146 = arith.constant 0 : index
    %c4_147 = arith.constant 4 : index
    %391 = vector.load %arg4[%c0_146, %c4_147] : memref<2x358xf32, #tpu.memory_space<vmem>>, vector<1x256xf32>
    %392 = vector.broadcast %390 : f32 to vector<1x256xf32>
    %393 = arith.mulf %392, %391 : vector<1x256xf32>
    %394 = arith.addf %389, %393 : vector<1x256xf32>
    %c11 = arith.constant 11 : index
    %395 = memref.load %arg1[%c11] : memref<98xf32, #tpu.memory_space<smem>>
    %c0_148 = arith.constant 0 : index
    %c20 = arith.constant 20 : index
    %396 = vector.load %arg4[%c0_148, %c20] : memref<2x358xf32, #tpu.memory_space<vmem>>, vector<1x256xf32>
    %397 = vector.broadcast %395 : f32 to vector<1x256xf32>
    %398 = arith.mulf %397, %396 : vector<1x256xf32>
    %399 = arith.addf %394, %398 : vector<1x256xf32>
    %c18_149 = arith.constant 18 : index
    %400 = memref.load %arg1[%c18_149] : memref<98xf32, #tpu.memory_space<smem>>
    %c0_150 = arith.constant 0 : index
    %c36_151 = arith.constant 36 : index
    %401 = vector.load %arg4[%c0_150, %c36_151] : memref<2x358xf32, #tpu.memory_space<vmem>>, vector<1x256xf32>
    %402 = vector.broadcast %400 : f32 to vector<1x256xf32>
    %403 = arith.mulf %402, %401 : vector<1x256xf32>
    %404 = arith.addf %399, %403 : vector<1x256xf32>
    %c25 = arith.constant 25 : index
    %405 = memref.load %arg1[%c25] : memref<98xf32, #tpu.memory_space<smem>>
    %c0_152 = arith.constant 0 : index
    %c52_153 = arith.constant 52 : index
    %406 = vector.load %arg4[%c0_152, %c52_153] : memref<2x358xf32, #tpu.memory_space<vmem>>, vector<1x256xf32>
    %407 = vector.broadcast %405 : f32 to vector<1x256xf32>
    %408 = arith.mulf %407, %406 : vector<1x256xf32>
    %409 = arith.addf %404, %408 : vector<1x256xf32>
    %c32_154 = arith.constant 32 : index
    %410 = memref.load %arg1[%c32_154] : memref<98xf32, #tpu.memory_space<smem>>
    %c0_155 = arith.constant 0 : index
    %c68 = arith.constant 68 : index
    %411 = vector.load %arg4[%c0_155, %c68] : memref<2x358xf32, #tpu.memory_space<vmem>>, vector<1x256xf32>
    %412 = vector.broadcast %410 : f32 to vector<1x256xf32>
    %413 = arith.mulf %412, %411 : vector<1x256xf32>
    %414 = arith.addf %409, %413 : vector<1x256xf32>
    %c39 = arith.constant 39 : index
    %415 = memref.load %arg1[%c39] : memref<98xf32, #tpu.memory_space<smem>>
    %c0_156 = arith.constant 0 : index
    %c84_157 = arith.constant 84 : index
    %416 = vector.load %arg4[%c0_156, %c84_157] : memref<2x358xf32, #tpu.memory_space<vmem>>, vector<1x256xf32>
    %417 = vector.broadcast %415 : f32 to vector<1x256xf32>
    %418 = arith.mulf %417, %416 : vector<1x256xf32>
    %419 = arith.addf %414, %418 : vector<1x256xf32>
    %c46 = arith.constant 46 : index
    %420 = memref.load %arg1[%c46] : memref<98xf32, #tpu.memory_space<smem>>
    %c0_158 = arith.constant 0 : index
    %c100 = arith.constant 100 : index
    %421 = vector.load %arg4[%c0_158, %c100] : memref<2x358xf32, #tpu.memory_space<vmem>>, vector<1x256xf32>
    %422 = vector.broadcast %420 : f32 to vector<1x256xf32>
    %423 = arith.mulf %422, %421 : vector<1x256xf32>
    %424 = arith.addf %419, %423 : vector<1x256xf32>
    %c53 = arith.constant 53 : index
    %425 = memref.load %arg1[%c53] : memref<98xf32, #tpu.memory_space<smem>>
    %c1_159 = arith.constant 1 : index
    %c4_160 = arith.constant 4 : index
    %426 = vector.load %arg4[%c1_159, %c4_160] : memref<2x358xf32, #tpu.memory_space<vmem>>, vector<1x256xf32>
    %427 = vector.broadcast %425 : f32 to vector<1x256xf32>
    %428 = arith.mulf %427, %426 : vector<1x256xf32>
    %429 = arith.addf %424, %428 : vector<1x256xf32>
    %c60 = arith.constant 60 : index
    %430 = memref.load %arg1[%c60] : memref<98xf32, #tpu.memory_space<smem>>
    %c1_161 = arith.constant 1 : index
    %c20_162 = arith.constant 20 : index
    %431 = vector.load %arg4[%c1_161, %c20_162] : memref<2x358xf32, #tpu.memory_space<vmem>>, vector<1x256xf32>
    %432 = vector.broadcast %430 : f32 to vector<1x256xf32>
    %433 = arith.mulf %432, %431 : vector<1x256xf32>
    %434 = arith.addf %429, %433 : vector<1x256xf32>
    %c67_163 = arith.constant 67 : index
    %435 = memref.load %arg1[%c67_163] : memref<98xf32, #tpu.memory_space<smem>>
    %c1_164 = arith.constant 1 : index
    %c36_165 = arith.constant 36 : index
    %436 = vector.load %arg4[%c1_164, %c36_165] : memref<2x358xf32, #tpu.memory_space<vmem>>, vector<1x256xf32>
    %437 = vector.broadcast %435 : f32 to vector<1x256xf32>
    %438 = arith.mulf %437, %436 : vector<1x256xf32>
    %439 = arith.addf %434, %438 : vector<1x256xf32>
    %c74 = arith.constant 74 : index
    %440 = memref.load %arg1[%c74] : memref<98xf32, #tpu.memory_space<smem>>
    %c1_166 = arith.constant 1 : index
    %c52_167 = arith.constant 52 : index
    %441 = vector.load %arg4[%c1_166, %c52_167] : memref<2x358xf32, #tpu.memory_space<vmem>>, vector<1x256xf32>
    %442 = vector.broadcast %440 : f32 to vector<1x256xf32>
    %443 = arith.mulf %442, %441 : vector<1x256xf32>
    %444 = arith.addf %439, %443 : vector<1x256xf32>
    %c81_168 = arith.constant 81 : index
    %445 = memref.load %arg1[%c81_168] : memref<98xf32, #tpu.memory_space<smem>>
    %c1_169 = arith.constant 1 : index
    %c68_170 = arith.constant 68 : index
    %446 = vector.load %arg4[%c1_169, %c68_170] : memref<2x358xf32, #tpu.memory_space<vmem>>, vector<1x256xf32>
    %447 = vector.broadcast %445 : f32 to vector<1x256xf32>
    %448 = arith.mulf %447, %446 : vector<1x256xf32>
    %449 = arith.addf %444, %448 : vector<1x256xf32>
    %c88 = arith.constant 88 : index
    %450 = memref.load %arg1[%c88] : memref<98xf32, #tpu.memory_space<smem>>
    %c1_171 = arith.constant 1 : index
    %c84_172 = arith.constant 84 : index
    %451 = vector.load %arg4[%c1_171, %c84_172] : memref<2x358xf32, #tpu.memory_space<vmem>>, vector<1x256xf32>
    %452 = vector.broadcast %450 : f32 to vector<1x256xf32>
    %453 = arith.mulf %452, %451 : vector<1x256xf32>
    %454 = arith.addf %449, %453 : vector<1x256xf32>
    %c95 = arith.constant 95 : index
    %455 = memref.load %arg1[%c95] : memref<98xf32, #tpu.memory_space<smem>>
    %c1_173 = arith.constant 1 : index
    %c100_174 = arith.constant 100 : index
    %456 = vector.load %arg4[%c1_173, %c100_174] : memref<2x358xf32, #tpu.memory_space<vmem>>, vector<1x256xf32>
    %457 = vector.broadcast %455 : f32 to vector<1x256xf32>
    %458 = arith.mulf %457, %456 : vector<1x256xf32>
    %459 = arith.addf %454, %458 : vector<1x256xf32>
    %cst_175 = arith.constant 0.000000e+00 : f32
    %460 = vector.broadcast %cst_175 : f32 to vector<1x256xf32>
    %461 = arith.select %63, %459, %460 : vector<1x256xi1>, vector<1x256xf32>
    %462 = arith.addf %388, %461 : vector<1x256xf32>
    %cst_176 = arith.constant 0.000000e+00 : f32
    %463 = vector.broadcast %cst_176 : f32 to vector<1x256xf32>
    %c5 = arith.constant 5 : index
    %464 = memref.load %arg1[%c5] : memref<98xf32, #tpu.memory_space<smem>>
    %c0_177 = arith.constant 0 : index
    %c5_178 = arith.constant 5 : index
    %465 = vector.load %arg4[%c0_177, %c5_178] : memref<2x358xf32, #tpu.memory_space<vmem>>, vector<1x256xf32>
    %466 = vector.broadcast %464 : f32 to vector<1x256xf32>
    %467 = arith.mulf %466, %465 : vector<1x256xf32>
    %468 = arith.addf %463, %467 : vector<1x256xf32>
    %c12 = arith.constant 12 : index
    %469 = memref.load %arg1[%c12] : memref<98xf32, #tpu.memory_space<smem>>
    %c0_179 = arith.constant 0 : index
    %c21_180 = arith.constant 21 : index
    %470 = vector.load %arg4[%c0_179, %c21_180] : memref<2x358xf32, #tpu.memory_space<vmem>>, vector<1x256xf32>
    %471 = vector.broadcast %469 : f32 to vector<1x256xf32>
    %472 = arith.mulf %471, %470 : vector<1x256xf32>
    %473 = arith.addf %468, %472 : vector<1x256xf32>
    %c19_181 = arith.constant 19 : index
    %474 = memref.load %arg1[%c19_181] : memref<98xf32, #tpu.memory_space<smem>>
    %c0_182 = arith.constant 0 : index
    %c37_183 = arith.constant 37 : index
    %475 = vector.load %arg4[%c0_182, %c37_183] : memref<2x358xf32, #tpu.memory_space<vmem>>, vector<1x256xf32>
    %476 = vector.broadcast %474 : f32 to vector<1x256xf32>
    %477 = arith.mulf %476, %475 : vector<1x256xf32>
    %478 = arith.addf %473, %477 : vector<1x256xf32>
    %c26 = arith.constant 26 : index
    %479 = memref.load %arg1[%c26] : memref<98xf32, #tpu.memory_space<smem>>
    %c0_184 = arith.constant 0 : index
    %c53_185 = arith.constant 53 : index
    %480 = vector.load %arg4[%c0_184, %c53_185] : memref<2x358xf32, #tpu.memory_space<vmem>>, vector<1x256xf32>
    %481 = vector.broadcast %479 : f32 to vector<1x256xf32>
    %482 = arith.mulf %481, %480 : vector<1x256xf32>
    %483 = arith.addf %478, %482 : vector<1x256xf32>
    %c33_186 = arith.constant 33 : index
    %484 = memref.load %arg1[%c33_186] : memref<98xf32, #tpu.memory_space<smem>>
    %c0_187 = arith.constant 0 : index
    %c69 = arith.constant 69 : index
    %485 = vector.load %arg4[%c0_187, %c69] : memref<2x358xf32, #tpu.memory_space<vmem>>, vector<1x256xf32>
    %486 = vector.broadcast %484 : f32 to vector<1x256xf32>
    %487 = arith.mulf %486, %485 : vector<1x256xf32>
    %488 = arith.addf %483, %487 : vector<1x256xf32>
    %c40 = arith.constant 40 : index
    %489 = memref.load %arg1[%c40] : memref<98xf32, #tpu.memory_space<smem>>
    %c0_188 = arith.constant 0 : index
    %c85_189 = arith.constant 85 : index
    %490 = vector.load %arg4[%c0_188, %c85_189] : memref<2x358xf32, #tpu.memory_space<vmem>>, vector<1x256xf32>
    %491 = vector.broadcast %489 : f32 to vector<1x256xf32>
    %492 = arith.mulf %491, %490 : vector<1x256xf32>
    %493 = arith.addf %488, %492 : vector<1x256xf32>
    %c47 = arith.constant 47 : index
    %494 = memref.load %arg1[%c47] : memref<98xf32, #tpu.memory_space<smem>>
    %c0_190 = arith.constant 0 : index
    %c101 = arith.constant 101 : index
    %495 = vector.load %arg4[%c0_190, %c101] : memref<2x358xf32, #tpu.memory_space<vmem>>, vector<1x256xf32>
    %496 = vector.broadcast %494 : f32 to vector<1x256xf32>
    %497 = arith.mulf %496, %495 : vector<1x256xf32>
    %498 = arith.addf %493, %497 : vector<1x256xf32>
    %c54 = arith.constant 54 : index
    %499 = memref.load %arg1[%c54] : memref<98xf32, #tpu.memory_space<smem>>
    %c1_191 = arith.constant 1 : index
    %c5_192 = arith.constant 5 : index
    %500 = vector.load %arg4[%c1_191, %c5_192] : memref<2x358xf32, #tpu.memory_space<vmem>>, vector<1x256xf32>
    %501 = vector.broadcast %499 : f32 to vector<1x256xf32>
    %502 = arith.mulf %501, %500 : vector<1x256xf32>
    %503 = arith.addf %498, %502 : vector<1x256xf32>
    %c61 = arith.constant 61 : index
    %504 = memref.load %arg1[%c61] : memref<98xf32, #tpu.memory_space<smem>>
    %c1_193 = arith.constant 1 : index
    %c21_194 = arith.constant 21 : index
    %505 = vector.load %arg4[%c1_193, %c21_194] : memref<2x358xf32, #tpu.memory_space<vmem>>, vector<1x256xf32>
    %506 = vector.broadcast %504 : f32 to vector<1x256xf32>
    %507 = arith.mulf %506, %505 : vector<1x256xf32>
    %508 = arith.addf %503, %507 : vector<1x256xf32>
    %c68_195 = arith.constant 68 : index
    %509 = memref.load %arg1[%c68_195] : memref<98xf32, #tpu.memory_space<smem>>
    %c1_196 = arith.constant 1 : index
    %c37_197 = arith.constant 37 : index
    %510 = vector.load %arg4[%c1_196, %c37_197] : memref<2x358xf32, #tpu.memory_space<vmem>>, vector<1x256xf32>
    %511 = vector.broadcast %509 : f32 to vector<1x256xf32>
    %512 = arith.mulf %511, %510 : vector<1x256xf32>
    %513 = arith.addf %508, %512 : vector<1x256xf32>
    %c75 = arith.constant 75 : index
    %514 = memref.load %arg1[%c75] : memref<98xf32, #tpu.memory_space<smem>>
    %c1_198 = arith.constant 1 : index
    %c53_199 = arith.constant 53 : index
    %515 = vector.load %arg4[%c1_198, %c53_199] : memref<2x358xf32, #tpu.memory_space<vmem>>, vector<1x256xf32>
    %516 = vector.broadcast %514 : f32 to vector<1x256xf32>
    %517 = arith.mulf %516, %515 : vector<1x256xf32>
    %518 = arith.addf %513, %517 : vector<1x256xf32>
    %c82_200 = arith.constant 82 : index
    %519 = memref.load %arg1[%c82_200] : memref<98xf32, #tpu.memory_space<smem>>
    %c1_201 = arith.constant 1 : index
    %c69_202 = arith.constant 69 : index
    %520 = vector.load %arg4[%c1_201, %c69_202] : memref<2x358xf32, #tpu.memory_space<vmem>>, vector<1x256xf32>
    %521 = vector.broadcast %519 : f32 to vector<1x256xf32>
    %522 = arith.mulf %521, %520 : vector<1x256xf32>
    %523 = arith.addf %518, %522 : vector<1x256xf32>
    %c89 = arith.constant 89 : index
    %524 = memref.load %arg1[%c89] : memref<98xf32, #tpu.memory_space<smem>>
    %c1_203 = arith.constant 1 : index
    %c85_204 = arith.constant 85 : index
    %525 = vector.load %arg4[%c1_203, %c85_204] : memref<2x358xf32, #tpu.memory_space<vmem>>, vector<1x256xf32>
    %526 = vector.broadcast %524 : f32 to vector<1x256xf32>
    %527 = arith.mulf %526, %525 : vector<1x256xf32>
    %528 = arith.addf %523, %527 : vector<1x256xf32>
    %c96_205 = arith.constant 96 : index
    %529 = memref.load %arg1[%c96_205] : memref<98xf32, #tpu.memory_space<smem>>
    %c1_206 = arith.constant 1 : index
    %c101_207 = arith.constant 101 : index
    %530 = vector.load %arg4[%c1_206, %c101_207] : memref<2x358xf32, #tpu.memory_space<vmem>>, vector<1x256xf32>
    %531 = vector.broadcast %529 : f32 to vector<1x256xf32>
    %532 = arith.mulf %531, %530 : vector<1x256xf32>
    %533 = arith.addf %528, %532 : vector<1x256xf32>
    %cst_208 = arith.constant 0.000000e+00 : f32
    %534 = vector.broadcast %cst_208 : f32 to vector<1x256xf32>
    %535 = arith.select %72, %533, %534 : vector<1x256xi1>, vector<1x256xf32>
    %536 = arith.addf %462, %535 : vector<1x256xf32>
    %cst_209 = arith.constant 0.000000e+00 : f32
    %537 = vector.broadcast %cst_209 : f32 to vector<1x256xf32>
    %c6 = arith.constant 6 : index
    %538 = memref.load %arg1[%c6] : memref<98xf32, #tpu.memory_space<smem>>
    %c0_210 = arith.constant 0 : index
    %c6_211 = arith.constant 6 : index
    %539 = vector.load %arg4[%c0_210, %c6_211] : memref<2x358xf32, #tpu.memory_space<vmem>>, vector<1x256xf32>
    %540 = vector.broadcast %538 : f32 to vector<1x256xf32>
    %541 = arith.mulf %540, %539 : vector<1x256xf32>
    %542 = arith.addf %537, %541 : vector<1x256xf32>
    %c13 = arith.constant 13 : index
    %543 = memref.load %arg1[%c13] : memref<98xf32, #tpu.memory_space<smem>>
    %c0_212 = arith.constant 0 : index
    %c22_213 = arith.constant 22 : index
    %544 = vector.load %arg4[%c0_212, %c22_213] : memref<2x358xf32, #tpu.memory_space<vmem>>, vector<1x256xf32>
    %545 = vector.broadcast %543 : f32 to vector<1x256xf32>
    %546 = arith.mulf %545, %544 : vector<1x256xf32>
    %547 = arith.addf %542, %546 : vector<1x256xf32>
    %c20_214 = arith.constant 20 : index
    %548 = memref.load %arg1[%c20_214] : memref<98xf32, #tpu.memory_space<smem>>
    %c0_215 = arith.constant 0 : index
    %c38_216 = arith.constant 38 : index
    %549 = vector.load %arg4[%c0_215, %c38_216] : memref<2x358xf32, #tpu.memory_space<vmem>>, vector<1x256xf32>
    %550 = vector.broadcast %548 : f32 to vector<1x256xf32>
    %551 = arith.mulf %550, %549 : vector<1x256xf32>
    %552 = arith.addf %547, %551 : vector<1x256xf32>
    %c27 = arith.constant 27 : index
    %553 = memref.load %arg1[%c27] : memref<98xf32, #tpu.memory_space<smem>>
    %c0_217 = arith.constant 0 : index
    %c54_218 = arith.constant 54 : index
    %554 = vector.load %arg4[%c0_217, %c54_218] : memref<2x358xf32, #tpu.memory_space<vmem>>, vector<1x256xf32>
    %555 = vector.broadcast %553 : f32 to vector<1x256xf32>
    %556 = arith.mulf %555, %554 : vector<1x256xf32>
    %557 = arith.addf %552, %556 : vector<1x256xf32>
    %c34_219 = arith.constant 34 : index
    %558 = memref.load %arg1[%c34_219] : memref<98xf32, #tpu.memory_space<smem>>
    %c0_220 = arith.constant 0 : index
    %c70_221 = arith.constant 70 : index
    %559 = vector.load %arg4[%c0_220, %c70_221] : memref<2x358xf32, #tpu.memory_space<vmem>>, vector<1x256xf32>
    %560 = vector.broadcast %558 : f32 to vector<1x256xf32>
    %561 = arith.mulf %560, %559 : vector<1x256xf32>
    %562 = arith.addf %557, %561 : vector<1x256xf32>
    %c41 = arith.constant 41 : index
    %563 = memref.load %arg1[%c41] : memref<98xf32, #tpu.memory_space<smem>>
    %c0_222 = arith.constant 0 : index
    %c86_223 = arith.constant 86 : index
    %564 = vector.load %arg4[%c0_222, %c86_223] : memref<2x358xf32, #tpu.memory_space<vmem>>, vector<1x256xf32>
    %565 = vector.broadcast %563 : f32 to vector<1x256xf32>
    %566 = arith.mulf %565, %564 : vector<1x256xf32>
    %567 = arith.addf %562, %566 : vector<1x256xf32>
    %c48_224 = arith.constant 48 : index
    %568 = memref.load %arg1[%c48_224] : memref<98xf32, #tpu.memory_space<smem>>
    %c0_225 = arith.constant 0 : index
    %c102 = arith.constant 102 : index
    %569 = vector.load %arg4[%c0_225, %c102] : memref<2x358xf32, #tpu.memory_space<vmem>>, vector<1x256xf32>
    %570 = vector.broadcast %568 : f32 to vector<1x256xf32>
    %571 = arith.mulf %570, %569 : vector<1x256xf32>
    %572 = arith.addf %567, %571 : vector<1x256xf32>
    %c55 = arith.constant 55 : index
    %573 = memref.load %arg1[%c55] : memref<98xf32, #tpu.memory_space<smem>>
    %c1_226 = arith.constant 1 : index
    %c6_227 = arith.constant 6 : index
    %574 = vector.load %arg4[%c1_226, %c6_227] : memref<2x358xf32, #tpu.memory_space<vmem>>, vector<1x256xf32>
    %575 = vector.broadcast %573 : f32 to vector<1x256xf32>
    %576 = arith.mulf %575, %574 : vector<1x256xf32>
    %577 = arith.addf %572, %576 : vector<1x256xf32>
    %c62 = arith.constant 62 : index
    %578 = memref.load %arg1[%c62] : memref<98xf32, #tpu.memory_space<smem>>
    %c1_228 = arith.constant 1 : index
    %c22_229 = arith.constant 22 : index
    %579 = vector.load %arg4[%c1_228, %c22_229] : memref<2x358xf32, #tpu.memory_space<vmem>>, vector<1x256xf32>
    %580 = vector.broadcast %578 : f32 to vector<1x256xf32>
    %581 = arith.mulf %580, %579 : vector<1x256xf32>
    %582 = arith.addf %577, %581 : vector<1x256xf32>
    %c69_230 = arith.constant 69 : index
    %583 = memref.load %arg1[%c69_230] : memref<98xf32, #tpu.memory_space<smem>>
    %c1_231 = arith.constant 1 : index
    %c38_232 = arith.constant 38 : index
    %584 = vector.load %arg4[%c1_231, %c38_232] : memref<2x358xf32, #tpu.memory_space<vmem>>, vector<1x256xf32>
    %585 = vector.broadcast %583 : f32 to vector<1x256xf32>
    %586 = arith.mulf %585, %584 : vector<1x256xf32>
    %587 = arith.addf %582, %586 : vector<1x256xf32>
    %c76 = arith.constant 76 : index
    %588 = memref.load %arg1[%c76] : memref<98xf32, #tpu.memory_space<smem>>
    %c1_233 = arith.constant 1 : index
    %c54_234 = arith.constant 54 : index
    %589 = vector.load %arg4[%c1_233, %c54_234] : memref<2x358xf32, #tpu.memory_space<vmem>>, vector<1x256xf32>
    %590 = vector.broadcast %588 : f32 to vector<1x256xf32>
    %591 = arith.mulf %590, %589 : vector<1x256xf32>
    %592 = arith.addf %587, %591 : vector<1x256xf32>
    %c83_235 = arith.constant 83 : index
    %593 = memref.load %arg1[%c83_235] : memref<98xf32, #tpu.memory_space<smem>>
    %c1_236 = arith.constant 1 : index
    %c70_237 = arith.constant 70 : index
    %594 = vector.load %arg4[%c1_236, %c70_237] : memref<2x358xf32, #tpu.memory_space<vmem>>, vector<1x256xf32>
    %595 = vector.broadcast %593 : f32 to vector<1x256xf32>
    %596 = arith.mulf %595, %594 : vector<1x256xf32>
    %597 = arith.addf %592, %596 : vector<1x256xf32>
    %c90 = arith.constant 90 : index
    %598 = memref.load %arg1[%c90] : memref<98xf32, #tpu.memory_space<smem>>
    %c1_238 = arith.constant 1 : index
    %c86_239 = arith.constant 86 : index
    %599 = vector.load %arg4[%c1_238, %c86_239] : memref<2x358xf32, #tpu.memory_space<vmem>>, vector<1x256xf32>
    %600 = vector.broadcast %598 : f32 to vector<1x256xf32>
    %601 = arith.mulf %600, %599 : vector<1x256xf32>
    %602 = arith.addf %597, %601 : vector<1x256xf32>
    %c97_240 = arith.constant 97 : index
    %603 = memref.load %arg1[%c97_240] : memref<98xf32, #tpu.memory_space<smem>>
    %c1_241 = arith.constant 1 : index
    %c102_242 = arith.constant 102 : index
    %604 = vector.load %arg4[%c1_241, %c102_242] : memref<2x358xf32, #tpu.memory_space<vmem>>, vector<1x256xf32>
    %605 = vector.broadcast %603 : f32 to vector<1x256xf32>
    %606 = arith.mulf %605, %604 : vector<1x256xf32>
    %607 = arith.addf %602, %606 : vector<1x256xf32>
    %cst_243 = arith.constant 0.000000e+00 : f32
    %608 = vector.broadcast %cst_243 : f32 to vector<1x256xf32>
    %609 = arith.select %81, %607, %608 : vector<1x256xi1>, vector<1x256xf32>
    %610 = arith.addf %536, %609 : vector<1x256xf32>
    %611 = arith.negf %610 : vector<1x256xf32>
    %612 = math.exp %611 : vector<1x256xf32>
    %cst_244 = arith.constant 1.000000e+00 : f32
    %613 = vector.broadcast %cst_244 : f32 to vector<1x256xf32>
    %614 = arith.addf %613, %612 : vector<1x256xf32>
    %615 = arith.divf %613, %614 : vector<1x256xf32>
    %c0_245 = arith.constant 0 : index
    %c0_246 = arith.constant 0 : index
    %c0_247 = arith.constant 0 : index
    %616 = vector.load %arg2[%c0_245, %c0_246, %c0_247] : memref<2x4x256xf32, #tpu.memory_space<vmem>>, vector<1x4x256xf32>
    %617 = vector.shape_cast %616 : vector<1x4x256xf32> to vector<4x256xf32>
    %618 = vector.broadcast %615 : vector<1x256xf32> to vector<4x256xf32>
    %619 = arith.mulf %617, %618 : vector<4x256xf32>
    %c0_248 = arith.constant 0 : index
    %c0_249 = arith.constant 0 : index
    %c0_250 = arith.constant 0 : index
    %620 = vector.load %arg3[%c0_248, %c0_249, %c0_250] : memref<2x4x256xf32, #tpu.memory_space<vmem>>, vector<1x4x256xf32>
    %621 = vector.shape_cast %620 : vector<1x4x256xf32> to vector<4x256xf32>
    %622 = vector.shape_cast %619 : vector<4x256xf32> to vector<1x4x256xf32>
    tpu.vector_store %arg3[%c0_248, %c0_249, %c0_250], %622 {strides = array<i32>} : memref<2x4x256xf32, #tpu.memory_space<vmem>>, vector<1x4x256xf32>,
    %c1_251 = arith.constant 1 : index
    %c0_252 = arith.constant 0 : index
    %c0_253 = arith.constant 0 : index
    %623 = vector.load %arg2[%c1_251, %c0_252, %c0_253] : memref<2x4x256xf32, #tpu.memory_space<vmem>>, vector<1x4x256xf32>
    %624 = vector.shape_cast %623 : vector<1x4x256xf32> to vector<4x256xf32>
    %cst_254 = arith.constant dense<0.000000e+00> : vector<256xf32>
    %625 = vector.multi_reduction <add>, %624, %cst_254 [0] : vector<4x256xf32> to vector<256xf32>
    %626 = vector.shape_cast %625 : vector<256xf32> to vector<1x256xf32>
    %cst_255 = arith.constant 4.000000e+00 : f32
    %627 = vector.broadcast %cst_255 : f32 to vector<1x256xf32>
    %628 = arith.divf %626, %627 : vector<1x256xf32>
    %cst_256 = arith.constant dense<0xFF800000> : vector<256xf32>
    %629 = vector.multi_reduction <maximumf>, %624, %cst_256 [0] : vector<4x256xf32> to vector<256xf32>
    %630 = vector.shape_cast %629 : vector<256xf32> to vector<1x256xf32>
    %c0_257 = arith.constant 0 : index
    %c51_258 = arith.constant 51 : index
    %631 = vector.load %arg4[%c0_257, %c51_258] : memref<2x358xf32, #tpu.memory_space<vmem>>, vector<1x256xf32>
    tpu.vector_store %arg4[%c0_257, %c51_258], %628 {strides = array<i32>} : memref<2x358xf32, #tpu.memory_space<vmem>>, vector<1x256xf32>,
    %c1_259 = arith.constant 1 : index
    %c51_260 = arith.constant 51 : index
    %632 = vector.load %arg4[%c1_259, %c51_260] : memref<2x358xf32, #tpu.memory_space<vmem>>, vector<1x256xf32>
    tpu.vector_store %arg4[%c1_259, %c51_260], %630 {strides = array<i32>} : memref<2x358xf32, #tpu.memory_space<vmem>>, vector<1x256xf32>,
    %cst_261 = arith.constant 0.000000e+00 : f32
    %633 = vector.broadcast %cst_261 : f32 to vector<1x256xf32>
    %cst_262 = arith.constant 0.000000e+00 : f32
    %634 = vector.broadcast %cst_262 : f32 to vector<1x256xf32>
    %c0_263 = arith.constant 0 : index
    %635 = memref.load %arg1[%c0_263] : memref<98xf32, #tpu.memory_space<smem>>
    %c0_264 = arith.constant 0 : index
    %c0_265 = arith.constant 0 : index
    %636 = vector.load %arg4[%c0_264, %c0_265] : memref<2x358xf32, #tpu.memory_space<vmem>>, vector<1x256xf32>
    %637 = vector.broadcast %635 : f32 to vector<1x256xf32>
    %638 = arith.mulf %637, %636 : vector<1x256xf32>
    %639 = arith.addf %634, %638 : vector<1x256xf32>
    %c7_266 = arith.constant 7 : index
    %640 = memref.load %arg1[%c7_266] : memref<98xf32, #tpu.memory_space<smem>>
    %c0_267 = arith.constant 0 : index
    %c16_268 = arith.constant 16 : index
    %641 = vector.load %arg4[%c0_267, %c16_268] : memref<2x358xf32, #tpu.memory_space<vmem>>, vector<1x256xf32>
    %642 = vector.broadcast %640 : f32 to vector<1x256xf32>
    %643 = arith.mulf %642, %641 : vector<1x256xf32>
    %644 = arith.addf %639, %643 : vector<1x256xf32>
    %c14_269 = arith.constant 14 : index
    %645 = memref.load %arg1[%c14_269] : memref<98xf32, #tpu.memory_space<smem>>
    %c0_270 = arith.constant 0 : index
    %c32_271 = arith.constant 32 : index
    %646 = vector.load %arg4[%c0_270, %c32_271] : memref<2x358xf32, #tpu.memory_space<vmem>>, vector<1x256xf32>
    %647 = vector.broadcast %645 : f32 to vector<1x256xf32>
    %648 = arith.mulf %647, %646 : vector<1x256xf32>
    %649 = arith.addf %644, %648 : vector<1x256xf32>
    %c21_272 = arith.constant 21 : index
    %650 = memref.load %arg1[%c21_272] : memref<98xf32, #tpu.memory_space<smem>>
    %c0_273 = arith.constant 0 : index
    %c48_274 = arith.constant 48 : index
    %651 = vector.load %arg4[%c0_273, %c48_274] : memref<2x358xf32, #tpu.memory_space<vmem>>, vector<1x256xf32>
    %652 = vector.broadcast %650 : f32 to vector<1x256xf32>
    %653 = arith.mulf %652, %651 : vector<1x256xf32>
    %654 = arith.addf %649, %653 : vector<1x256xf32>
    %c28_275 = arith.constant 28 : index
    %655 = memref.load %arg1[%c28_275] : memref<98xf32, #tpu.memory_space<smem>>
    %c0_276 = arith.constant 0 : index
    %c64_277 = arith.constant 64 : index
    %656 = vector.load %arg4[%c0_276, %c64_277] : memref<2x358xf32, #tpu.memory_space<vmem>>, vector<1x256xf32>
    %657 = vector.broadcast %655 : f32 to vector<1x256xf32>
    %658 = arith.mulf %657, %656 : vector<1x256xf32>
    %659 = arith.addf %654, %658 : vector<1x256xf32>
    %c35_278 = arith.constant 35 : index
    %660 = memref.load %arg1[%c35_278] : memref<98xf32, #tpu.memory_space<smem>>
    %c0_279 = arith.constant 0 : index
    %c80_280 = arith.constant 80 : index
    %661 = vector.load %arg4[%c0_279, %c80_280] : memref<2x358xf32, #tpu.memory_space<vmem>>, vector<1x256xf32>
    %662 = vector.broadcast %660 : f32 to vector<1x256xf32>
    %663 = arith.mulf %662, %661 : vector<1x256xf32>
    %664 = arith.addf %659, %663 : vector<1x256xf32>
    %c42_281 = arith.constant 42 : index
    %665 = memref.load %arg1[%c42_281] : memref<98xf32, #tpu.memory_space<smem>>
    %c0_282 = arith.constant 0 : index
    %c96_283 = arith.constant 96 : index
    %666 = vector.load %arg4[%c0_282, %c96_283] : memref<2x358xf32, #tpu.memory_space<vmem>>, vector<1x256xf32>
    %667 = vector.broadcast %665 : f32 to vector<1x256xf32>
    %668 = arith.mulf %667, %666 : vector<1x256xf32>
    %669 = arith.addf %664, %668 : vector<1x256xf32>
    %c49_284 = arith.constant 49 : index
    %670 = memref.load %arg1[%c49_284] : memref<98xf32, #tpu.memory_space<smem>>
    %c1_285 = arith.constant 1 : index
    %c0_286 = arith.constant 0 : index
    %671 = vector.load %arg4[%c1_285, %c0_286] : memref<2x358xf32, #tpu.memory_space<vmem>>, vector<1x256xf32>
    %672 = vector.broadcast %670 : f32 to vector<1x256xf32>
    %673 = arith.mulf %672, %671 : vector<1x256xf32>
    %674 = arith.addf %669, %673 : vector<1x256xf32>
    %c56_287 = arith.constant 56 : index
    %675 = memref.load %arg1[%c56_287] : memref<98xf32, #tpu.memory_space<smem>>
    %c1_288 = arith.constant 1 : index
    %c16_289 = arith.constant 16 : index
    %676 = vector.load %arg4[%c1_288, %c16_289] : memref<2x358xf32, #tpu.memory_space<vmem>>, vector<1x256xf32>
    %677 = vector.broadcast %675 : f32 to vector<1x256xf32>
    %678 = arith.mulf %677, %676 : vector<1x256xf32>
    %679 = arith.addf %674, %678 : vector<1x256xf32>
    %c63_290 = arith.constant 63 : index
    %680 = memref.load %arg1[%c63_290] : memref<98xf32, #tpu.memory_space<smem>>
    %c1_291 = arith.constant 1 : index
    %c32_292 = arith.constant 32 : index
    %681 = vector.load %arg4[%c1_291, %c32_292] : memref<2x358xf32, #tpu.memory_space<vmem>>, vector<1x256xf32>
    %682 = vector.broadcast %680 : f32 to vector<1x256xf32>
    %683 = arith.mulf %682, %681 : vector<1x256xf32>
    %684 = arith.addf %679, %683 : vector<1x256xf32>
    %c70_293 = arith.constant 70 : index
    %685 = memref.load %arg1[%c70_293] : memref<98xf32, #tpu.memory_space<smem>>
    %c1_294 = arith.constant 1 : index
    %c48_295 = arith.constant 48 : index
    %686 = vector.load %arg4[%c1_294, %c48_295] : memref<2x358xf32, #tpu.memory_space<vmem>>, vector<1x256xf32>
    %687 = vector.broadcast %685 : f32 to vector<1x256xf32>
    %688 = arith.mulf %687, %686 : vector<1x256xf32>
    %689 = arith.addf %684, %688 : vector<1x256xf32>
    %c77_296 = arith.constant 77 : index
    %690 = memref.load %arg1[%c77_296] : memref<98xf32, #tpu.memory_space<smem>>
    %c1_297 = arith.constant 1 : index
    %c64_298 = arith.constant 64 : index
    %691 = vector.load %arg4[%c1_297, %c64_298] : memref<2x358xf32, #tpu.memory_space<vmem>>, vector<1x256xf32>
    %692 = vector.broadcast %690 : f32 to vector<1x256xf32>
    %693 = arith.mulf %692, %691 : vector<1x256xf32>
    %694 = arith.addf %689, %693 : vector<1x256xf32>
    %c84_299 = arith.constant 84 : index
    %695 = memref.load %arg1[%c84_299] : memref<98xf32, #tpu.memory_space<smem>>
    %c1_300 = arith.constant 1 : index
    %c80_301 = arith.constant 80 : index
    %696 = vector.load %arg4[%c1_300, %c80_301] : memref<2x358xf32, #tpu.memory_space<vmem>>, vector<1x256xf32>
    %697 = vector.broadcast %695 : f32 to vector<1x256xf32>
    %698 = arith.mulf %697, %696 : vector<1x256xf32>
    %699 = arith.addf %694, %698 : vector<1x256xf32>
    %c91_302 = arith.constant 91 : index
    %700 = memref.load %arg1[%c91_302] : memref<98xf32, #tpu.memory_space<smem>>
    %c1_303 = arith.constant 1 : index
    %c96_304 = arith.constant 96 : index
    %701 = vector.load %arg4[%c1_303, %c96_304] : memref<2x358xf32, #tpu.memory_space<vmem>>, vector<1x256xf32>
    %702 = vector.broadcast %700 : f32 to vector<1x256xf32>
    %703 = arith.mulf %702, %701 : vector<1x256xf32>
    %704 = arith.addf %699, %703 : vector<1x256xf32>
    %cst_305 = arith.constant 0.000000e+00 : f32
    %705 = vector.broadcast %cst_305 : f32 to vector<1x256xf32>
    %706 = arith.select %27, %704, %705 : vector<1x256xi1>, vector<1x256xf32>
    %707 = arith.addf %633, %706 : vector<1x256xf32>
    %cst_306 = arith.constant 0.000000e+00 : f32
    %708 = vector.broadcast %cst_306 : f32 to vector<1x256xf32>
    %c1_307 = arith.constant 1 : index
    %709 = memref.load %arg1[%c1_307] : memref<98xf32, #tpu.memory_space<smem>>
    %c0_308 = arith.constant 0 : index
    %c1_309 = arith.constant 1 : index
    %710 = vector.load %arg4[%c0_308, %c1_309] : memref<2x358xf32, #tpu.memory_space<vmem>>, vector<1x256xf32>
    %711 = vector.broadcast %709 : f32 to vector<1x256xf32>
    %712 = arith.mulf %711, %710 : vector<1x256xf32>
    %713 = arith.addf %708, %712 : vector<1x256xf32>
    %c8_310 = arith.constant 8 : index
    %714 = memref.load %arg1[%c8_310] : memref<98xf32, #tpu.memory_space<smem>>
    %c0_311 = arith.constant 0 : index
    %c17_312 = arith.constant 17 : index
    %715 = vector.load %arg4[%c0_311, %c17_312] : memref<2x358xf32, #tpu.memory_space<vmem>>, vector<1x256xf32>
    %716 = vector.broadcast %714 : f32 to vector<1x256xf32>
    %717 = arith.mulf %716, %715 : vector<1x256xf32>
    %718 = arith.addf %713, %717 : vector<1x256xf32>
    %c15_313 = arith.constant 15 : index
    %719 = memref.load %arg1[%c15_313] : memref<98xf32, #tpu.memory_space<smem>>
    %c0_314 = arith.constant 0 : index
    %c33_315 = arith.constant 33 : index
    %720 = vector.load %arg4[%c0_314, %c33_315] : memref<2x358xf32, #tpu.memory_space<vmem>>, vector<1x256xf32>
    %721 = vector.broadcast %719 : f32 to vector<1x256xf32>
    %722 = arith.mulf %721, %720 : vector<1x256xf32>
    %723 = arith.addf %718, %722 : vector<1x256xf32>
    %c22_316 = arith.constant 22 : index
    %724 = memref.load %arg1[%c22_316] : memref<98xf32, #tpu.memory_space<smem>>
    %c0_317 = arith.constant 0 : index
    %c49_318 = arith.constant 49 : index
    %725 = vector.load %arg4[%c0_317, %c49_318] : memref<2x358xf32, #tpu.memory_space<vmem>>, vector<1x256xf32>
    %726 = vector.broadcast %724 : f32 to vector<1x256xf32>
    %727 = arith.mulf %726, %725 : vector<1x256xf32>
    %728 = arith.addf %723, %727 : vector<1x256xf32>
    %c29_319 = arith.constant 29 : index
    %729 = memref.load %arg1[%c29_319] : memref<98xf32, #tpu.memory_space<smem>>
    %c0_320 = arith.constant 0 : index
    %c65_321 = arith.constant 65 : index
    %730 = vector.load %arg4[%c0_320, %c65_321] : memref<2x358xf32, #tpu.memory_space<vmem>>, vector<1x256xf32>
    %731 = vector.broadcast %729 : f32 to vector<1x256xf32>
    %732 = arith.mulf %731, %730 : vector<1x256xf32>
    %733 = arith.addf %728, %732 : vector<1x256xf32>
    %c36_322 = arith.constant 36 : index
    %734 = memref.load %arg1[%c36_322] : memref<98xf32, #tpu.memory_space<smem>>
    %c0_323 = arith.constant 0 : index
    %c81_324 = arith.constant 81 : index
    %735 = vector.load %arg4[%c0_323, %c81_324] : memref<2x358xf32, #tpu.memory_space<vmem>>, vector<1x256xf32>
    %736 = vector.broadcast %734 : f32 to vector<1x256xf32>
    %737 = arith.mulf %736, %735 : vector<1x256xf32>
    %738 = arith.addf %733, %737 : vector<1x256xf32>
    %c43_325 = arith.constant 43 : index
    %739 = memref.load %arg1[%c43_325] : memref<98xf32, #tpu.memory_space<smem>>
    %c0_326 = arith.constant 0 : index
    %c97_327 = arith.constant 97 : index
    %740 = vector.load %arg4[%c0_326, %c97_327] : memref<2x358xf32, #tpu.memory_space<vmem>>, vector<1x256xf32>
    %741 = vector.broadcast %739 : f32 to vector<1x256xf32>
    %742 = arith.mulf %741, %740 : vector<1x256xf32>
    %743 = arith.addf %738, %742 : vector<1x256xf32>
    %c50_328 = arith.constant 50 : index
    %744 = memref.load %arg1[%c50_328] : memref<98xf32, #tpu.memory_space<smem>>
    %c1_329 = arith.constant 1 : index
    %c1_330 = arith.constant 1 : index
    %745 = vector.load %arg4[%c1_329, %c1_330] : memref<2x358xf32, #tpu.memory_space<vmem>>, vector<1x256xf32>
    %746 = vector.broadcast %744 : f32 to vector<1x256xf32>
    %747 = arith.mulf %746, %745 : vector<1x256xf32>
    %748 = arith.addf %743, %747 : vector<1x256xf32>
    %c57_331 = arith.constant 57 : index
    %749 = memref.load %arg1[%c57_331] : memref<98xf32, #tpu.memory_space<smem>>
    %c1_332 = arith.constant 1 : index
    %c17_333 = arith.constant 17 : index
    %750 = vector.load %arg4[%c1_332, %c17_333] : memref<2x358xf32, #tpu.memory_space<vmem>>, vector<1x256xf32>
    %751 = vector.broadcast %749 : f32 to vector<1x256xf32>
    %752 = arith.mulf %751, %750 : vector<1x256xf32>
    %753 = arith.addf %748, %752 : vector<1x256xf32>
    %c64_334 = arith.constant 64 : index
    %754 = memref.load %arg1[%c64_334] : memref<98xf32, #tpu.memory_space<smem>>
    %c1_335 = arith.constant 1 : index
    %c33_336 = arith.constant 33 : index
    %755 = vector.load %arg4[%c1_335, %c33_336] : memref<2x358xf32, #tpu.memory_space<vmem>>, vector<1x256xf32>
    %756 = vector.broadcast %754 : f32 to vector<1x256xf32>
    %757 = arith.mulf %756, %755 : vector<1x256xf32>
    %758 = arith.addf %753, %757 : vector<1x256xf32>
    %c71_337 = arith.constant 71 : index
    %759 = memref.load %arg1[%c71_337] : memref<98xf32, #tpu.memory_space<smem>>
    %c1_338 = arith.constant 1 : index
    %c49_339 = arith.constant 49 : index
    %760 = vector.load %arg4[%c1_338, %c49_339] : memref<2x358xf32, #tpu.memory_space<vmem>>, vector<1x256xf32>
    %761 = vector.broadcast %759 : f32 to vector<1x256xf32>
    %762 = arith.mulf %761, %760 : vector<1x256xf32>
    %763 = arith.addf %758, %762 : vector<1x256xf32>
    %c78_340 = arith.constant 78 : index
    %764 = memref.load %arg1[%c78_340] : memref<98xf32, #tpu.memory_space<smem>>
    %c1_341 = arith.constant 1 : index
    %c65_342 = arith.constant 65 : index
    %765 = vector.load %arg4[%c1_341, %c65_342] : memref<2x358xf32, #tpu.memory_space<vmem>>, vector<1x256xf32>
    %766 = vector.broadcast %764 : f32 to vector<1x256xf32>
    %767 = arith.mulf %766, %765 : vector<1x256xf32>
    %768 = arith.addf %763, %767 : vector<1x256xf32>
    %c85_343 = arith.constant 85 : index
    %769 = memref.load %arg1[%c85_343] : memref<98xf32, #tpu.memory_space<smem>>
    %c1_344 = arith.constant 1 : index
    %c81_345 = arith.constant 81 : index
    %770 = vector.load %arg4[%c1_344, %c81_345] : memref<2x358xf32, #tpu.memory_space<vmem>>, vector<1x256xf32>
    %771 = vector.broadcast %769 : f32 to vector<1x256xf32>
    %772 = arith.mulf %771, %770 : vector<1x256xf32>
    %773 = arith.addf %768, %772 : vector<1x256xf32>
    %c92_346 = arith.constant 92 : index
    %774 = memref.load %arg1[%c92_346] : memref<98xf32, #tpu.memory_space<smem>>
    %c1_347 = arith.constant 1 : index
    %c97_348 = arith.constant 97 : index
    %775 = vector.load %arg4[%c1_347, %c97_348] : memref<2x358xf32, #tpu.memory_space<vmem>>, vector<1x256xf32>
    %776 = vector.broadcast %774 : f32 to vector<1x256xf32>
    %777 = arith.mulf %776, %775 : vector<1x256xf32>
    %778 = arith.addf %773, %777 : vector<1x256xf32>
    %cst_349 = arith.constant 0.000000e+00 : f32
    %779 = vector.broadcast %cst_349 : f32 to vector<1x256xf32>
    %780 = arith.select %36, %778, %779 : vector<1x256xi1>, vector<1x256xf32>
    %781 = arith.addf %707, %780 : vector<1x256xf32>
    %cst_350 = arith.constant 0.000000e+00 : f32
    %782 = vector.broadcast %cst_350 : f32 to vector<1x256xf32>
    %c2_351 = arith.constant 2 : index
    %783 = memref.load %arg1[%c2_351] : memref<98xf32, #tpu.memory_space<smem>>
    %c0_352 = arith.constant 0 : index
    %c2_353 = arith.constant 2 : index
    %784 = vector.load %arg4[%c0_352, %c2_353] : memref<2x358xf32, #tpu.memory_space<vmem>>, vector<1x256xf32>
    %785 = vector.broadcast %783 : f32 to vector<1x256xf32>
    %786 = arith.mulf %785, %784 : vector<1x256xf32>
    %787 = arith.addf %782, %786 : vector<1x256xf32>
    %c9_354 = arith.constant 9 : index
    %788 = memref.load %arg1[%c9_354] : memref<98xf32, #tpu.memory_space<smem>>
    %c0_355 = arith.constant 0 : index
    %c18_356 = arith.constant 18 : index
    %789 = vector.load %arg4[%c0_355, %c18_356] : memref<2x358xf32, #tpu.memory_space<vmem>>, vector<1x256xf32>
    %790 = vector.broadcast %788 : f32 to vector<1x256xf32>
    %791 = arith.mulf %790, %789 : vector<1x256xf32>
    %792 = arith.addf %787, %791 : vector<1x256xf32>
    %c16_357 = arith.constant 16 : index
    %793 = memref.load %arg1[%c16_357] : memref<98xf32, #tpu.memory_space<smem>>
    %c0_358 = arith.constant 0 : index
    %c34_359 = arith.constant 34 : index
    %794 = vector.load %arg4[%c0_358, %c34_359] : memref<2x358xf32, #tpu.memory_space<vmem>>, vector<1x256xf32>
    %795 = vector.broadcast %793 : f32 to vector<1x256xf32>
    %796 = arith.mulf %795, %794 : vector<1x256xf32>
    %797 = arith.addf %792, %796 : vector<1x256xf32>
    %c23_360 = arith.constant 23 : index
    %798 = memref.load %arg1[%c23_360] : memref<98xf32, #tpu.memory_space<smem>>
    %c0_361 = arith.constant 0 : index
    %c50_362 = arith.constant 50 : index
    %799 = vector.load %arg4[%c0_361, %c50_362] : memref<2x358xf32, #tpu.memory_space<vmem>>, vector<1x256xf32>
    %800 = vector.broadcast %798 : f32 to vector<1x256xf32>
    %801 = arith.mulf %800, %799 : vector<1x256xf32>
    %802 = arith.addf %797, %801 : vector<1x256xf32>
    %c30_363 = arith.constant 30 : index
    %803 = memref.load %arg1[%c30_363] : memref<98xf32, #tpu.memory_space<smem>>
    %c0_364 = arith.constant 0 : index
    %c66_365 = arith.constant 66 : index
    %804 = vector.load %arg4[%c0_364, %c66_365] : memref<2x358xf32, #tpu.memory_space<vmem>>, vector<1x256xf32>
    %805 = vector.broadcast %803 : f32 to vector<1x256xf32>
    %806 = arith.mulf %805, %804 : vector<1x256xf32>
    %807 = arith.addf %802, %806 : vector<1x256xf32>
    %c37_366 = arith.constant 37 : index
    %808 = memref.load %arg1[%c37_366] : memref<98xf32, #tpu.memory_space<smem>>
    %c0_367 = arith.constant 0 : index
    %c82_368 = arith.constant 82 : index
    %809 = vector.load %arg4[%c0_367, %c82_368] : memref<2x358xf32, #tpu.memory_space<vmem>>, vector<1x256xf32>
    %810 = vector.broadcast %808 : f32 to vector<1x256xf32>
    %811 = arith.mulf %810, %809 : vector<1x256xf32>
    %812 = arith.addf %807, %811 : vector<1x256xf32>
    %c44_369 = arith.constant 44 : index
    %813 = memref.load %arg1[%c44_369] : memref<98xf32, #tpu.memory_space<smem>>
    %c0_370 = arith.constant 0 : index
    %c98_371 = arith.constant 98 : index
    %814 = vector.load %arg4[%c0_370, %c98_371] : memref<2x358xf32, #tpu.memory_space<vmem>>, vector<1x256xf32>
    %815 = vector.broadcast %813 : f32 to vector<1x256xf32>
    %816 = arith.mulf %815, %814 : vector<1x256xf32>
    %817 = arith.addf %812, %816 : vector<1x256xf32>
    %c51_372 = arith.constant 51 : index
    %818 = memref.load %arg1[%c51_372] : memref<98xf32, #tpu.memory_space<smem>>
    %c1_373 = arith.constant 1 : index
    %c2_374 = arith.constant 2 : index
    %819 = vector.load %arg4[%c1_373, %c2_374] : memref<2x358xf32, #tpu.memory_space<vmem>>, vector<1x256xf32>
    %820 = vector.broadcast %818 : f32 to vector<1x256xf32>
    %821 = arith.mulf %820, %819 : vector<1x256xf32>
    %822 = arith.addf %817, %821 : vector<1x256xf32>
    %c58_375 = arith.constant 58 : index
    %823 = memref.load %arg1[%c58_375] : memref<98xf32, #tpu.memory_space<smem>>
    %c1_376 = arith.constant 1 : index
    %c18_377 = arith.constant 18 : index
    %824 = vector.load %arg4[%c1_376, %c18_377] : memref<2x358xf32, #tpu.memory_space<vmem>>, vector<1x256xf32>
    %825 = vector.broadcast %823 : f32 to vector<1x256xf32>
    %826 = arith.mulf %825, %824 : vector<1x256xf32>
    %827 = arith.addf %822, %826 : vector<1x256xf32>
    %c65_378 = arith.constant 65 : index
    %828 = memref.load %arg1[%c65_378] : memref<98xf32, #tpu.memory_space<smem>>
    %c1_379 = arith.constant 1 : index
    %c34_380 = arith.constant 34 : index
    %829 = vector.load %arg4[%c1_379, %c34_380] : memref<2x358xf32, #tpu.memory_space<vmem>>, vector<1x256xf32>
    %830 = vector.broadcast %828 : f32 to vector<1x256xf32>
    %831 = arith.mulf %830, %829 : vector<1x256xf32>
    %832 = arith.addf %827, %831 : vector<1x256xf32>
    %c72_381 = arith.constant 72 : index
    %833 = memref.load %arg1[%c72_381] : memref<98xf32, #tpu.memory_space<smem>>
    %c1_382 = arith.constant 1 : index
    %c50_383 = arith.constant 50 : index
    %834 = vector.load %arg4[%c1_382, %c50_383] : memref<2x358xf32, #tpu.memory_space<vmem>>, vector<1x256xf32>
    %835 = vector.broadcast %833 : f32 to vector<1x256xf32>
    %836 = arith.mulf %835, %834 : vector<1x256xf32>
    %837 = arith.addf %832, %836 : vector<1x256xf32>
    %c79_384 = arith.constant 79 : index
    %838 = memref.load %arg1[%c79_384] : memref<98xf32, #tpu.memory_space<smem>>
    %c1_385 = arith.constant 1 : index
    %c66_386 = arith.constant 66 : index
    %839 = vector.load %arg4[%c1_385, %c66_386] : memref<2x358xf32, #tpu.memory_space<vmem>>, vector<1x256xf32>
    %840 = vector.broadcast %838 : f32 to vector<1x256xf32>
    %841 = arith.mulf %840, %839 : vector<1x256xf32>
    %842 = arith.addf %837, %841 : vector<1x256xf32>
    %c86_387 = arith.constant 86 : index
    %843 = memref.load %arg1[%c86_387] : memref<98xf32, #tpu.memory_space<smem>>
    %c1_388 = arith.constant 1 : index
    %c82_389 = arith.constant 82 : index
    %844 = vector.load %arg4[%c1_388, %c82_389] : memref<2x358xf32, #tpu.memory_space<vmem>>, vector<1x256xf32>
    %845 = vector.broadcast %843 : f32 to vector<1x256xf32>
    %846 = arith.mulf %845, %844 : vector<1x256xf32>
    %847 = arith.addf %842, %846 : vector<1x256xf32>
    %c93_390 = arith.constant 93 : index
    %848 = memref.load %arg1[%c93_390] : memref<98xf32, #tpu.memory_space<smem>>
    %c1_391 = arith.constant 1 : index
    %c98_392 = arith.constant 98 : index
    %849 = vector.load %arg4[%c1_391, %c98_392] : memref<2x358xf32, #tpu.memory_space<vmem>>, vector<1x256xf32>
    %850 = vector.broadcast %848 : f32 to vector<1x256xf32>
    %851 = arith.mulf %850, %849 : vector<1x256xf32>
    %852 = arith.addf %847, %851 : vector<1x256xf32>
    %cst_393 = arith.constant 0.000000e+00 : f32
    %853 = vector.broadcast %cst_393 : f32 to vector<1x256xf32>
    %854 = arith.select %45, %852, %853 : vector<1x256xi1>, vector<1x256xf32>
    %855 = arith.addf %781, %854 : vector<1x256xf32>
    %cst_394 = arith.constant 0.000000e+00 : f32
    %856 = vector.broadcast %cst_394 : f32 to vector<1x256xf32>
    %c3_395 = arith.constant 3 : index
    %857 = memref.load %arg1[%c3_395] : memref<98xf32, #tpu.memory_space<smem>>
    %c0_396 = arith.constant 0 : index
    %c3_397 = arith.constant 3 : index
    %858 = vector.load %arg4[%c0_396, %c3_397] : memref<2x358xf32, #tpu.memory_space<vmem>>, vector<1x256xf32>
    %859 = vector.broadcast %857 : f32 to vector<1x256xf32>
    %860 = arith.mulf %859, %858 : vector<1x256xf32>
    %861 = arith.addf %856, %860 : vector<1x256xf32>
    %c10_398 = arith.constant 10 : index
    %862 = memref.load %arg1[%c10_398] : memref<98xf32, #tpu.memory_space<smem>>
    %c0_399 = arith.constant 0 : index
    %c19_400 = arith.constant 19 : index
    %863 = vector.load %arg4[%c0_399, %c19_400] : memref<2x358xf32, #tpu.memory_space<vmem>>, vector<1x256xf32>
    %864 = vector.broadcast %862 : f32 to vector<1x256xf32>
    %865 = arith.mulf %864, %863 : vector<1x256xf32>
    %866 = arith.addf %861, %865 : vector<1x256xf32>
    %c17_401 = arith.constant 17 : index
    %867 = memref.load %arg1[%c17_401] : memref<98xf32, #tpu.memory_space<smem>>
    %c0_402 = arith.constant 0 : index
    %c35_403 = arith.constant 35 : index
    %868 = vector.load %arg4[%c0_402, %c35_403] : memref<2x358xf32, #tpu.memory_space<vmem>>, vector<1x256xf32>
    %869 = vector.broadcast %867 : f32 to vector<1x256xf32>
    %870 = arith.mulf %869, %868 : vector<1x256xf32>
    %871 = arith.addf %866, %870 : vector<1x256xf32>
    %c24_404 = arith.constant 24 : index
    %872 = memref.load %arg1[%c24_404] : memref<98xf32, #tpu.memory_space<smem>>
    %c0_405 = arith.constant 0 : index
    %c51_406 = arith.constant 51 : index
    %873 = vector.load %arg4[%c0_405, %c51_406] : memref<2x358xf32, #tpu.memory_space<vmem>>, vector<1x256xf32>
    %874 = vector.broadcast %872 : f32 to vector<1x256xf32>
    %875 = arith.mulf %874, %873 : vector<1x256xf32>
    %876 = arith.addf %871, %875 : vector<1x256xf32>
    %c31_407 = arith.constant 31 : index
    %877 = memref.load %arg1[%c31_407] : memref<98xf32, #tpu.memory_space<smem>>
    %c0_408 = arith.constant 0 : index
    %c67_409 = arith.constant 67 : index
    %878 = vector.load %arg4[%c0_408, %c67_409] : memref<2x358xf32, #tpu.memory_space<vmem>>, vector<1x256xf32>
    %879 = vector.broadcast %877 : f32 to vector<1x256xf32>
    %880 = arith.mulf %879, %878 : vector<1x256xf32>
    %881 = arith.addf %876, %880 : vector<1x256xf32>
    %c38_410 = arith.constant 38 : index
    %882 = memref.load %arg1[%c38_410] : memref<98xf32, #tpu.memory_space<smem>>
    %c0_411 = arith.constant 0 : index
    %c83_412 = arith.constant 83 : index
    %883 = vector.load %arg4[%c0_411, %c83_412] : memref<2x358xf32, #tpu.memory_space<vmem>>, vector<1x256xf32>
    %884 = vector.broadcast %882 : f32 to vector<1x256xf32>
    %885 = arith.mulf %884, %883 : vector<1x256xf32>
    %886 = arith.addf %881, %885 : vector<1x256xf32>
    %c45_413 = arith.constant 45 : index
    %887 = memref.load %arg1[%c45_413] : memref<98xf32, #tpu.memory_space<smem>>
    %c0_414 = arith.constant 0 : index
    %c99_415 = arith.constant 99 : index
    %888 = vector.load %arg4[%c0_414, %c99_415] : memref<2x358xf32, #tpu.memory_space<vmem>>, vector<1x256xf32>
    %889 = vector.broadcast %887 : f32 to vector<1x256xf32>
    %890 = arith.mulf %889, %888 : vector<1x256xf32>
    %891 = arith.addf %886, %890 : vector<1x256xf32>
    %c52_416 = arith.constant 52 : index
    %892 = memref.load %arg1[%c52_416] : memref<98xf32, #tpu.memory_space<smem>>
    %c1_417 = arith.constant 1 : index
    %c3_418 = arith.constant 3 : index
    %893 = vector.load %arg4[%c1_417, %c3_418] : memref<2x358xf32, #tpu.memory_space<vmem>>, vector<1x256xf32>
    %894 = vector.broadcast %892 : f32 to vector<1x256xf32>
    %895 = arith.mulf %894, %893 : vector<1x256xf32>
    %896 = arith.addf %891, %895 : vector<1x256xf32>
    %c59_419 = arith.constant 59 : index
    %897 = memref.load %arg1[%c59_419] : memref<98xf32, #tpu.memory_space<smem>>
    %c1_420 = arith.constant 1 : index
    %c19_421 = arith.constant 19 : index
    %898 = vector.load %arg4[%c1_420, %c19_421] : memref<2x358xf32, #tpu.memory_space<vmem>>, vector<1x256xf32>
    %899 = vector.broadcast %897 : f32 to vector<1x256xf32>
    %900 = arith.mulf %899, %898 : vector<1x256xf32>
    %901 = arith.addf %896, %900 : vector<1x256xf32>
    %c66_422 = arith.constant 66 : index
    %902 = memref.load %arg1[%c66_422] : memref<98xf32, #tpu.memory_space<smem>>
    %c1_423 = arith.constant 1 : index
    %c35_424 = arith.constant 35 : index
    %903 = vector.load %arg4[%c1_423, %c35_424] : memref<2x358xf32, #tpu.memory_space<vmem>>, vector<1x256xf32>
    %904 = vector.broadcast %902 : f32 to vector<1x256xf32>
    %905 = arith.mulf %904, %903 : vector<1x256xf32>
    %906 = arith.addf %901, %905 : vector<1x256xf32>
    %c73_425 = arith.constant 73 : index
    %907 = memref.load %arg1[%c73_425] : memref<98xf32, #tpu.memory_space<smem>>
    %c1_426 = arith.constant 1 : index
    %c51_427 = arith.constant 51 : index
    %908 = vector.load %arg4[%c1_426, %c51_427] : memref<2x358xf32, #tpu.memory_space<vmem>>, vector<1x256xf32>
    %909 = vector.broadcast %907 : f32 to vector<1x256xf32>
    %910 = arith.mulf %909, %908 : vector<1x256xf32>
    %911 = arith.addf %906, %910 : vector<1x256xf32>
    %c80_428 = arith.constant 80 : index
    %912 = memref.load %arg1[%c80_428] : memref<98xf32, #tpu.memory_space<smem>>
    %c1_429 = arith.constant 1 : index
    %c67_430 = arith.constant 67 : index
    %913 = vector.load %arg4[%c1_429, %c67_430] : memref<2x358xf32, #tpu.memory_space<vmem>>, vector<1x256xf32>
    %914 = vector.broadcast %912 : f32 to vector<1x256xf32>
    %915 = arith.mulf %914, %913 : vector<1x256xf32>
    %916 = arith.addf %911, %915 : vector<1x256xf32>
    %c87_431 = arith.constant 87 : index
    %917 = memref.load %arg1[%c87_431] : memref<98xf32, #tpu.memory_space<smem>>
    %c1_432 = arith.constant 1 : index
    %c83_433 = arith.constant 83 : index
    %918 = vector.load %arg4[%c1_432, %c83_433] : memref<2x358xf32, #tpu.memory_space<vmem>>, vector<1x256xf32>
    %919 = vector.broadcast %917 : f32 to vector<1x256xf32>
    %920 = arith.mulf %919, %918 : vector<1x256xf32>
    %921 = arith.addf %916, %920 : vector<1x256xf32>
    %c94_434 = arith.constant 94 : index
    %922 = memref.load %arg1[%c94_434] : memref<98xf32, #tpu.memory_space<smem>>
    %c1_435 = arith.constant 1 : index
    %c99_436 = arith.constant 99 : index
    %923 = vector.load %arg4[%c1_435, %c99_436] : memref<2x358xf32, #tpu.memory_space<vmem>>, vector<1x256xf32>
    %924 = vector.broadcast %922 : f32 to vector<1x256xf32>
    %925 = arith.mulf %924, %923 : vector<1x256xf32>
    %926 = arith.addf %921, %925 : vector<1x256xf32>
    %cst_437 = arith.constant 0.000000e+00 : f32
    %927 = vector.broadcast %cst_437 : f32 to vector<1x256xf32>
    %928 = arith.select %54, %926, %927 : vector<1x256xi1>, vector<1x256xf32>
    %929 = arith.addf %855, %928 : vector<1x256xf32>
    %cst_438 = arith.constant 0.000000e+00 : f32
    %930 = vector.broadcast %cst_438 : f32 to vector<1x256xf32>
    %c4_439 = arith.constant 4 : index
    %931 = memref.load %arg1[%c4_439] : memref<98xf32, #tpu.memory_space<smem>>
    %c0_440 = arith.constant 0 : index
    %c4_441 = arith.constant 4 : index
    %932 = vector.load %arg4[%c0_440, %c4_441] : memref<2x358xf32, #tpu.memory_space<vmem>>, vector<1x256xf32>
    %933 = vector.broadcast %931 : f32 to vector<1x256xf32>
    %934 = arith.mulf %933, %932 : vector<1x256xf32>
    %935 = arith.addf %930, %934 : vector<1x256xf32>
    %c11_442 = arith.constant 11 : index
    %936 = memref.load %arg1[%c11_442] : memref<98xf32, #tpu.memory_space<smem>>
    %c0_443 = arith.constant 0 : index
    %c20_444 = arith.constant 20 : index
    %937 = vector.load %arg4[%c0_443, %c20_444] : memref<2x358xf32, #tpu.memory_space<vmem>>, vector<1x256xf32>
    %938 = vector.broadcast %936 : f32 to vector<1x256xf32>
    %939 = arith.mulf %938, %937 : vector<1x256xf32>
    %940 = arith.addf %935, %939 : vector<1x256xf32>
    %c18_445 = arith.constant 18 : index
    %941 = memref.load %arg1[%c18_445] : memref<98xf32, #tpu.memory_space<smem>>
    %c0_446 = arith.constant 0 : index
    %c36_447 = arith.constant 36 : index
    %942 = vector.load %arg4[%c0_446, %c36_447] : memref<2x358xf32, #tpu.memory_space<vmem>>, vector<1x256xf32>
    %943 = vector.broadcast %941 : f32 to vector<1x256xf32>
    %944 = arith.mulf %943, %942 : vector<1x256xf32>
    %945 = arith.addf %940, %944 : vector<1x256xf32>
    %c25_448 = arith.constant 25 : index
    %946 = memref.load %arg1[%c25_448] : memref<98xf32, #tpu.memory_space<smem>>
    %c0_449 = arith.constant 0 : index
    %c52_450 = arith.constant 52 : index
    %947 = vector.load %arg4[%c0_449, %c52_450] : memref<2x358xf32, #tpu.memory_space<vmem>>, vector<1x256xf32>
    %948 = vector.broadcast %946 : f32 to vector<1x256xf32>
    %949 = arith.mulf %948, %947 : vector<1x256xf32>
    %950 = arith.addf %945, %949 : vector<1x256xf32>
    %c32_451 = arith.constant 32 : index
    %951 = memref.load %arg1[%c32_451] : memref<98xf32, #tpu.memory_space<smem>>
    %c0_452 = arith.constant 0 : index
    %c68_453 = arith.constant 68 : index
    %952 = vector.load %arg4[%c0_452, %c68_453] : memref<2x358xf32, #tpu.memory_space<vmem>>, vector<1x256xf32>
    %953 = vector.broadcast %951 : f32 to vector<1x256xf32>
    %954 = arith.mulf %953, %952 : vector<1x256xf32>
    %955 = arith.addf %950, %954 : vector<1x256xf32>
    %c39_454 = arith.constant 39 : index
    %956 = memref.load %arg1[%c39_454] : memref<98xf32, #tpu.memory_space<smem>>
    %c0_455 = arith.constant 0 : index
    %c84_456 = arith.constant 84 : index
    %957 = vector.load %arg4[%c0_455, %c84_456] : memref<2x358xf32, #tpu.memory_space<vmem>>, vector<1x256xf32>
    %958 = vector.broadcast %956 : f32 to vector<1x256xf32>
    %959 = arith.mulf %958, %957 : vector<1x256xf32>
    %960 = arith.addf %955, %959 : vector<1x256xf32>
    %c46_457 = arith.constant 46 : index
    %961 = memref.load %arg1[%c46_457] : memref<98xf32, #tpu.memory_space<smem>>
    %c0_458 = arith.constant 0 : index
    %c100_459 = arith.constant 100 : index
    %962 = vector.load %arg4[%c0_458, %c100_459] : memref<2x358xf32, #tpu.memory_space<vmem>>, vector<1x256xf32>
    %963 = vector.broadcast %961 : f32 to vector<1x256xf32>
    %964 = arith.mulf %963, %962 : vector<1x256xf32>
    %965 = arith.addf %960, %964 : vector<1x256xf32>
    %c53_460 = arith.constant 53 : index
    %966 = memref.load %arg1[%c53_460] : memref<98xf32, #tpu.memory_space<smem>>
    %c1_461 = arith.constant 1 : index
    %c4_462 = arith.constant 4 : index
    %967 = vector.load %arg4[%c1_461, %c4_462] : memref<2x358xf32, #tpu.memory_space<vmem>>, vector<1x256xf32>
    %968 = vector.broadcast %966 : f32 to vector<1x256xf32>
    %969 = arith.mulf %968, %967 : vector<1x256xf32>
    %970 = arith.addf %965, %969 : vector<1x256xf32>
    %c60_463 = arith.constant 60 : index
    %971 = memref.load %arg1[%c60_463] : memref<98xf32, #tpu.memory_space<smem>>
    %c1_464 = arith.constant 1 : index
    %c20_465 = arith.constant 20 : index
    %972 = vector.load %arg4[%c1_464, %c20_465] : memref<2x358xf32, #tpu.memory_space<vmem>>, vector<1x256xf32>
    %973 = vector.broadcast %971 : f32 to vector<1x256xf32>
    %974 = arith.mulf %973, %972 : vector<1x256xf32>
    %975 = arith.addf %970, %974 : vector<1x256xf32>
    %c67_466 = arith.constant 67 : index
    %976 = memref.load %arg1[%c67_466] : memref<98xf32, #tpu.memory_space<smem>>
    %c1_467 = arith.constant 1 : index
    %c36_468 = arith.constant 36 : index
    %977 = vector.load %arg4[%c1_467, %c36_468] : memref<2x358xf32, #tpu.memory_space<vmem>>, vector<1x256xf32>
    %978 = vector.broadcast %976 : f32 to vector<1x256xf32>
    %979 = arith.mulf %978, %977 : vector<1x256xf32>
    %980 = arith.addf %975, %979 : vector<1x256xf32>
    %c74_469 = arith.constant 74 : index
    %981 = memref.load %arg1[%c74_469] : memref<98xf32, #tpu.memory_space<smem>>
    %c1_470 = arith.constant 1 : index
    %c52_471 = arith.constant 52 : index
    %982 = vector.load %arg4[%c1_470, %c52_471] : memref<2x358xf32, #tpu.memory_space<vmem>>, vector<1x256xf32>
    %983 = vector.broadcast %981 : f32 to vector<1x256xf32>
    %984 = arith.mulf %983, %982 : vector<1x256xf32>
    %985 = arith.addf %980, %984 : vector<1x256xf32>
    %c81_472 = arith.constant 81 : index
    %986 = memref.load %arg1[%c81_472] : memref<98xf32, #tpu.memory_space<smem>>
    %c1_473 = arith.constant 1 : index
    %c68_474 = arith.constant 68 : index
    %987 = vector.load %arg4[%c1_473, %c68_474] : memref<2x358xf32, #tpu.memory_space<vmem>>, vector<1x256xf32>
    %988 = vector.broadcast %986 : f32 to vector<1x256xf32>
    %989 = arith.mulf %988, %987 : vector<1x256xf32>
    %990 = arith.addf %985, %989 : vector<1x256xf32>
    %c88_475 = arith.constant 88 : index
    %991 = memref.load %arg1[%c88_475] : memref<98xf32, #tpu.memory_space<smem>>
    %c1_476 = arith.constant 1 : index
    %c84_477 = arith.constant 84 : index
    %992 = vector.load %arg4[%c1_476, %c84_477] : memref<2x358xf32, #tpu.memory_space<vmem>>, vector<1x256xf32>
    %993 = vector.broadcast %991 : f32 to vector<1x256xf32>
    %994 = arith.mulf %993, %992 : vector<1x256xf32>
    %995 = arith.addf %990, %994 : vector<1x256xf32>
    %c95_478 = arith.constant 95 : index
    %996 = memref.load %arg1[%c95_478] : memref<98xf32, #tpu.memory_space<smem>>
    %c1_479 = arith.constant 1 : index
    %c100_480 = arith.constant 100 : index
    %997 = vector.load %arg4[%c1_479, %c100_480] : memref<2x358xf32, #tpu.memory_space<vmem>>, vector<1x256xf32>
    %998 = vector.broadcast %996 : f32 to vector<1x256xf32>
    %999 = arith.mulf %998, %997 : vector<1x256xf32>
    %1000 = arith.addf %995, %999 : vector<1x256xf32>
    %cst_481 = arith.constant 0.000000e+00 : f32
    %1001 = vector.broadcast %cst_481 : f32 to vector<1x256xf32>
    %1002 = arith.select %63, %1000, %1001 : vector<1x256xi1>, vector<1x256xf32>
    %1003 = arith.addf %929, %1002 : vector<1x256xf32>
    %cst_482 = arith.constant 0.000000e+00 : f32
    %1004 = vector.broadcast %cst_482 : f32 to vector<1x256xf32>
    %c5_483 = arith.constant 5 : index
    %1005 = memref.load %arg1[%c5_483] : memref<98xf32, #tpu.memory_space<smem>>
    %c0_484 = arith.constant 0 : index
    %c5_485 = arith.constant 5 : index
    %1006 = vector.load %arg4[%c0_484, %c5_485] : memref<2x358xf32, #tpu.memory_space<vmem>>, vector<1x256xf32>
    %1007 = vector.broadcast %1005 : f32 to vector<1x256xf32>
    %1008 = arith.mulf %1007, %1006 : vector<1x256xf32>
    %1009 = arith.addf %1004, %1008 : vector<1x256xf32>
    %c12_486 = arith.constant 12 : index
    %1010 = memref.load %arg1[%c12_486] : memref<98xf32, #tpu.memory_space<smem>>
    %c0_487 = arith.constant 0 : index
    %c21_488 = arith.constant 21 : index
    %1011 = vector.load %arg4[%c0_487, %c21_488] : memref<2x358xf32, #tpu.memory_space<vmem>>, vector<1x256xf32>
    %1012 = vector.broadcast %1010 : f32 to vector<1x256xf32>
    %1013 = arith.mulf %1012, %1011 : vector<1x256xf32>
    %1014 = arith.addf %1009, %1013 : vector<1x256xf32>
    %c19_489 = arith.constant 19 : index
    %1015 = memref.load %arg1[%c19_489] : memref<98xf32, #tpu.memory_space<smem>>
    %c0_490 = arith.constant 0 : index
    %c37_491 = arith.constant 37 : index
    %1016 = vector.load %arg4[%c0_490, %c37_491] : memref<2x358xf32, #tpu.memory_space<vmem>>, vector<1x256xf32>
    %1017 = vector.broadcast %1015 : f32 to vector<1x256xf32>
    %1018 = arith.mulf %1017, %1016 : vector<1x256xf32>
    %1019 = arith.addf %1014, %1018 : vector<1x256xf32>
    %c26_492 = arith.constant 26 : index
    %1020 = memref.load %arg1[%c26_492] : memref<98xf32, #tpu.memory_space<smem>>
    %c0_493 = arith.constant 0 : index
    %c53_494 = arith.constant 53 : index
    %1021 = vector.load %arg4[%c0_493, %c53_494] : memref<2x358xf32, #tpu.memory_space<vmem>>, vector<1x256xf32>
    %1022 = vector.broadcast %1020 : f32 to vector<1x256xf32>
    %1023 = arith.mulf %1022, %1021 : vector<1x256xf32>
    %1024 = arith.addf %1019, %1023 : vector<1x256xf32>
    %c33_495 = arith.constant 33 : index
    %1025 = memref.load %arg1[%c33_495] : memref<98xf32, #tpu.memory_space<smem>>
    %c0_496 = arith.constant 0 : index
    %c69_497 = arith.constant 69 : index
    %1026 = vector.load %arg4[%c0_496, %c69_497] : memref<2x358xf32, #tpu.memory_space<vmem>>, vector<1x256xf32>
    %1027 = vector.broadcast %1025 : f32 to vector<1x256xf32>
    %1028 = arith.mulf %1027, %1026 : vector<1x256xf32>
    %1029 = arith.addf %1024, %1028 : vector<1x256xf32>
    %c40_498 = arith.constant 40 : index
    %1030 = memref.load %arg1[%c40_498] : memref<98xf32, #tpu.memory_space<smem>>
    %c0_499 = arith.constant 0 : index
    %c85_500 = arith.constant 85 : index
    %1031 = vector.load %arg4[%c0_499, %c85_500] : memref<2x358xf32, #tpu.memory_space<vmem>>, vector<1x256xf32>
    %1032 = vector.broadcast %1030 : f32 to vector<1x256xf32>
    %1033 = arith.mulf %1032, %1031 : vector<1x256xf32>
    %1034 = arith.addf %1029, %1033 : vector<1x256xf32>
    %c47_501 = arith.constant 47 : index
    %1035 = memref.load %arg1[%c47_501] : memref<98xf32, #tpu.memory_space<smem>>
    %c0_502 = arith.constant 0 : index
    %c101_503 = arith.constant 101 : index
    %1036 = vector.load %arg4[%c0_502, %c101_503] : memref<2x358xf32, #tpu.memory_space<vmem>>, vector<1x256xf32>
    %1037 = vector.broadcast %1035 : f32 to vector<1x256xf32>
    %1038 = arith.mulf %1037, %1036 : vector<1x256xf32>
    %1039 = arith.addf %1034, %1038 : vector<1x256xf32>
    %c54_504 = arith.constant 54 : index
    %1040 = memref.load %arg1[%c54_504] : memref<98xf32, #tpu.memory_space<smem>>
    %c1_505 = arith.constant 1 : index
    %c5_506 = arith.constant 5 : index
    %1041 = vector.load %arg4[%c1_505, %c5_506] : memref<2x358xf32, #tpu.memory_space<vmem>>, vector<1x256xf32>
    %1042 = vector.broadcast %1040 : f32 to vector<1x256xf32>
    %1043 = arith.mulf %1042, %1041 : vector<1x256xf32>
    %1044 = arith.addf %1039, %1043 : vector<1x256xf32>
    %c61_507 = arith.constant 61 : index
    %1045 = memref.load %arg1[%c61_507] : memref<98xf32, #tpu.memory_space<smem>>
    %c1_508 = arith.constant 1 : index
    %c21_509 = arith.constant 21 : index
    %1046 = vector.load %arg4[%c1_508, %c21_509] : memref<2x358xf32, #tpu.memory_space<vmem>>, vector<1x256xf32>
    %1047 = vector.broadcast %1045 : f32 to vector<1x256xf32>
    %1048 = arith.mulf %1047, %1046 : vector<1x256xf32>
    %1049 = arith.addf %1044, %1048 : vector<1x256xf32>
    %c68_510 = arith.constant 68 : index
    %1050 = memref.load %arg1[%c68_510] : memref<98xf32, #tpu.memory_space<smem>>
    %c1_511 = arith.constant 1 : index
    %c37_512 = arith.constant 37 : index
    %1051 = vector.load %arg4[%c1_511, %c37_512] : memref<2x358xf32, #tpu.memory_space<vmem>>, vector<1x256xf32>
    %1052 = vector.broadcast %1050 : f32 to vector<1x256xf32>
    %1053 = arith.mulf %1052, %1051 : vector<1x256xf32>
    %1054 = arith.addf %1049, %1053 : vector<1x256xf32>
    %c75_513 = arith.constant 75 : index
    %1055 = memref.load %arg1[%c75_513] : memref<98xf32, #tpu.memory_space<smem>>
    %c1_514 = arith.constant 1 : index
    %c53_515 = arith.constant 53 : index
    %1056 = vector.load %arg4[%c1_514, %c53_515] : memref<2x358xf32, #tpu.memory_space<vmem>>, vector<1x256xf32>
    %1057 = vector.broadcast %1055 : f32 to vector<1x256xf32>
    %1058 = arith.mulf %1057, %1056 : vector<1x256xf32>
    %1059 = arith.addf %1054, %1058 : vector<1x256xf32>
    %c82_516 = arith.constant 82 : index
    %1060 = memref.load %arg1[%c82_516] : memref<98xf32, #tpu.memory_space<smem>>
    %c1_517 = arith.constant 1 : index
    %c69_518 = arith.constant 69 : index
    %1061 = vector.load %arg4[%c1_517, %c69_518] : memref<2x358xf32, #tpu.memory_space<vmem>>, vector<1x256xf32>
    %1062 = vector.broadcast %1060 : f32 to vector<1x256xf32>
    %1063 = arith.mulf %1062, %1061 : vector<1x256xf32>
    %1064 = arith.addf %1059, %1063 : vector<1x256xf32>
    %c89_519 = arith.constant 89 : index
    %1065 = memref.load %arg1[%c89_519] : memref<98xf32, #tpu.memory_space<smem>>
    %c1_520 = arith.constant 1 : index
    %c85_521 = arith.constant 85 : index
    %1066 = vector.load %arg4[%c1_520, %c85_521] : memref<2x358xf32, #tpu.memory_space<vmem>>, vector<1x256xf32>
    %1067 = vector.broadcast %1065 : f32 to vector<1x256xf32>
    %1068 = arith.mulf %1067, %1066 : vector<1x256xf32>
    %1069 = arith.addf %1064, %1068 : vector<1x256xf32>
    %c96_522 = arith.constant 96 : index
    %1070 = memref.load %arg1[%c96_522] : memref<98xf32, #tpu.memory_space<smem>>
    %c1_523 = arith.constant 1 : index
    %c101_524 = arith.constant 101 : index
    %1071 = vector.load %arg4[%c1_523, %c101_524] : memref<2x358xf32, #tpu.memory_space<vmem>>, vector<1x256xf32>
    %1072 = vector.broadcast %1070 : f32 to vector<1x256xf32>
    %1073 = arith.mulf %1072, %1071 : vector<1x256xf32>
    %1074 = arith.addf %1069, %1073 : vector<1x256xf32>
    %cst_525 = arith.constant 0.000000e+00 : f32
    %1075 = vector.broadcast %cst_525 : f32 to vector<1x256xf32>
    %1076 = arith.select %72, %1074, %1075 : vector<1x256xi1>, vector<1x256xf32>
    %1077 = arith.addf %1003, %1076 : vector<1x256xf32>
    %cst_526 = arith.constant 0.000000e+00 : f32
    %1078 = vector.broadcast %cst_526 : f32 to vector<1x256xf32>
    %c6_527 = arith.constant 6 : index
    %1079 = memref.load %arg1[%c6_527] : memref<98xf32, #tpu.memory_space<smem>>
    %c0_528 = arith.constant 0 : index
    %c6_529 = arith.constant 6 : index
    %1080 = vector.load %arg4[%c0_528, %c6_529] : memref<2x358xf32, #tpu.memory_space<vmem>>, vector<1x256xf32>
    %1081 = vector.broadcast %1079 : f32 to vector<1x256xf32>
    %1082 = arith.mulf %1081, %1080 : vector<1x256xf32>
    %1083 = arith.addf %1078, %1082 : vector<1x256xf32>
    %c13_530 = arith.constant 13 : index
    %1084 = memref.load %arg1[%c13_530] : memref<98xf32, #tpu.memory_space<smem>>
    %c0_531 = arith.constant 0 : index
    %c22_532 = arith.constant 22 : index
    %1085 = vector.load %arg4[%c0_531, %c22_532] : memref<2x358xf32, #tpu.memory_space<vmem>>, vector<1x256xf32>
    %1086 = vector.broadcast %1084 : f32 to vector<1x256xf32>
    %1087 = arith.mulf %1086, %1085 : vector<1x256xf32>
    %1088 = arith.addf %1083, %1087 : vector<1x256xf32>
    %c20_533 = arith.constant 20 : index
    %1089 = memref.load %arg1[%c20_533] : memref<98xf32, #tpu.memory_space<smem>>
    %c0_534 = arith.constant 0 : index
    %c38_535 = arith.constant 38 : index
    %1090 = vector.load %arg4[%c0_534, %c38_535] : memref<2x358xf32, #tpu.memory_space<vmem>>, vector<1x256xf32>
    %1091 = vector.broadcast %1089 : f32 to vector<1x256xf32>
    %1092 = arith.mulf %1091, %1090 : vector<1x256xf32>
    %1093 = arith.addf %1088, %1092 : vector<1x256xf32>
    %c27_536 = arith.constant 27 : index
    %1094 = memref.load %arg1[%c27_536] : memref<98xf32, #tpu.memory_space<smem>>
    %c0_537 = arith.constant 0 : index
    %c54_538 = arith.constant 54 : index
    %1095 = vector.load %arg4[%c0_537, %c54_538] : memref<2x358xf32, #tpu.memory_space<vmem>>, vector<1x256xf32>
    %1096 = vector.broadcast %1094 : f32 to vector<1x256xf32>
    %1097 = arith.mulf %1096, %1095 : vector<1x256xf32>
    %1098 = arith.addf %1093, %1097 : vector<1x256xf32>
    %c34_539 = arith.constant 34 : index
    %1099 = memref.load %arg1[%c34_539] : memref<98xf32, #tpu.memory_space<smem>>
    %c0_540 = arith.constant 0 : index
    %c70_541 = arith.constant 70 : index
    %1100 = vector.load %arg4[%c0_540, %c70_541] : memref<2x358xf32, #tpu.memory_space<vmem>>, vector<1x256xf32>
    %1101 = vector.broadcast %1099 : f32 to vector<1x256xf32>
    %1102 = arith.mulf %1101, %1100 : vector<1x256xf32>
    %1103 = arith.addf %1098, %1102 : vector<1x256xf32>
    %c41_542 = arith.constant 41 : index
    %1104 = memref.load %arg1[%c41_542] : memref<98xf32, #tpu.memory_space<smem>>
    %c0_543 = arith.constant 0 : index
    %c86_544 = arith.constant 86 : index
    %1105 = vector.load %arg4[%c0_543, %c86_544] : memref<2x358xf32, #tpu.memory_space<vmem>>, vector<1x256xf32>
    %1106 = vector.broadcast %1104 : f32 to vector<1x256xf32>
    %1107 = arith.mulf %1106, %1105 : vector<1x256xf32>
    %1108 = arith.addf %1103, %1107 : vector<1x256xf32>
    %c48_545 = arith.constant 48 : index
    %1109 = memref.load %arg1[%c48_545] : memref<98xf32, #tpu.memory_space<smem>>
    %c0_546 = arith.constant 0 : index
    %c102_547 = arith.constant 102 : index
    %1110 = vector.load %arg4[%c0_546, %c102_547] : memref<2x358xf32, #tpu.memory_space<vmem>>, vector<1x256xf32>
    %1111 = vector.broadcast %1109 : f32 to vector<1x256xf32>
    %1112 = arith.mulf %1111, %1110 : vector<1x256xf32>
    %1113 = arith.addf %1108, %1112 : vector<1x256xf32>
    %c55_548 = arith.constant 55 : index
    %1114 = memref.load %arg1[%c55_548] : memref<98xf32, #tpu.memory_space<smem>>
    %c1_549 = arith.constant 1 : index
    %c6_550 = arith.constant 6 : index
    %1115 = vector.load %arg4[%c1_549, %c6_550] : memref<2x358xf32, #tpu.memory_space<vmem>>, vector<1x256xf32>
    %1116 = vector.broadcast %1114 : f32 to vector<1x256xf32>
    %1117 = arith.mulf %1116, %1115 : vector<1x256xf32>
    %1118 = arith.addf %1113, %1117 : vector<1x256xf32>
    %c62_551 = arith.constant 62 : index
    %1119 = memref.load %arg1[%c62_551] : memref<98xf32, #tpu.memory_space<smem>>
    %c1_552 = arith.constant 1 : index
    %c22_553 = arith.constant 22 : index
    %1120 = vector.load %arg4[%c1_552, %c22_553] : memref<2x358xf32, #tpu.memory_space<vmem>>, vector<1x256xf32>
    %1121 = vector.broadcast %1119 : f32 to vector<1x256xf32>
    %1122 = arith.mulf %1121, %1120 : vector<1x256xf32>
    %1123 = arith.addf %1118, %1122 : vector<1x256xf32>
    %c69_554 = arith.constant 69 : index
    %1124 = memref.load %arg1[%c69_554] : memref<98xf32, #tpu.memory_space<smem>>
    %c1_555 = arith.constant 1 : index
    %c38_556 = arith.constant 38 : index
    %1125 = vector.load %arg4[%c1_555, %c38_556] : memref<2x358xf32, #tpu.memory_space<vmem>>, vector<1x256xf32>
    %1126 = vector.broadcast %1124 : f32 to vector<1x256xf32>
    %1127 = arith.mulf %1126, %1125 : vector<1x256xf32>
    %1128 = arith.addf %1123, %1127 : vector<1x256xf32>
    %c76_557 = arith.constant 76 : index
    %1129 = memref.load %arg1[%c76_557] : memref<98xf32, #tpu.memory_space<smem>>
    %c1_558 = arith.constant 1 : index
    %c54_559 = arith.constant 54 : index
    %1130 = vector.load %arg4[%c1_558, %c54_559] : memref<2x358xf32, #tpu.memory_space<vmem>>, vector<1x256xf32>
    %1131 = vector.broadcast %1129 : f32 to vector<1x256xf32>
    %1132 = arith.mulf %1131, %1130 : vector<1x256xf32>
    %1133 = arith.addf %1128, %1132 : vector<1x256xf32>
    %c83_560 = arith.constant 83 : index
    %1134 = memref.load %arg1[%c83_560] : memref<98xf32, #tpu.memory_space<smem>>
    %c1_561 = arith.constant 1 : index
    %c70_562 = arith.constant 70 : index
    %1135 = vector.load %arg4[%c1_561, %c70_562] : memref<2x358xf32, #tpu.memory_space<vmem>>, vector<1x256xf32>
    %1136 = vector.broadcast %1134 : f32 to vector<1x256xf32>
    %1137 = arith.mulf %1136, %1135 : vector<1x256xf32>
    %1138 = arith.addf %1133, %1137 : vector<1x256xf32>
    %c90_563 = arith.constant 90 : index
    %1139 = memref.load %arg1[%c90_563] : memref<98xf32, #tpu.memory_space<smem>>
    %c1_564 = arith.constant 1 : index
    %c86_565 = arith.constant 86 : index
    %1140 = vector.load %arg4[%c1_564, %c86_565] : memref<2x358xf32, #tpu.memory_space<vmem>>, vector<1x256xf32>
    %1141 = vector.broadcast %1139 : f32 to vector<1x256xf32>
    %1142 = arith.mulf %1141, %1140 : vector<1x256xf32>
    %1143 = arith.addf %1138, %1142 : vector<1x256xf32>
    %c97_566 = arith.constant 97 : index
    %1144 = memref.load %arg1[%c97_566] : memref<98xf32, #tpu.memory_space<smem>>
    %c1_567 = arith.constant 1 : index
    %c102_568 = arith.constant 102 : index
    %1145 = vector.load %arg4[%c1_567, %c102_568] : memref<2x358xf32, #tpu.memory_space<vmem>>, vector<1x256xf32>
    %1146 = vector.broadcast %1144 : f32 to vector<1x256xf32>
    %1147 = arith.mulf %1146, %1145 : vector<1x256xf32>
    %1148 = arith.addf %1143, %1147 : vector<1x256xf32>
    %cst_569 = arith.constant 0.000000e+00 : f32
    %1149 = vector.broadcast %cst_569 : f32 to vector<1x256xf32>
    %1150 = arith.select %81, %1148, %1149 : vector<1x256xi1>, vector<1x256xf32>
    %1151 = arith.addf %1077, %1150 : vector<1x256xf32>
    %1152 = arith.negf %1151 : vector<1x256xf32>
    %1153 = math.exp %1152 : vector<1x256xf32>
    %cst_570 = arith.constant 1.000000e+00 : f32
    %1154 = vector.broadcast %cst_570 : f32 to vector<1x256xf32>
    %1155 = arith.addf %1154, %1153 : vector<1x256xf32>
    %1156 = arith.divf %1154, %1155 : vector<1x256xf32>
    %c1_571 = arith.constant 1 : index
    %c0_572 = arith.constant 0 : index
    %c0_573 = arith.constant 0 : index
    %1157 = vector.load %arg2[%c1_571, %c0_572, %c0_573] : memref<2x4x256xf32, #tpu.memory_space<vmem>>, vector<1x4x256xf32>
    %1158 = vector.shape_cast %1157 : vector<1x4x256xf32> to vector<4x256xf32>
    %1159 = vector.broadcast %1156 : vector<1x256xf32> to vector<4x256xf32>
    %1160 = arith.mulf %1158, %1159 : vector<4x256xf32>
    %c1_574 = arith.constant 1 : index
    %c0_575 = arith.constant 0 : index
    %c0_576 = arith.constant 0 : index
    %1161 = vector.load %arg3[%c1_574, %c0_575, %c0_576] : memref<2x4x256xf32, #tpu.memory_space<vmem>>, vector<1x4x256xf32>
    %1162 = vector.shape_cast %1161 : vector<1x4x256xf32> to vector<4x256xf32>
    %1163 = vector.shape_cast %1160 : vector<4x256xf32> to vector<1x4x256xf32>
    tpu.vector_store %arg3[%c1_574, %c0_575, %c0_576], %1163 {strides = array<i32>} : memref<2x4x256xf32, #tpu.memory_space<vmem>>, vector<1x4x256xf32>,
    return
  }
  func.func @transform_0(%arg0: i32) -> i32 {
    %c0_i32 = arith.constant 0 : i32
    %c0_i32_0 = arith.constant 0 : i32
    return %c0_i32 : i32
  }
  func.func @transform_1(%arg0: i32) -> (i32, i32, i32) {
    %c0_i32 = arith.constant 0 : i32
    %c0_i32_0 = arith.constant 0 : i32
    %c0_i32_1 = arith.constant 0 : i32
    return %arg0, %c0_i32, %c0_i32_0 : i32, i32, i32
  }
  func.func @transform_2(%arg0: i32) -> (i32, i32, i32) {
    %c0_i32 = arith.constant 0 : i32
    %c0_i32_0 = arith.constant 0 : i32
    %c0_i32_1 = arith.constant 0 : i32
    return %arg0, %c0_i32, %c0_i32_0 : i32, i32, i32
  }
}

</mosaic_0001>

<bundles_post_ra>
// kernel: tpu_custom_call.1
= control target key start
LH: loop header
LB: loop body
LE: loop exit
PB: predicated region body
PF: predicated region fallthrough
CT: control target
= control target key end

     0   :  { %7 = vsyncpa [#allocation6], 0  ;;  %s4013_s0 = inlined_call_operand.vmem [shape: f32[98], index: 0, kind: input, shape index: {}]   ;;  %s4014_s1 = inlined_call_operand.hbm [shape: f32[2,4,256], index: 1, kind: input, shape index: {}, may-alias: {1,2}]   ;;  %s4015_s2 = inlined_call_operand.hbm [shape: f32[2,4,256], index: 2, kind: output, shape index: {}, may-alias: {1,2}]  }
   0x1   :  { %8 = vsyncpa [#allocation4], 0 }
   0x2   :  { %9 = vsyncpa [#allocation5], 0  ;;  %s15_s11 = sshll.u32 %s4013_s0, 4  ;;  %s23_s14 = sshll.u32 %s4014_s1, 4  ;;  %s16_s11 = int_to_ptr.vmem [resolvable:$true] %s15_s11  ;;  %s24_s14 = int_to_ptr.hbm [resolvable:$true] %s23_s14 }
   0x3   :  { %s2736_s15 = smov [#allocation3]   ;;  %s2737_s16 = smov [#allocation7]  }
   0x4   :  { %18 = dma.vmem_to_smem %s16_s11, 16, %s2736_s15, [#allocation6]  }
   0x5   :  { %s25_s17 = sshll.u32 %s2737_s16, 4  ;;  %s2738_s18 = smov 128   ;;  %s26_s17 = int_to_ptr.vmem [resolvable:$true] %s25_s17 }
   0x6   :  { %s2739_s19 = smov 8  }
   0x7   :  { %31 = dma.hbm_to_vmem [thread:$0]  %s24_s14, 256, %s26_s17, [#allocation4], %s2738_s18, %s2738_s18, %s2739_s19  }
   0x8   :  { %2730 = dma.done.wait [#allocation6], 16  }
   0x9   :  { %2731 = vsyncadd [#allocation6], 4294967280 }
   0xa   :  { %2732 = dma.done.wait [#allocation4], 256  }
   0xb   :  { %2733 = vsyncadd [#allocation4], 4294967040 }
   0xc   :  { %40 = sfence }
   0xd   :  { %v128_v0 = vld [vmem:[#allocation7] sm:$0xff]  ;;  %v2740_v1 = vmov 4.0   ;;  %vm4047_vm0 = vcmask 1043456   ;;  %v1283_v16 = vld [vmem:[#allocation7 + $0x8] sm:$0xff]  ;;  %vm181_vm2 = vcmask 1040384   ;;  %s2741_s0 = smov 51   ;;  %v4016_v50 = vlaneseq }
   0xe   :  { %130 = vst [vmem:[#allocation1] ss:$2 sm:$0xff] %v128_v0  ;;  %2649 = vrcp.f32 %v2740_v1  ;;  %vm41_vm3 = vcmask 1041408   ;;  %vm42_vm4 = vcmask 1043458   ;;  %vm44_vm5 = vcmask 832516   ;;  %s2435_s1 = sld [smem:[#allocation3 + $0x23]] }
   0xf   :  { %vm43_vm6 = vmor %vm42_vm4, %vm41_vm3  ;;  %v2742_v49 = vmov 0.0   ;;  %vm190_vm8 = vcmp.ge.s32.totalorder %v4016_v50, 51  ;;  %vm191_vm9 = vcmp.lt.s32.totalorder %v4016_v50, 307  ;;  %vm186_vm10 = vcmask 416768   ;;  %s2433_s20 = sld [smem:[#allocation3 + $0x15]]  ;;  %s2743_s25 = smov 48  }
  0x10   :  { %vm45_vm7 = vmor %vm44_vm5, %vm43_vm6  ;;  %s2431_s21 = sld [smem:[#allocation3 + $0x7]]  ;;  %s2744_s26 = smov 80   ;;  %vm218_vm12 = vcmask 916480   ;;  %vm4048_vm13 = vcmask 785408   ;;  %vm240_vm14 = vcmask 654336   ;;  %vm251_vm15 = vcmask 523264  }
  0x11   :  { %46 = vst.msk [vmem:[#allocation2] sm:$0x3f] %vm45_vm7, %v2742_v49  ;;  %vm2798_vm11 = vmand %vm190_vm8, %vm191_vm9  ;;  %s2446_s22 = sld [smem:[#allocation3 + $0xf]]  ;;  %s2745_s27 = smov 112   ;;  %vm490_vm3 = vcmask 1039360   ;;  %vm4051_vm4 = vcmask 1031168  }
  0x12   :  { %s2434_s23 = sld [smem:[#allocation3 + $0x1c]]  ;;  %s2746_s3 = smov 96   ;;  %vm4059_vm8 = vcmask 1014784   ;;  %vm4058_vm9 = vcmask 1022976  }
  0x13   :  { %s2432_s24 = sld [smem:[#allocation3 + $0xe]]  ;;  %s2747_s4 = smov 64  }
  0x14   :  { %v2650_v2 = vpop.eup %2649  ;;  %v256_v55 = vstv %s2435_s1  ;;  %s2449_s28 = sld [smem:[#allocation3 + $0x24]]  ;;  %s2748_s8 = smov 32  }
  0x15   :  { %v131_v3 = vld.sshfl [vmem:[#allocation1] sm:$0xff pattern:$0x75316420]  ;;  %v132_v4 = vld.sshfl [vmem:[#allocation1 + $0x8] sm:$0xff pattern:$0x75316420]  ;;  %vm155_vm1 = vweird.f32 %v2650_v2  ;;  %v234_v56 = vstv %s2433_s20 }
  0x16   :  { %v136_v5 = vsel %vm4047_vm0, %v131_v3, 0.0  ;;  %v143_v6 = vsel %vm4047_vm0, %v132_v4, 0.0  ;;  %v151_v7 = vmul.f32 4.0, %v2650_v2  ;;  %159 = vst [vmem:[#allocation1] ss:$2 sm:$0xff] %v128_v0  ;;  %v212_v57 = vstv %s2431_s21  ;;  %s2445_s29 = sld [smem:[#allocation3 + $0x8]] }
  0x17   :  { %v137_v8 = vrot.slane %v136_v5, 4  ;;  %v144_v9 = vrot.slane %v143_v6, 4  ;;  %v367_v62 = vstv %s2446_s22  ;;  %s2436_s30 = sld [smem:[#allocation3 + $0x2a]] }
  0x18   :  { %v152_v10 = vsub.f32 1.0, %v151_v7  ;;  %v245_v63 = vstv %s2434_s23  ;;  %s2460_s5 = sld [smem:[#allocation3 + $0x10]] }
  0x19   :  { %v138_v11 = vadd.f32 %v137_v8, %v136_v5  ;;  %v145_v12 = vadd.f32 %v144_v9, %v143_v6  ;;  %v223_v0 = vstv %s2432_s24  ;;  %s2448_s6 = sld [smem:[#allocation3 + $0x1d]] }
  0x1a   :  { %v153_v13 = vmul.f32 %v2650_v2, %v152_v10  ;;  %v397_v4 = vstv %s2449_s28  ;;  %s2447_s7 = sld [smem:[#allocation3 + $0x16]] }
  0x1b   :  { %v139_v14 = vrot.slane %v138_v11, 2  ;;  %v146_v15 = vrot.slane %v145_v12, 2  ;;  %s2463_s9 = sld [smem:[#allocation3 + $0x25]] }
  0x1c   :  { %v154_v17 = vadd.f32 %v2650_v2, %v153_v13  ;;  %v357_v5 = vstv %s2445_s29  ;;  %s2459_s10 = sld [smem:[#allocation3 + $0x9]] }
  0x1d   :  { %v140_v18 = vadd.f32 %v139_v14, %v138_v11  ;;  %v147_v19 = vadd.f32 %v146_v15, %v145_v12  ;;  %v160_v20 = vld.sshfl [vmem:[#allocation1] sm:$0xff pattern:$0x75316420]  ;;  %v161_v21 = vld.sshfl [vmem:[#allocation1 + $0x8] sm:$0xff pattern:$0x75316420]  ;;  %v267_v6 = vstv %s2436_s30 }
  0x1e   :  { %v164_v22 = vsel %vm4047_vm0, %v160_v20, -inf  ;;  %v171_v23 = vsel %vm4047_vm0, %v161_v21, -inf  ;;  %1285 = vst [vmem:[#allocation1] ss:$2 sm:$0xff] %v1283_v16  ;;  %v2784_v28 = vsel %vm155_vm1, %v2650_v2, %v154_v17  ;;  %v514_v12 = vstv %s2460_s5  ;;  %s2450_s11 = sld [smem:[#allocation3 + $0x2b]] }
  0x1f   :  { %v141_v24 = vrot.slane %v140_v18, 1  ;;  %v148_v25 = vrot.slane %v147_v19, 1  ;;  %v165_v26 = vrot.slane %v164_v22, 4  ;;  %v172_v27 = vrot.slane %v171_v23, 4  ;;  %s2474_s12 = sld [smem:[#allocation3 + $0x11]] }
  0x20   :  { %v387_v13 = vstv %s2448_s6  ;;  %v377_v14 = vstv %s2447_s7  ;;  %s2462_s13 = sld [smem:[#allocation3 + $0x1e]]  ;;  %vm262_vm1 = vcmask 392192  }
  0x21   :  { %v142_v29 = vadd.f32 %v141_v24, %v140_v18  ;;  %v149_v30 = vadd.f32 %v148_v25, %v147_v19  ;;  %v166_v31 = vmax.f32 %v164_v22, %v165_v26  ;;  %v173_v32 = vmax.f32 %v171_v23, %v172_v27  ;;  %s2461_s14 = sld [smem:[#allocation3 + $0x17]] }
  0x22   :  { %v544_v19 = vstv %s2463_s9  ;;  %v504_v20 = vstv %s2459_s10  ;;  %s2477_s15 = sld [smem:[#allocation3 + $0x26]] }
  0x23   :  { %v157_v33 = vmul.f32 %v2784_v28, %v142_v29  ;;  %v158_v34 = vmul.f32 %v2784_v28, %v149_v30  ;;  %v167_v35 = vrot.slane %v166_v31, 2  ;;  %v174_v36 = vrot.slane %v173_v32, 2  ;;  %s2473_s16 = sld [smem:[#allocation3 + $0xa]] }
  0x24   :  { %v407_v21 = vstv %s2450_s11  ;;  %s2464_s17 = sld [smem:[#allocation3 + $0x2c]] }
  0x25   :  { %v180_v37 = vrot.slane %v158_v34, 7  ;;  %v168_v38 = vmax.f32 %v166_v31, %v167_v35  ;;  %v175_v39 = vmax.f32 %v173_v32, %v174_v36  ;;  %v2788_v40 = vld.sshfl [vmem:[#allocation1] sm:$0xff pattern:$0x75316420]  ;;  %v661_v25 = vstv %s2474_s12  ;;  %s2488_s1 = sld [smem:[#allocation3 + $0x12]] }
  0x26   :  { %v2790_v41 = vld.sshfl [vmem:[#allocation1 + $0x8] sm:$0xff pattern:$0x75316420]  ;;  %v534_v26 = vstv %s2462_s13  ;;  %s2476_s20 = sld [smem:[#allocation3 + $0x1f]] }
  0x27   :  { %v182_v42 = vsel %vm181_vm2, %v157_v33, %v180_v37  ;;  %v169_v43 = vrot.slane %v168_v38, 1  ;;  %v176_v44 = vrot.slane %v175_v39, 1  ;;  %1306 = vst [vmem:[#allocation1] ss:$2 sm:$0xff] %v1283_v16  ;;  %v524_v27 = vstv %s2461_s14  ;;  %s2475_s21 = sld [smem:[#allocation3 + $0x18]] }
  0x28   :  { %183 = vrot.lane.b32.xlu0 %v182_v42, %s2741_s0  ;;  %v691_v32 = vstv %s2477_s15  ;;  %s2491_s22 = sld [smem:[#allocation3 + $0x27]] }
  0x29   :  { %v170_v45 = vmax.f32 %v168_v38, %v169_v43  ;;  %v177_v46 = vmax.f32 %v175_v39, %v176_v44  ;;  %v651_v33 = vstv %s2473_s16  ;;  %s2487_s23 = sld [smem:[#allocation3 + $0xb]] }
  0x2a   :  { %v554_v34 = vstv %s2464_s17  ;;  %s2478_s24 = sld [smem:[#allocation3 + $0x2d]] }
  0x2b   :  { %v196_v47 = vrot.slane %v177_v46, 7  ;;  %v808_v38 = vstv %s2488_s1  ;;  %s2490_s28 = sld [smem:[#allocation3 + $0x20]] }
  0x2c   :  { %v681_v39 = vstv %s2476_s20  ;;  %s2439_s29 = sld [smem:[#allocation3 + $0x3f]] }
  0x2d   :  { %v197_v48 = vsel %vm181_vm2, %v170_v45, %v196_v47  ;;  %v671_v42 = vstv %s2475_s21  ;;  %s2489_s30 = sld [smem:[#allocation3 + $0x19]] }
  0x2e   :  { %v838_v46 = vstv %s2491_s22  ;;  %s2501_s5 = sld [smem:[#allocation3 + $0xc]] }
  0x2f   :  { %v798_v47 = vstv %s2487_s23  ;;  %s2442_s6 = sld [smem:[#allocation3 + $0x54]] }
  0x30   :  { %198 = vrot.lane.b32.xlu0 %v197_v48, %s2741_s0  ;;  %v701_v48 = vstv %s2478_s24  ;;  %s2492_s7 = sld [smem:[#allocation3 + $0x2e]] }
  0x31   :  { %s2453_s9 = sld [smem:[#allocation3 + $0x40]] }
  0x32   :  { %s2438_s10 = sld [smem:[#allocation3 + $0x38]] }
  0x33   :  { %s2440_s11 = sld [smem:[#allocation3 + $0x46]] }
  0x34   :  { %s2456_s12 = sld [smem:[#allocation3 + $0x55]] }
  0x35   :  { %s2441_s13 = sld [smem:[#allocation3 + $0x4d]] }
  0x36   :  { %s2443_s14 = sld [smem:[#allocation3 + $0x5b]] }
  0x37   :  { %s2467_s15 = sld [smem:[#allocation3 + $0x41]] }
  0x38   :  { %s2452_s16 = sld [smem:[#allocation3 + $0x39]] }
  0x39   :  { %s2454_s17 = sld [smem:[#allocation3 + $0x47]] }
  0x3a   :  { %s2470_s1 = sld [smem:[#allocation3 + $0x56]] }
  0x3b   :  { %s2455_s20 = sld [smem:[#allocation3 + $0x4e]] }
  0x3c   :  { %s2457_s21 = sld [smem:[#allocation3 + $0x5c]] }
  0x3d   :  { %s2481_s22 = sld [smem:[#allocation3 + $0x42]] }
  0x3e   :  { %s2466_s23 = sld [smem:[#allocation3 + $0x3a]] }
  0x3f   :  { %s2468_s24 = sld [smem:[#allocation3 + $0x48]] }
  0x9a   :  { %v184_v51 = vpop.permute.xlu0 %183 }
  0x9b   :  { %v185_v52 = vrot.slane %v184_v51, 7 }
  0x9d   :  { %v187_v54 = vsel %vm186_vm10, %v185_v52, %v184_v51 }
  0x9e   :  { %193 = vst.msk [vmem:[#allocation2] ss:$2 sm:$0x7] %vm2798_vm11, %v187_v54 }
  0xa2   :  { %v199_v10 = vpop.permute.xlu0 %198 }
  0xa3   :  { %v200_v11 = vrot.slane %v199_v10, 7 }
  0xa5   :  { %v2805_v58 = vld [vmem:[#allocation2] ss:$2 sm:$0x7]  ;;  %v201_v15 = vsel %vm186_vm10, %v200_v11, %v199_v10  ;;  %v461_v11 = vstv %s2456_s12  ;;  %s2502_s12 = sld [smem:[#allocation3 + $0x13]] }
  0xa6   :  { %v257_v59 = vmul.f32 %v256_v55, %v2805_v58  ;;  %v235_v60 = vmul.f32 %v234_v56, %v2805_v58  ;;  %v213_v61 = vmul.f32 %v212_v57, %v2805_v58  ;;  %v368_v1 = vmul.f32 %v367_v62, %v2805_v58  ;;  %204 = vst.msk [vmem:[#allocation2 + $0x1] ss:$2 sm:$0x7] %vm2798_vm11, %v201_v15 }
  0xa7   :  { %v246_v2 = vmul.f32 %v245_v63, %v2805_v58  ;;  %v224_v3 = vmul.f32 %v223_v0, %v2805_v58  ;;  %v398_v7 = vmul.f32 %v397_v4, %v2805_v58  ;;  %v358_v8 = vmul.f32 %v357_v5, %v2805_v58 }
  0xa8   :  { %259 = vrot.lane.b32.xlu0 %v257_v59, %s2743_s25  ;;  %237 = vrot.lane.b32.xlu2 %v235_v60, %s2744_s26  ;;  %v268_v9 = vmul.f32 %v267_v6, %v2805_v58  ;;  %v515_v16 = vmul.f32 %v514_v12, %v2805_v58  ;;  %v388_v17 = vmul.f32 %v387_v13, %v2805_v58  ;;  %v294_v55 = vstv %s2439_s29  ;;  %s2469_s29 = sld [smem:[#allocation3 + $0x4f]] }
  0xa9   :  { %215 = vrot.lane.b32.xlu1 %v213_v61, %s2745_s27  ;;  %v378_v18 = vmul.f32 %v377_v14, %v2805_v58  ;;  %v545_v22 = vmul.f32 %v544_v19, %v2805_v58  ;;  %v505_v23 = vmul.f32 %v504_v20, %v2805_v58  ;;  %v408_v24 = vmul.f32 %v407_v21, %v2805_v58 }
  0xaa   :  { %v662_v29 = vmul.f32 %v661_v25, %v2805_v58  ;;  %v535_v30 = vmul.f32 %v534_v26, %v2805_v58  ;;  %v525_v31 = vmul.f32 %v524_v27, %v2805_v58  ;;  %v692_v35 = vmul.f32 %v691_v32, %v2805_v58 }
  0xab   :  { %v652_v36 = vmul.f32 %v651_v33, %v2805_v58  ;;  %v555_v37 = vmul.f32 %v554_v34, %v2805_v58  ;;  %v809_v43 = vmul.f32 %v808_v38, %v2805_v58  ;;  %v682_v44 = vmul.f32 %v681_v39, %v2805_v58 }
  0xac   :  { %v672_v45 = vmul.f32 %v671_v42, %v2805_v58  ;;  %v839_v49 = vmul.f32 %v838_v46, %v2805_v58  ;;  %v799_v51 = vmul.f32 %v798_v47, %v2805_v58  ;;  %v702_v52 = vmul.f32 %v701_v48, %v2805_v58 }
  0xad   :  { %v2864_v54 = vld [vmem:[#allocation2 + $0x1] ss:$2 sm:$0x7]  ;;  %v828_v56 = vstv %s2490_s28  ;;  %v818_v57 = vstv %s2489_s30  ;;  %v324_v62 = vstv %s2442_s6  ;;  %v945_v63 = vstv %s2501_s5  ;;  %s2484_s28 = sld [smem:[#allocation3 + $0x57]] }
  0xae   :  { %v295_v59 = vmul.f32 %v294_v55, %v2864_v54  ;;  %v829_v60 = vmul.f32 %v828_v56, %v2805_v58  ;;  %v819_v61 = vmul.f32 %v818_v57, %v2805_v58  ;;  %v848_v0 = vstv %s2492_s7  ;;  %s2471_s30 = sld [smem:[#allocation3 + $0x5d]] }
  0xaf   :  { %v431_v4 = vstv %s2453_s9  ;;  %v284_v5 = vstv %s2438_s10  ;;  %v304_v6 = vstv %s2440_s11  ;;  %v314_v12 = vstv %s2441_s13  ;;  %s2495_s5 = sld [smem:[#allocation3 + $0x43]] }
  0xb0   :  { %370 = vrot.lane.b32.xlu0 %v368_v1, %s2746_s3  ;;  %248 = vrot.lane.b32.xlu2 %v246_v2, %s2747_s4  ;;  %v325_v1 = vmul.f32 %v324_v62, %v2864_v54  ;;  %v946_v2 = vmul.f32 %v945_v63, %v2805_v58  ;;  %v334_v13 = vstv %s2443_s14  ;;  %v462_v14 = vmul.f32 %v461_v11, %v2864_v54  ;;  %s2480_s6 = sld [smem:[#allocation3 + $0x3b]] }
  0xb1   :  { %226 = vrot.lane.b32.xlu1 %v224_v3, %s2746_s3  ;;  %v849_v3 = vmul.f32 %v848_v0, %v2805_v58  ;;  %v315_v15 = vmul.f32 %v314_v12, %v2864_v54  ;;  %v421_v19 = vstv %s2452_s16  ;;  %v441_v20 = vstv %s2454_s17  ;;  %s2482_s7 = sld [smem:[#allocation3 + $0x49]] }
  0xb2   :  { %v608_v25 = vstv %s2470_s1  ;;  %v451_v26 = vstv %s2455_s20  ;;  %v471_v27 = vstv %s2457_s21  ;;  %v598_v47 = vstv %s2469_s29  ;;  %s2498_s9 = sld [smem:[#allocation3 + $0x58]] }
  0xb3   :  { %v755_v46 = vstv %s2484_s28  ;;  %s2483_s10 = sld [smem:[#allocation3 + $0x50]] }
  0xb4   :  { %v618_v48 = vstv %s2471_s30  ;;  %s2485_s11 = sld [smem:[#allocation3 + $0x5e]] }
  0xb5   :  { %s2494_s13 = sld [smem:[#allocation3 + $0x3c]] }
  0xb6   :  { %s2496_s14 = sld [smem:[#allocation3 + $0x4a]] }
  0xb7   :  { %s2497_s16 = sld [smem:[#allocation3 + $0x51]] }
  0xb8   :  { %400 = vrot.lane.b32.xlu0 %v398_v7, %s2743_s25  ;;  %360 = vrot.lane.b32.xlu2 %v358_v8, %s2745_s27  ;;  %v432_v7 = vmul.f32 %v431_v4, %v2864_v54  ;;  %v285_v8 = vmul.f32 %v284_v5, %v2864_v54  ;;  %v902_v4 = vstv %s2498_s9  ;;  %s2499_s17 = sld [smem:[#allocation3 + $0x5f]] }
  0xb9   :  { %270 = vrot.lane.b32.xlu1 %v268_v9, %s2748_s8  ;;  %v305_v9 = vmul.f32 %v304_v6, %v2864_v54  ;;  %v745_v5 = vstv %s2483_s10  ;;  %s2504_s1 = sld [smem:[#allocation3 + $0x21]] }
  0xba   :  { %v765_v6 = vstv %s2485_s11  ;;  %s2509_s20 = sld [smem:[#allocation3 + $0x44]] }
  0xbb   :  { %s2503_s21 = sld [smem:[#allocation3 + $0x1a]] }
  0xbc   :  { %s2516_s28 = sld [smem:[#allocation3 + $0x14]] }
  0xbd   :  { %s2511_s29 = sld [smem:[#allocation3 + $0x52]] }
  0xbe   :  { %s2510_s30 = sld [smem:[#allocation3 + $0x4b]] }
  0xbf   :  { %s3023_s9 = sld [smem:[#allocation3 + $0x22]] }
  0xc0   :  { %517 = vrot.lane.b32.xlu0 %v515_v16, %s2746_s3  ;;  %390 = vrot.lane.b32.xlu2 %v388_v17, %s2747_s4  ;;  %v335_v16 = vmul.f32 %v334_v13, %v2864_v54  ;;  %s2523_s10 = sld [smem:[#allocation3 + $0x45]] }
  0xc1   :  { %380 = vrot.lane.b32.xlu1 %v378_v18, %s2744_s26  ;;  %v578_v18 = vstv %s2467_s15  ;;  %s2505_s15 = sld [smem:[#allocation3 + $0x28]] }
  0xc2   :  { %v579_v21 = vmul.f32 %v578_v18, %v2864_v54  ;;  %s2517_s11 = sld [smem:[#allocation3 + $0x1b]] }
  0xc8   :  { %547 = vrot.lane.b32.xlu0 %v545_v22, %s2743_s25  ;;  %507 = vrot.lane.b32.xlu2 %v505_v23, %s2745_s27  ;;  %v422_v22 = vmul.f32 %v421_v19, %v2864_v54  ;;  %v442_v23 = vmul.f32 %v441_v20, %v2864_v54 }
  0xc9   :  { %410 = vrot.lane.b32.xlu1 %v408_v24, %s2748_s8 }
  0xd0   :  { %664 = vrot.lane.b32.xlu0 %v662_v29, %s2746_s3  ;;  %537 = vrot.lane.b32.xlu2 %v535_v30, %s2747_s4  ;;  %v609_v29 = vmul.f32 %v608_v25, %v2864_v54  ;;  %v452_v30 = vmul.f32 %v451_v26, %v2864_v54  ;;  %v985_v25 = vstv %s2505_s15  ;;  %v892_v26 = vstv %s2497_s16  ;;  %s2525_s15 = sld [smem:[#allocation3 + $0x53]] }
  0xd1   :  { %527 = vrot.lane.b32.xlu1 %v525_v31, %s2744_s26  ;;  %v472_v31 = vmul.f32 %v471_v27, %v2864_v54  ;;  %v912_v27 = vstv %s2499_s17  ;;  %s2524_s16 = sld [smem:[#allocation3 + $0x4c]] }
  0xd2   :  { %s2527_s17 = sld [smem:[#allocation3 + $0x61]] }
  0xd8   :  { %694 = vrot.lane.b32.xlu0 %v692_v35, %s2743_s25  ;;  %654 = vrot.lane.b32.xlu2 %v652_v36, %s2745_s27  ;;  %v725_v35 = vstv %s2481_s22  ;;  %v568_v36 = vstv %s2466_s23  ;;  %s2512_s22 = sld [smem:[#allocation3 + $0x59]] }
  0xd9   :  { %557 = vrot.lane.b32.xlu1 %v555_v37, %s2748_s8  ;;  %v588_v37 = vstv %s2468_s24  ;;  %v726_v38 = vmul.f32 %v725_v35, %v2864_v54  ;;  %v569_v39 = vmul.f32 %v568_v36, %v2864_v54  ;;  %s2508_s23 = sld [smem:[#allocation3 + $0x3d]] }
  0xda   :  { %v589_v42 = vmul.f32 %v588_v37, %v2864_v54  ;;  %s2506_s24 = sld [smem:[#allocation3 + $0x2f]] }
  0xe0   :  { %811 = vrot.lane.b32.xlu0 %v809_v43, %s2746_s3  ;;  %684 = vrot.lane.b32.xlu2 %v682_v44, %s2747_s4 }
  0xe1   :  { %674 = vrot.lane.b32.xlu1 %v672_v45, %s2744_s26 }
  0xe8   :  { %841 = vrot.lane.b32.xlu0 %v839_v49, %s2743_s25  ;;  %801 = vrot.lane.b32.xlu2 %v799_v51, %s2745_s27  ;;  %v756_v49 = vmul.f32 %v755_v46, %v2864_v54  ;;  %v599_v51 = vmul.f32 %v598_v47, %v2864_v54 }
  0xe9   :  { %704 = vrot.lane.b32.xlu1 %v702_v52, %s2748_s8  ;;  %v619_v52 = vmul.f32 %v618_v48, %v2864_v54 }
  0xf0   :  { %297 = vrot.lane.b32.xlu0 %v295_v59, %s2746_s3  ;;  %831 = vrot.lane.b32.xlu2 %v829_v60, %s2747_s4  ;;  %v872_v59 = vstv %s2495_s5  ;;  %v715_v60 = vstv %s2480_s6  ;;  %s3008_s5 = sld [smem:[#allocation3 + $0x29]] }
  0xf1   :  { %821 = vrot.lane.b32.xlu1 %v819_v61, %s2744_s26  ;;  %v735_v61 = vstv %s2482_s7  ;;  %v873_v62 = vmul.f32 %v872_v59, %v2864_v54  ;;  %v716_v63 = vmul.f32 %v715_v60, %v2864_v54  ;;  %v1049_v59 = vstv %s2512_s22  ;;  %s2515_s6 = sld [smem:[#allocation3 + $0xd]] }
  0xf2   :  { %v736_v0 = vmul.f32 %v735_v61, %v2864_v54  ;;  %v1009_v60 = vstv %s2508_s23  ;;  %v995_v61 = vstv %s2506_s24  ;;  %s2513_s7 = sld [smem:[#allocation3 + $0x60]] }
  0xf3   :  { %s3142_s22 = sld [smem:[#allocation3 + $0x4]] }
  0xf4   :  { %s3144_s23 = sld [smem:[#allocation3 + $0x36]] }
  0xf5   :  { %s3146_s24 = sld [smem:[#allocation3 + $0x6]] }
  0xf8   :  { %327 = vrot.lane.b32.xlu0 %v325_v1, %s2743_s25  ;;  %948 = vrot.lane.b32.xlu2 %v946_v2, %s2745_s27 }
  0xf9   :  { %851 = vrot.lane.b32.xlu1 %v849_v3, %s2748_s8 }
 0x100   :  { %434 = vrot.lane.b32.xlu0 %v432_v7, %s2746_s3  ;;  %287 = vrot.lane.b32.xlu2 %v285_v8, %s2745_s27  ;;  %v903_v7 = vmul.f32 %v902_v4, %v2864_v54  ;;  %v746_v8 = vmul.f32 %v745_v5, %v2864_v54 }
 0x101   :  { %307 = vrot.lane.b32.xlu1 %v305_v9, %s2744_s26  ;;  %v766_v9 = vmul.f32 %v765_v6, %v2864_v54 }
 0x102   :  { %v2884_v10 = vpop.permute.xlu2 %237 }
 0x103   :  { %4062 = vst [vmem:[#allocation12_spill] sm:$0xff] %v2884_v10 }
 0x108   :  { %464 = vrot.lane.b32.xlu0 %v462_v14, %s2743_s25  ;;  %317 = vrot.lane.b32.xlu2 %v315_v15, %s2747_s4  ;;  %v955_v14 = vstv %s2502_s12  ;;  %v862_v15 = vstv %s2494_s13  ;;  %s3043_s12 = sld [smem:[#allocation3 + $0x5a]] }
 0x109   :  { %337 = vrot.lane.b32.xlu1 %v335_v16, %s2748_s8  ;;  %v882_v16 = vstv %s2496_s14  ;;  %v956_v18 = vmul.f32 %v955_v14, %v2805_v58  ;;  %v863_v19 = vmul.f32 %v862_v15, %v2864_v54  ;;  %v1029_v14 = vstv %s2510_s30  ;;  %s2522_s13 = sld [smem:[#allocation3 + $0x3e]] }
 0x10a   :  { %v2892_v17 = vpop.permute.xlu2 %248  ;;  %v883_v20 = vmul.f32 %v882_v16, %v2864_v54  ;;  %s2520_s14 = sld [smem:[#allocation3 + $0x30]] }
 0x10b   :  { %4063 = vst [vmem:[#allocation13_spill] sm:$0xff] %v2892_v17  ;;  %s3181_s30 = sld [smem:[#allocation3 + $0x34]] }
 0x110   :  { %581 = vrot.lane.b32.xlu0 %v579_v21, %s2746_s3  ;;  %424 = vrot.lane.b32.xlu2 %v422_v22, %s2745_s27 }
 0x111   :  { %444 = vrot.lane.b32.xlu1 %v442_v23, %s2744_s26 }
 0x112   :  { %v2900_v24 = vpop.permute.xlu2 %360 }
 0x118   :  { %611 = vrot.lane.b32.xlu0 %v609_v29, %s2743_s25  ;;  %454 = vrot.lane.b32.xlu2 %v452_v30, %s2747_s4  ;;  %v986_v29 = vmul.f32 %v985_v25, %v2805_v58  ;;  %v893_v30 = vmul.f32 %v892_v26, %v2864_v54 }
 0x119   :  { %474 = vrot.lane.b32.xlu1 %v472_v31, %s2748_s8  ;;  %v913_v31 = vmul.f32 %v912_v27, %v2864_v54 }
 0x11a   :  { %v2908_v32 = vpop.permute.xlu0 %259  ;;  %v2910_v33 = vpop.permute.xlu2 %390 }
 0x11b   :  { %4064 = vst [vmem:[#allocation14_spill] sm:$0xff] %v2908_v32  ;;  %v2912_v34 = vpop.permute.xlu1 %215 }
 0x11c   :  { %4065 = vst [vmem:[#allocation15_spill] sm:$0xff] %v2912_v34 }
 0x120   :  { %728 = vrot.lane.b32.xlu0 %v726_v38, %s2746_s3  ;;  %571 = vrot.lane.b32.xlu2 %v569_v39, %s2745_s27  ;;  %v1019_v38 = vstv %s2509_s20  ;;  %v975_v39 = vstv %s2504_s1  ;;  %s3128_s1 = sld [smem:[#allocation3 + $0x1]] }
 0x121   :  { %591 = vrot.lane.b32.xlu1 %v589_v42, %s2744_s26  ;;  %v965_v42 = vstv %s2503_s21  ;;  %v1020_v46 = vmul.f32 %v1019_v38, %v2864_v54  ;;  %v976_v47 = vmul.f32 %v975_v39, %v2805_v58  ;;  %v1132_v38 = vstv %s3008_s5  ;;  %s3132_s20 = sld [smem:[#allocation3 + $0x2]] }
 0x122   :  { %v2920_v43 = vpop.permute.xlu0 %370  ;;  %v2922_v44 = vpop.permute.xlu2 %507  ;;  %v966_v48 = vmul.f32 %v965_v42, %v2805_v58  ;;  %v1092_v39 = vstv %s2515_s6  ;;  %v1059_v42 = vstv %s2513_s7  ;;  %s3135_s21 = sld [smem:[#allocation3 + $0x3]] }
 0x123   :  { %v2924_v45 = vpop.permute.xlu1 %226  ;;  %s3188_s5 = sld [smem:[#allocation3 + $0x37]] }
 0x124   :  { %4066 = vst [vmem:[#allocation16_spill] sm:$0xff] %v2924_v45  ;;  %s3277_s6 = sld [smem:[#allocation3 + $0x15]] }
 0x125   :  { %s3286_s7 = sld [smem:[#allocation3 + $0xe]] }
 0x128   :  { %758 = vrot.lane.b32.xlu0 %v756_v49, %s2743_s25  ;;  %601 = vrot.lane.b32.xlu2 %v599_v51, %s2747_s4 }
 0x129   :  { %621 = vrot.lane.b32.xlu1 %v619_v52, %s2748_s8 }
 0x12a   :  { %v2932_v55 = vpop.permute.xlu0 %400  ;;  %v2934_v56 = vpop.permute.xlu2 %537 }
 0x12b   :  { %v2936_v57 = vpop.permute.xlu1 %270 }
 0x12c   :  { %4067 = vst [vmem:[#allocation17_spill] sm:$0xff] %v2936_v57 }
 0x130   :  { %875 = vrot.lane.b32.xlu0 %v873_v62, %s2746_s3  ;;  %718 = vrot.lane.b32.xlu2 %v716_v63, %s2745_s27  ;;  %v1050_v62 = vmul.f32 %v1049_v59, %v2864_v54  ;;  %v1010_v63 = vmul.f32 %v1009_v60, %v2864_v54  ;;  %v1133_v59 = vmul.f32 %v1132_v38, %v2805_v58 }
 0x131   :  { %738 = vrot.lane.b32.xlu1 %v736_v0, %s2744_s26  ;;  %v996_v0 = vmul.f32 %v995_v61, %v2805_v58  ;;  %v1093_v60 = vmul.f32 %v1092_v39, %v2805_v58  ;;  %v1290_v61 = vsel %vm4047_vm0, %v2788_v40, 0.0  ;;  %v1166_v40 = vstv %s2523_s10  ;;  %s3323_s10 = sld [smem:[#allocation3 + $0x2a]] }
 0x132   :  { %v2944_v1 = vpop.permute.xlu0 %517  ;;  %v2946_v2 = vpop.permute.xlu2 %654 }
 0x133   :  { %v2948_v3 = vpop.permute.xlu1 %380 }
 0x138   :  { %905 = vrot.lane.b32.xlu0 %v903_v7, %s2743_s25  ;;  %748 = vrot.lane.b32.xlu2 %v746_v8, %s2747_s4  ;;  %v1102_v7 = vstv %s2516_s28  ;;  %v1039_v8 = vstv %s2511_s29  ;;  %s3150_s28 = sld [smem:[#allocation3 + $0x32]] }
 0x139   :  { %768 = vrot.lane.b32.xlu1 %v766_v9, %s2748_s8  ;;  %v1308_v9 = vld.sshfl [vmem:[#allocation1 + $0x8] sm:$0xff pattern:$0x75316420]  ;;  %v1103_v15 = vmul.f32 %v1102_v7, %v2805_v58  ;;  %v1040_v16 = vmul.f32 %v1039_v8, %v2864_v54  ;;  %s3155_s29 = sld [smem:[#allocation3 + $0x33]] }
 0x13a   :  { %v2956_v11 = vpop.permute.xlu0 %547  ;;  %v2958_v12 = vpop.permute.xlu2 %684 }
 0x13b   :  { %v2960_v13 = vpop.permute.xlu1 %410 }
 0x140   :  { %958 = vrot.lane.b32.xlu0 %v956_v18, %s2746_s3  ;;  %865 = vrot.lane.b32.xlu2 %v863_v19, %s2745_s27  ;;  %v1318_v18 = vsel %vm4047_vm0, %v1308_v9, -inf  ;;  %v1030_v19 = vmul.f32 %v1029_v14, %v2864_v54 }
 0x141   :  { %885 = vrot.lane.b32.xlu1 %v883_v20, %s2744_s26  ;;  %v1307_v20 = vld.sshfl [vmem:[#allocation1] sm:$0xff pattern:$0x75316420]  ;;  %v1319_v25 = vrot.slane %v1318_v18, 4 }
 0x142   :  { %v2968_v21 = vpop.permute.xlu0 %664  ;;  %v2970_v22 = vpop.permute.xlu2 %801 }
 0x143   :  { %v2972_v23 = vpop.permute.xlu1 %527 }
 0x148   :  { %988 = vrot.lane.b32.xlu0 %v986_v29, %s2743_s25  ;;  %895 = vrot.lane.b32.xlu2 %v893_v30, %s2747_s4  ;;  %v1311_v29 = vsel %vm4047_vm0, %v1307_v20, -inf  ;;  %v1297_v30 = vsel %vm4047_vm0, %v2790_v41, 0.0  ;;  %v1060_v41 = vmul.f32 %v1059_v42, %v2864_v54 }
 0x149   :  { %915 = vrot.lane.b32.xlu1 %v913_v31, %s2748_s8 }
 0x14a   :  { %v2980_v35 = vpop.permute.xlu0 %694  ;;  %v2982_v36 = vpop.permute.xlu2 %831 }
 0x14b   :  { %v2984_v37 = vpop.permute.xlu1 %557 }
 0x150   :  { %1022 = vrot.lane.b32.xlu0 %v1020_v46, %s2746_s3  ;;  %978 = vrot.lane.b32.xlu2 %v976_v47, %s2747_s4  ;;  %v1312_v46 = vrot.slane %v1311_v29, 4  ;;  %v1320_v47 = vmax.f32 %v1318_v18, %v1319_v25 }
 0x151   :  { %968 = vrot.lane.b32.xlu1 %v966_v48, %s2744_s26  ;;  %v1298_v48 = vrot.slane %v1297_v30, 4 }
 0x152   :  { %v2992_v49 = vpop.permute.xlu0 %811  ;;  %v2994_v51 = vpop.permute.xlu2 %948 }
 0x153   :  { %v2996_v52 = vpop.permute.xlu1 %674  ;;  %v1299_v7 = vadd.f32 %v1298_v48, %v1297_v30 }
 0x155   :  { %v1300_v25 = vrot.slane %v1299_v7, 2 }
 0x157   :  { %v1301_v48 = vadd.f32 %v1300_v25, %v1299_v7 }
 0x158   :  { %1052 = vrot.lane.b32.xlu0 %v1050_v62, %s2743_s25  ;;  %1012 = vrot.lane.b32.xlu2 %v1010_v63, %s2745_s27  ;;  %v1313_v62 = vmax.f32 %v1311_v29, %v1312_v46  ;;  %v1321_v63 = vrot.slane %v1320_v47, 2  ;;  %v1167_v29 = vmul.f32 %v1166_v40, %v2864_v54 }
 0x159   :  { %998 = vrot.lane.b32.xlu1 %v996_v0, %s2748_s8  ;;  %v1291_v0 = vrot.slane %v1290_v61, 4 }
 0x15a   :  { %v3004_v4 = vpop.permute.xlu0 %841  ;;  %v3006_v5 = vpop.permute.xlu2 %287  ;;  %v1314_v18 = vrot.slane %v1313_v62, 2 }
 0x15b   :  { %4068 = vst [vmem:[#allocation18_spill] sm:$0xff] %v3006_v5  ;;  %v3010_v6 = vpop.permute.xlu1 %704  ;;  %v1292_v20 = vadd.f32 %v1291_v0, %v1290_v61  ;;  %v1196_v61 = vstv %s3043_s12  ;;  %v950_v5 = vrot.slane %v2994_v51, 1  ;;  %s3335_s12 = sld [smem:[#allocation3 + $0x1c]] }
 0x15c   :  { %v1315_v39 = vmax.f32 %v1313_v62, %v1314_v18  ;;  %v1197_v62 = vmul.f32 %v1196_v61, %v2864_v54 }
 0x15d   :  { %v1293_v46 = vrot.slane %v1292_v20, 2  ;;  %v951_v17 = vsel %vm218_vm12, %v2994_v51, %v950_v5 }
 0x15e   :  { %v1316_v0 = vrot.slane %v1315_v39, 1 }
 0x160   :  { %1105 = vrot.lane.b32.xlu0 %v1103_v15, %s2746_s3  ;;  %1042 = vrot.lane.b32.xlu2 %v1040_v16, %s2747_s4  ;;  %v1122_v15 = vstv %s3023_s9  ;;  %v1112_v16 = vstv %s2517_s11  ;;  %v1317_v25 = vmax.f32 %v1315_v39, %v1316_v0  ;;  %s3290_s9 = sld [smem:[#allocation3 + $0x7]] }
 0x161   :  { %1032 = vrot.lane.b32.xlu1 %v1030_v19, %s2744_s26  ;;  %v1322_v19 = vmax.f32 %v1320_v47, %v1321_v63  ;;  %v1123_v30 = vmul.f32 %v1122_v15, %v2805_v58  ;;  %v1113_v38 = vmul.f32 %v1112_v16, %v2805_v58  ;;  %v1142_v63 = vstv %s2520_s14  ;;  %s3328_s11 = sld [smem:[#allocation3 + $0x23]] }
 0x162   :  { %v3019_v26 = vpop.permute.xlu0 %297  ;;  %v3021_v27 = vpop.permute.xlu2 %317  ;;  %v1294_v15 = vadd.f32 %v1293_v46, %v1292_v20  ;;  %v1302_v16 = vrot.slane %v1301_v48, 1  ;;  %v1143_v7 = vmul.f32 %v1142_v63, %v2805_v58  ;;  %v1176_v46 = vstv %s2524_s16  ;;  %s3369_s14 = sld [smem:[#allocation3 + $0x38]]  ;;  %s2749_s16 = smov 127  }
 0x163   :  { %4069 = vst [vmem:[#allocation19_spill] sm:$0xff] %v3019_v26  ;;  %v3028_v31 = vpop.permute.xlu1 %821  ;;  %v1323_v42 = vrot.slane %v1322_v19, 1  ;;  %v1177_v39 = vmul.f32 %v1176_v46, %v2864_v54 }
 0x164   :  { %4070 = vst [vmem:[#allocation20_spill] sm:$0xff] %v3021_v27 }
 0x165   :  { %v1324_v40 = vmax.f32 %v1322_v19, %v1323_v42  ;;  %v1186_v42 = vstv %s2525_s15  ;;  %s3380_s15 = sld [smem:[#allocation3 + $0x35]] }
 0x168   :  { %1135 = vrot.lane.b32.xlu0 %v1133_v59, %s2743_s25  ;;  %1095 = vrot.lane.b32.xlu2 %v1093_v60, %s2745_s27 }
 0x169   :  { %1062 = vrot.lane.b32.xlu1 %v1060_v41, %s2748_s8  ;;  %v1156_v41 = vstv %s2522_s13  ;;  %s3365_s13 = sld [smem:[#allocation3 + $0x3f]] }
 0x16a   :  { %v3039_v8 = vpop.permute.xlu0 %327  ;;  %v3041_v9 = vpop.permute.xlu2 %424  ;;  %v1157_v18 = vmul.f32 %v1156_v41, %v2864_v54 }
 0x16b   :  { %4071 = vst [vmem:[#allocation21_spill] sm:$0xff] %v3039_v8  ;;  %v3045_v14 = vpop.permute.xlu1 %851 }
 0x170   :  { %1169 = vrot.lane.b32.xlu0 %v1167_v29, %s2746_s3  ;;  %1125 = vrot.lane.b32.xlu2 %v1123_v30, %s2747_s4  ;;  %v1337_v29 = vrot.slane %v1324_v40, 7  ;;  %v1295_v30 = vrot.slane %v1294_v15, 1 }
 0x171   :  { %1115 = vrot.lane.b32.xlu1 %v1113_v38, %s2744_s26  ;;  %v1303_v38 = vadd.f32 %v1302_v16, %v1301_v48 }
 0x172   :  { %v3054_v47 = vpop.permute.xlu0 %434  ;;  %v3056_v59 = vpop.permute.xlu2 %454  ;;  %v1338_v61 = vsel %vm181_vm2, %v1317_v25, %v1337_v29  ;;  %v1296_v41 = vadd.f32 %v1295_v30, %v1294_v15 }
 0x173   :  { %v3058_v60 = vpop.permute.xlu1 %307  ;;  %v1305_v63 = vmul.f32 %v1303_v38, %v2784_v28 }
 0x174   :  { %4072 = vst [vmem:[#allocation22_spill] sm:$0xff] %v3058_v60  ;;  %v1304_v48 = vmul.f32 %v1296_v41, %v2784_v28 }
 0x175   :  { %v1327_v0 = vrot.slane %v1305_v63, 7 }
 0x178   :  { %1199 = vrot.lane.b32.xlu0 %v1197_v62, %s2743_s25  ;;  %1159 = vrot.lane.b32.xlu2 %v1157_v18, %s2745_s27  ;;  %v1187_v62 = vmul.f32 %v1186_v42, %v2864_v54  ;;  %v1206_v18 = vstv %s2527_s17  ;;  %s2750_s17 = smov 126  }
 0x179   :  { %1145 = vrot.lane.b32.xlu1 %v1143_v7, %s2748_s8  ;;  %v1328_v7 = vsel %vm181_vm2, %v1304_v48, %v1327_v0  ;;  %v1207_v25 = vmul.f32 %v1206_v18, %v2864_v54  ;;  %vm273_vm2 = vcmask 261120  }
 0x17a   :  { %v3067_v50 = vpop.permute.xlu0 %464  ;;  %v3069_v19 = vpop.permute.xlu2 %571 }
 0x17b   :  { %v3071_v20 = vpop.permute.xlu1 %337 }
 0x17c   :  { %4073 = vst [vmem:[#allocation23_spill] sm:$0xff] %v3071_v20 }
 0x180   :  { %1339 = vrot.lane.b32.xlu0 %v1338_v61, %s2741_s0  ;;  %1189 = vrot.lane.b32.xlu2 %v1187_v62, %s2747_s4 }
 0x181   :  { %1179 = vrot.lane.b32.xlu1 %v1177_v39, %s2744_s26 }
 0x182   :  { %v3081_v40 = vpop.permute.xlu0 %581  ;;  %v3083_v16 = vpop.permute.xlu2 %601 }
 0x183   :  { %v3085_v15 = vpop.permute.xlu1 %444 }
 0x188   :  { %1329 = vrot.lane.b32.xlu2 %v1328_v7, %s2741_s0  ;;  %s2500_s0 = sld [smem:[#allocation3 + $0x5]] }
 0x189   :  { %1209 = vrot.lane.b32.xlu1 %v1207_v25, %s2748_s8 }
 0x18a   :  { %v3091_v29 = vpop.permute.xlu0 %611  ;;  %v3093_v30 = vpop.permute.xlu2 %718 }
 0x18b   :  { %4074 = vst [vmem:[#allocation24_spill] sm:$0xff] %v3091_v29  ;;  %v3095_v28 = vpop.permute.xlu1 %474 }
 0x18c   :  { %4075 = vst [vmem:[#allocation25_spill] sm:$0xff] %v3093_v30 }
 0x18d   :  { %4076 = vst [vmem:[#allocation26_spill] sm:$0xff] %v3095_v28  ;;  %v711_v28 = vstv %s3181_s30  ;;  %s2545_s30 = sld [smem:[#allocation3 + $0xf]] }
 0x18e   :  { %v941_v57 = vstv %s2500_s0  ;;  %s2751_s0 = smov 125  }
 0x18f   :  { %v942_v10 = vmul.f32 %v941_v57, %v2805_v58 }
 0x192   :  { %v3097_v38 = vpop.permute.xlu0 %728  ;;  %v3099_v42 = vpop.permute.xlu2 %748 }
 0x193   :  { %4077 = vst [vmem:[#allocation27_spill] sm:$0xff] %v3097_v38  ;;  %v3101_v46 = vpop.permute.xlu1 %591 }
 0x194   :  { %4078 = vst [vmem:[#allocation28_spill] sm:$0xff] %v3099_v42 }
 0x19a   :  { %v3103_v61 = vpop.permute.xlu0 %758  ;;  %v3105_v41 = vpop.permute.xlu2 %865 }
 0x19b   :  { %4079 = vst [vmem:[#allocation29_spill] sm:$0xff] %v3103_v61  ;;  %v3107_v63 = vpop.permute.xlu1 %621 }
 0x19c   :  { %4080 = vst [vmem:[#allocation30_spill] sm:$0xff] %v3105_v41 }
 0x19d   :  { %4081 = vst [vmem:[#allocation31_spill] sm:$0xff] %v3107_v63 }
 0x1a2   :  { %v3109_v62 = vpop.permute.xlu0 %875  ;;  %v3111_v39 = vpop.permute.xlu2 %895 }
 0x1a3   :  { %4082 = vst [vmem:[#allocation32_spill] sm:$0xff] %v3109_v62  ;;  %v3113_v48 = vpop.permute.xlu1 %738  ;;  %v647_v62 = vstv %s3135_s21  ;;  %s2539_s21 = sld [smem:[#allocation3 + $0x46]] }
 0x1a4   :  { %4083 = vst [vmem:[#allocation33_spill] sm:$0xff] %v3111_v39 }
 0x1a5   :  { %4084 = vst [vmem:[#allocation34_spill] sm:$0xff] %v3113_v48 }
 0x1aa   :  { %v3115_v0 = vpop.permute.xlu0 %905  ;;  %v979_v18 = vpop.permute.xlu2 %978 }
 0x1ab   :  { %4085 = vst [vmem:[#allocation35_spill] sm:$0xff] %v3115_v0  ;;  %v3117_v7 = vpop.permute.xlu1 %768  ;;  %v953_v0 = vadd.f32 %v951_v17, %v942_v10  ;;  %v353_v17 = vstv %s3128_s1  ;;  %s2752_s1 = smov 124  }
 0x1ac   :  { %4086 = vst [vmem:[#allocation36_spill] sm:$0xff] %v3117_v7  ;;  %v980_v7 = vrot.slane %v979_v18, 1  ;;  %v354_v63 = vmul.f32 %v353_v17, %v2805_v58 }
 0x1ae   :  { %v981_v10 = vsel %vm251_vm15, %v979_v18, %v980_v7  ;;  %v382_v7 = vrot.slane %v2948_v3, 1 }
 0x1b0   :  { %v383_v38 = vsel %vm240_vm14, %v2948_v3, %v382_v7 }
 0x1b2   :  { %v959_v25 = vpop.permute.xlu0 %958  ;;  %v3119_v20 = vpop.permute.xlu2 %1012 }
 0x1b3   :  { %v3121_v8 = vpop.permute.xlu1 %885  ;;  %v960_v32 = vrot.slane %v959_v25, 1 }
 0x1b4   :  { %4087 = vst [vmem:[#allocation37_spill] sm:$0xff] %v3121_v8  ;;  %v372_v8 = vrot.slane %v2920_v43, 1 }
 0x1b5   :  { %v961_v45 = vsel %vm4048_vm13, %v959_v25, %v960_v32  ;;  %v362_v25 = vrot.slane %v2900_v24, 1 }
 0x1b6   :  { %v963_v57 = vadd.f32 %v961_v45, %v953_v0  ;;  %v500_v0 = vstv %s3132_s20  ;;  %s2753_s20 = smov 123  }
 0x1b7   :  { %v363_v18 = vsel %vm218_vm12, %v2900_v24, %v362_v25  ;;  %v392_v25 = vrot.slane %v2910_v33, 1 }
 0x1b8   :  { %v365_v24 = vadd.f32 %v363_v18, %v354_v63  ;;  %v519_v18 = vrot.slane %v2944_v1, 1 }
 0x1b9   :  { %v393_v7 = vsel %vm251_vm15, %v2910_v33, %v392_v25 }
 0x1ba   :  { %v989_v27 = vpop.permute.xlu0 %988  ;;  %v3123_v60 = vpop.permute.xlu2 %1042  ;;  %v520_v33 = vsel %vm4048_vm13, %v2944_v1, %v519_v18 }
 0x1bb   :  { %v3125_v26 = vpop.permute.xlu1 %915  ;;  %v990_v32 = vrot.slane %v989_v27, 1 }
 0x1bc   :  { %4088 = vst [vmem:[#allocation38_spill] sm:$0xff] %v3125_v26 }
 0x1c2   :  { %v3138_v34 = vpop.permute.xlu0 %1022  ;;  %v3140_v26 = vpop.permute.xlu2 %1095 }
 0x1c3   :  { %v969_v39 = vpop.permute.xlu1 %968  ;;  %v1024_v48 = vrot.slane %v3138_v34, 1 }
 0x1c4   :  { %v970_v51 = vrot.slane %v969_v39, 1 }
 0x1c6   :  { %v971_v5 = vsel %vm240_vm14, %v969_v39, %v970_v51  ;;  %v991_v39 = vsel %vm262_vm1, %v989_v27, %v990_v32  ;;  %v373_v27 = vsel %vm4048_vm13, %v2920_v43, %v372_v8  ;;  %v501_v32 = vmul.f32 %v500_v0, %v2805_v58 }
 0x1c7   :  { %v973_v61 = vadd.f32 %v971_v5, %v963_v57  ;;  %v794_v5 = vstv %s3142_s22  ;;  %v375_v0 = vadd.f32 %v373_v27, %v365_v24  ;;  %s2754_s22 = smov 122  }
 0x1c9   :  { %v983_v45 = vadd.f32 %v981_v10, %v973_v61  ;;  %v509_v61 = vrot.slane %v2922_v44, 1  ;;  %v1005_v10 = vstv %s3144_s23  ;;  %s2542_s23 = sld [smem:[#allocation3 + $0x5b]] }
 0x1ca   :  { %v3160_v51 = vpop.permute.xlu0 %1052  ;;  %v3162_v57 = vpop.permute.xlu2 %1125  ;;  %v1006_v43 = vmul.f32 %v1005_v10, %v2864_v54  ;;  %v529_v10 = vrot.slane %v2972_v23, 1 }
 0x1cb   :  { %v993_v42 = vadd.f32 %v991_v39, %v983_v45  ;;  %v999_v41 = vpop.permute.xlu1 %998  ;;  %v1014_v45 = vrot.slane %v3119_v20, 1  ;;  %v648_v39 = vmul.f32 %v647_v62, %v2805_v58  ;;  %v510_v63 = vsel %vm218_vm12, %v2922_v44, %v509_v61 }
 0x1cc   :  { %v1000_v29 = vrot.slane %v999_v41, 1  ;;  %v512_v24 = vadd.f32 %v510_v63, %v501_v32  ;;  %v412_v32 = vrot.slane %v2960_v13, 1  ;;  %v1054_v1 = vrot.slane %v3160_v51, 1 }
 0x1cd   :  { %v1015_v44 = vsel %vm218_vm12, %v3119_v20, %v1014_v45  ;;  %v1025_v20 = vsel %vm4048_vm13, %v3138_v34, %v1024_v48  ;;  %v539_v45 = vrot.slane %v2934_v56, 1  ;;  %v676_v48 = vrot.slane %v2996_v52, 1 }
 0x1ce   :  { %v1001_v17 = vsel %vm273_vm2, %v999_v41, %v1000_v29  ;;  %v3191_v29 = vmul.f32 %v794_v5, %v2805_v58  ;;  %v417_v41 = vstv %s3150_s28  ;;  %v402_v58 = vrot.slane %v2932_v55, 1  ;;  %s2540_s28 = sld [smem:[#allocation3 + $0x4d]] }
 0x1cf   :  { %v1003_v8 = vadd.f32 %v1001_v17, %v993_v42  ;;  %v385_v42 = vadd.f32 %v383_v38, %v375_v0  ;;  %v656_v5 = vrot.slane %v2946_v2, 1  ;;  %v1044_v38 = vrot.slane %v3123_v60, 1 }
 0x1d0   :  { %v403_v30 = vsel %vm262_vm1, %v2932_v55, %v402_v58  ;;  %v1055_v55 = vsel %vm262_vm1, %v3160_v51, %v1054_v1  ;;  %v686_v51 = vrot.slane %v2958_v12, 1 }
 0x1d1   :  { %v1007_v62 = vadd.f32 %v1006_v43, %v1003_v8  ;;  %v666_v8 = vrot.slane %v2968_v21, 1  ;;  %v395_v63 = vadd.f32 %v393_v7, %v385_v42  ;;  %v657_v34 = vsel %vm218_vm12, %v2946_v2, %v656_v5 }
 0x1d2   :  { %v3200_v61 = vpop.permute.xlu0 %1105  ;;  %v3202_v27 = vpop.permute.xlu2 %1159  ;;  %v1045_v7 = vsel %vm251_vm15, %v3123_v60, %v1044_v38  ;;  %v1152_v42 = vstv %s3188_s5  ;;  %v659_v2 = vadd.f32 %v657_v34, %v648_v39  ;;  %s2544_s5 = sld [smem:[#allocation3 + $0x8]] }
 0x1d3   :  { %v1017_v17 = vadd.f32 %v1015_v44, %v1007_v62  ;;  %v1033_v43 = vpop.permute.xlu1 %1032  ;;  %v530_v62 = vsel %vm240_vm14, %v2972_v23, %v529_v10  ;;  %v522_v44 = vadd.f32 %v520_v33, %v512_v24  ;;  %v413_v23 = vsel %vm273_vm2, %v2960_v13, %v412_v32 }
 0x1d4   :  { %v1034_v25 = vrot.slane %v1033_v43, 1  ;;  %v667_v10 = vsel %vm4048_vm13, %v2968_v21, %v666_v8  ;;  %v405_v5 = vadd.f32 %v403_v30, %v395_v63  ;;  %v540_v13 = vsel %vm251_vm15, %v2934_v56, %v539_v45  ;;  %v2667_v45 = vld [vmem:[#allocation2] ss:$2 sm:$0x7] }
 0x1d5   :  { %v1027_v0 = vadd.f32 %v1025_v20, %v1017_v17  ;;  %v532_v24 = vadd.f32 %v530_v62, %v522_v44  ;;  %v549_v33 = vrot.slane %v2956_v11, 1  ;;  %v677_v21 = vsel %vm240_vm14, %v2996_v52, %v676_v48 }
 0x1d6   :  { %v1035_v18 = vsel %vm240_vm14, %v1033_v43, %v1034_v25  ;;  %v803_v43 = vrot.slane %v2970_v22, 1  ;;  %v669_v38 = vadd.f32 %v667_v10, %v659_v2  ;;  %v1097_v20 = vrot.slane %v3140_v26, 1 }
 0x1d7   :  { %v1037_v3 = vadd.f32 %v1035_v18, %v1027_v0  ;;  %v542_v25 = vadd.f32 %v540_v13, %v532_v24  ;;  %v559_v32 = vrot.slane %v2984_v37, 1  ;;  %v418_v56 = vmul.f32 %v417_v41, %v2864_v54 }
 0x1d8   :  { %v4089_v8 = vstv %s3146_s24  ;;  %v804_v52 = vsel %vm218_vm12, %v2970_v22, %v803_v43  ;;  %v813_v63 = vrot.slane %v2992_v49, 1  ;;  %v679_v62 = vadd.f32 %v677_v21, %v669_v38  ;;  %s2541_s24 = sld [smem:[#allocation3 + $0x54]] }
 0x1d9   :  { %v1047_v17 = vadd.f32 %v1045_v7, %v1037_v3  ;;  %v415_v3 = vadd.f32 %v413_v23, %v405_v5  ;;  %v1089_v0 = vmul.f32 %v2667_v45, %v4089_v8  ;;  %v1107_v1 = vrot.slane %v3200_v61, 1 }
 0x1da   :  { %v3234_v58 = vpop.permute.xlu0 %1135  ;;  %v3236_v60 = vpop.permute.xlu2 %1189  ;;  %v550_v18 = vsel %vm262_vm1, %v2956_v11, %v549_v33  ;;  %v4090_v44 = vstv %s3155_s29  ;;  %v3263_v48 = vmul.f32 %v711_v28, %v2864_v54  ;;  %v3266_v41 = vmul.f32 %v1152_v42, %v2864_v54  ;;  %s2546_s29 = sld [smem:[#allocation3 + $0x16]] }
 0x1db   :  { %v3243_v39 = vadd.f32 %v1055_v55, %v1047_v17  ;;  %v3245_v30 = vpop.permute.xlu1 %1062  ;;  %v565_v34 = vmul.f32 %v4090_v44, %v2864_v54  ;;  %v687_v22 = vsel %vm251_vm15, %v2958_v12, %v686_v51  ;;  %v696_v7 = vrot.slane %v2980_v35, 1 }
 0x1dc   :  { %v419_v23 = vadd.f32 %v418_v56, %v415_v3  ;;  %v1098_v10 = vsel %vm218_vm12, %v3140_v26, %v1097_v20  ;;  %v806_v11 = vadd.f32 %v804_v52, %v3191_v29  ;;  %v833_v24 = vrot.slane %v2982_v36, 1  ;;  %v3296_v3 = vld [vmem:[#allocation2] ss:$2 sm:$0x3] }
 0x1dd   :  { %v552_v17 = vadd.f32 %v550_v18, %v542_v25  ;;  %v560_v28 = vsel %vm273_vm2, %v2984_v37, %v559_v32  ;;  %v814_v42 = vsel %vm4048_vm13, %v2992_v49, %v813_v63  ;;  %v689_v12 = vadd.f32 %v687_v22, %v679_v62 }
 0x1de   :  { %v426_v2 = vrot.slane %v3041_v9, 1  ;;  %v1108_v5 = vsel %vm4048_vm13, %v3200_v61, %v1107_v1  ;;  %v706_v43 = vrot.slane %v3010_v6, 1  ;;  %v823_v37 = vrot.slane %v3028_v31, 1 }
 0x1df   :  { %v1100_v55 = vadd.f32 %v1098_v10, %v1089_v0  ;;  %v697_v49 = vsel %vm262_vm1, %v2980_v35, %v696_v7  ;;  %v436_v21 = vrot.slane %v3054_v47, 1  ;;  %v1127_v61 = vrot.slane %v3162_v57, 1 }
 0x1e0   :  { %v834_v38 = vsel %vm251_vm15, %v2982_v36, %v833_v24  ;;  %v562_v20 = vadd.f32 %v560_v28, %v552_v17  ;;  %v816_v56 = vadd.f32 %v814_v42, %v806_v11  ;;  %v427_v45 = vsel %vm218_vm12, %v3041_v9, %v426_v2 }
 0x1e1   :  { %v1110_v25 = vadd.f32 %v1108_v5, %v1100_v55  ;;  %v446_v35 = vrot.slane %v3085_v15, 1  ;;  %v699_v0 = vadd.f32 %v697_v49, %v689_v12  ;;  %v707_v52 = vsel %vm273_vm2, %v3010_v6, %v706_v43 }
 0x1e2   :  { %v3284_v26 = vpop.permute.xlu0 %1169  ;;  %v1330_v29 = vpop.permute.xlu2 %1329  ;;  %v824_v36 = vsel %vm240_vm14, %v3028_v31, %v823_v37  ;;  %v437_v62 = vsel %vm4048_vm13, %v3054_v47, %v436_v21  ;;  %v573_v9 = vrot.slane %v3069_v19, 1  ;;  %v1128_v1 = vsel %vm251_vm15, %v3162_v57, %v1127_v61 }
 0x1e3   :  { %v1331_v13 = vrot.slane %v1330_v29, 7  ;;  %v1116_v33 = vpop.permute.xlu1 %1115  ;;  %v1137_v18 = vrot.slane %v3234_v58, 1  ;;  %v843_v44 = vrot.slane %v3004_v4, 1  ;;  %v429_v6 = vadd.f32 %v427_v45, %v419_v23 }
 0x1e4   :  { %v1117_v51 = vrot.slane %v1116_v33, 1  ;;  %v566_v22 = vadd.f32 %v565_v34, %v562_v20  ;;  %v709_v31 = vadd.f32 %v707_v52, %v699_v0  ;;  %v826_v10 = vadd.f32 %v824_v36, %v816_v56 }
 0x1e5   :  { %v1332_v32 = vsel %vm186_vm10, %v1331_v13, %v1330_v29  ;;  %v456_v11 = vrot.slane %v3056_v59, 1  ;;  %v447_v47 = vsel %vm240_vm14, %v3085_v15, %v446_v35  ;;  %v439_v57 = vadd.f32 %v437_v62, %v429_v6  ;;  %v4091_v35 = vld [vmem:[#allocation26_spill] sm:$0xff]  ;;  %v3375_v6 = vld [vmem:[#allocation2 + $0x1] ss:$2 sm:$0x3] }
 0x1e6   :  { %1334 = vst.msk [vmem:[#allocation2] ss:$2 sm:$0x7] %vm2798_vm11, %v1332_v32  ;;  %v1118_v8 = vsel %vm240_vm14, %v1116_v33, %v1117_v51  ;;  %v1372_v28 = vstv %s3277_s6  ;;  %v1362_v42 = vstv %s3286_s7  ;;  %v1352_v12 = vstv %s3290_s9  ;;  %s2549_s6 = sld [smem:[#allocation3 + $0x2b]] }
 0x1e7   :  { %v1120_v63 = vadd.f32 %v1118_v8, %v1110_v25  ;;  %v466_v34 = vrot.slane %v3067_v50, 1  ;;  %v574_v23 = vsel %vm218_vm12, %v3069_v19, %v573_v9  ;;  %v1138_v2 = vsel %vm262_vm1, %v3234_v58, %v1137_v18  ;;  %s2548_s7 = sld [smem:[#allocation3 + $0x24]] }
 0x1e8   :  { %v583_v5 = vrot.slane %v3081_v40, 1  ;;  %v449_v29 = vadd.f32 %v447_v47, %v439_v57  ;;  %v1161_v43 = vrot.slane %v3202_v27, 1  ;;  %v844_v58 = vsel %vm262_vm1, %v3004_v4, %v843_v44  ;;  %s2547_s9 = sld [smem:[#allocation3 + $0x1d]] }
 0x1e9   :  { %v1130_v7 = vadd.f32 %v1128_v1, %v1120_v63  ;;  %v836_v21 = vadd.f32 %v834_v38, %v826_v10  ;;  %v713_v61 = vadd.f32 %v3263_v48, %v709_v31  ;;  %v853_v20 = vrot.slane %v3045_v14, 1 }
 0x1ea   :  { %v3321_v24 = vpop.permute.xlu0 %1199  ;;  %v457_v25 = vsel %vm251_vm15, %v3056_v59, %v456_v11  ;;  %v467_v32 = vsel %vm262_vm1, %v3067_v50, %v466_v34  ;;  %v1171_v56 = vrot.slane %v3284_v26, 1  ;;  %v576_v4 = vadd.f32 %v574_v23, %v566_v22 }
 0x1eb   :  { %v1146_v17 = vpop.permute.xlu1 %1145  ;;  %v1140_v55 = vadd.f32 %v1138_v2, %v1130_v7  ;;  %v603_v48 = vrot.slane %v3083_v16, 1  ;;  %v593_v38 = vrot.slane %v3101_v46, 1  ;;  %v584_v50 = vsel %vm4048_vm13, %v3081_v40, %v583_v5  ;;  %v4094_v5 = vld [vmem:[#allocation34_spill] sm:$0xff] }
 0x1ec   :  { %v1147_v15 = vrot.slane %v1146_v17, 1  ;;  %v459_v59 = vadd.f32 %v457_v25, %v449_v29  ;;  %v476_v8 = vrot.slane %v4091_v35, 1  ;;  %v1162_v0 = vsel %vm218_vm12, %v3202_v27, %v1161_v43  ;;  %v4092_v27 = vld [vmem:[#allocation25_spill] sm:$0xff] }
 0x1ed   :  { %v3339_v37 = vld [vmem:[#allocation2] ss:$2 sm:$0x7]  ;;  %v1402_v9 = vstv %s3323_s10  ;;  %v1191_v1 = vrot.slane %v3236_v60, 1  ;;  %v1172_v40 = vsel %vm4048_vm13, %v3284_v26, %v1171_v56  ;;  %v1382_v44 = vstv %s3335_s12  ;;  %s2553_s10 = sld [smem:[#allocation3 + $0x47]] }
 0x1ee   :  { %v1148_v13 = vsel %vm273_vm2, %v1146_v17, %v1147_v15  ;;  %v1373_v33 = vmul.f32 %v1372_v28, %v3339_v37  ;;  %v1363_v19 = vmul.f32 %v1362_v42, %v3339_v37  ;;  %v1353_v49 = vmul.f32 %v1352_v12, %v3339_v37  ;;  %v4093_v28 = vld [vmem:[#allocation27_spill] sm:$0xff]  ;;  %s2551_s12 = sld [smem:[#allocation3 + $0x39]] }
 0x1ef   :  { %v1150_v51 = vadd.f32 %v1148_v13, %v1140_v55  ;;  %v720_v22 = vrot.slane %v4092_v27, 1  ;;  %v594_v7 = vsel %vm240_vm14, %v3101_v46, %v593_v38  ;;  %v586_v11 = vadd.f32 %v584_v50, %v576_v4  ;;  %v4095_v13 = vld [vmem:[#allocation24_spill] sm:$0xff] }
 0x1f0   :  { %1375 = vrot.lane.b32.xlu0 %v1373_v33, %s2744_s26  ;;  %1365 = vrot.lane.b32.xlu2 %v1363_v19, %s2746_s3  ;;  %v1403_v47 = vmul.f32 %v1402_v9, %v3339_v37  ;;  %v477_v17 = vsel %vm273_vm2, %v4091_v35, %v476_v8  ;;  %v730_v46 = vrot.slane %v4093_v28, 1  ;;  %v1383_v12 = vmul.f32 %v1382_v44, %v3339_v37 }
 0x1f1   :  { %v1154_v45 = vadd.f32 %v3266_v41, %v1150_v51  ;;  %1355 = vrot.lane.b32.xlu1 %v1353_v49, %s2745_s27  ;;  %v1392_v41 = vstv %s3328_s11  ;;  %v469_v34 = vadd.f32 %v467_v32, %v459_v59  ;;  %v596_v23 = vadd.f32 %v594_v7, %v586_v11  ;;  %s2552_s11 = sld [smem:[#allocation3 + $0x40]] }
 0x1f2   :  { %v1340_v52 = vpop.permute.xlu0 %1339  ;;  %v1393_v57 = vmul.f32 %v1392_v41, %v3339_v37  ;;  %v1192_v53 = vsel %vm251_vm15, %v3236_v60, %v1191_v1  ;;  %v846_v2 = vadd.f32 %v844_v58, %v836_v21  ;;  %v721_v15 = vsel %vm218_vm12, %v4092_v27, %v720_v22  ;;  %v4096_v58 = vld [vmem:[#allocation31_spill] sm:$0xff] }
 0x1f3   :  { %v1341_v36 = vrot.slane %v1340_v52, 7  ;;  %v1164_v63 = vadd.f32 %v1162_v0, %v1154_v45  ;;  %v1180_v62 = vpop.permute.xlu1 %1179  ;;  %v740_v29 = vrot.slane %v4094_v5, 1  ;;  %v854_v55 = vsel %vm273_vm2, %v3045_v14, %v853_v20  ;;  %v4097_v45 = vld [vmem:[#allocation30_spill] sm:$0xff] }
 0x1f4   :  { %v1181_v18 = vrot.slane %v1180_v62, 1  ;;  %v604_v60 = vsel %vm251_vm15, %v3083_v16, %v603_v48  ;;  %v613_v33 = vrot.slane %v4095_v13, 1  ;;  %v479_v19 = vadd.f32 %v477_v17, %v469_v34 }
 0x1f5   :  { %v1342_v31 = vsel %vm186_vm10, %v1341_v36, %v1340_v52  ;;  %v1174_v10 = vadd.f32 %v1172_v40, %v1164_v63  ;;  %v731_v49 = vsel %vm4048_vm13, %v4093_v28, %v730_v46  ;;  %v623_v21 = vrot.slane %v4096_v58, 1  ;;  %v4099_v36 = vld [vmem:[#allocation32_spill] sm:$0xff]  ;;  %v4100_v40 = vld [vmem:[#allocation37_spill] sm:$0xff] }
 0x1f6   :  { %1344 = vst.msk [vmem:[#allocation2 + $0x1] ss:$2 sm:$0x7] %vm2798_vm11, %v1342_v31  ;;  %v1182_v26 = vsel %vm240_vm14, %v1180_v62, %v1181_v18  ;;  %v1428_v51 = vstv %s3365_s13  ;;  %v1418_v25 = vstv %s3369_s14  ;;  %v723_v32 = vadd.f32 %v721_v15, %v713_v61  ;;  %v4098_v61 = vld [vmem:[#allocation28_spill] sm:$0xff]  ;;  %s2556_s13 = sld [smem:[#allocation3 + $0x5c]] }
 0x1f7   :  { %v1184_v42 = vadd.f32 %v1182_v26, %v1174_v10  ;;  %v606_v56 = vadd.f32 %v604_v60, %v596_v23  ;;  %v856_v4 = vadd.f32 %v854_v55, %v846_v2  ;;  %v858_v38 = vstv %s3380_s15  ;;  %v4102_v10 = vld [vmem:[#allocation36_spill] sm:$0xff]  ;;  %v4104_v55 = vld [vmem:[#allocation35_spill] sm:$0xff]  ;;  %s2555_s14 = sld [smem:[#allocation3 + $0x55]] }
 0x1f8   :  { %1405 = vrot.lane.b32.xlu0 %v1403_v47, %s2748_s8  ;;  %1395 = vrot.lane.b32.xlu2 %v1393_v57, %s2743_s25  ;;  %v867_v50 = vrot.slane %v4097_v45, 1  ;;  %v741_v14 = vsel %vm240_vm14, %v4094_v5, %v740_v29  ;;  %v733_v20 = vadd.f32 %v731_v49, %v723_v32  ;;  %v482_v48 = vperm.slane %v479_v19, 1  ;;  %s2554_s15 = sld [smem:[#allocation3 + $0x4e]] }
 0x1f9   :  { %v3399_v43 = vadd.f32 %v1192_v53, %v1184_v42  ;;  %1385 = vrot.lane.b32.xlu1 %v1383_v12, %s2747_s4  ;;  %v614_v8 = vsel %vm262_vm1, %v4095_v13, %v613_v33  ;;  %v750_v0 = vrot.slane %v4098_v61, 1  ;;  %v624_v52 = vsel %vm273_vm2, %v4096_v58, %v623_v21  ;;  %v4103_v12 = vld [vmem:[#allocation33_spill] sm:$0xff]  ;;  %v4105_v13 = vld [vmem:[#allocation38_spill] sm:$0xff] }
 0x1fa   :  { %v877_v63 = vrot.slane %v4099_v36, 1  ;;  %v859_v62 = vmul.f32 %v858_v38, %v2864_v54  ;;  %v616_v9 = vadd.f32 %v614_v8, %v606_v56  ;;  %v743_v41 = vadd.f32 %v741_v14, %v733_v20  ;;  %v4101_v54 = vld [vmem:[#allocation29_spill] sm:$0xff] }
 0x1fb   :  { %v868_v1 = vsel %vm218_vm12, %v4097_v45, %v867_v50  ;;  %v887_v18 = vrot.slane %v4100_v40, 1  ;;  %v751_v22 = vsel %vm251_vm15, %v4098_v61, %v750_v0  ;;  %v760_v7 = vrot.slane %v4101_v54, 1  ;;  %v1210_v20 = vpop.permute.xlu1 %1209 }
 0x1fc   :  { %v860_v44 = vadd.f32 %v859_v62, %v856_v4  ;;  %v626_v27 = vadd.f32 %v624_v52, %v616_v9  ;;  %v878_v31 = vsel %vm4048_vm13, %v4099_v36, %v877_v63  ;;  %v770_v11 = vrot.slane %v4102_v10, 1 }
 0x1fd   :  { %v3416_v16 = vld [vmem:[#allocation2 + $0x1] ss:$2 sm:$0x7]  ;;  %v753_v47 = vadd.f32 %v751_v22, %v743_v41  ;;  %v888_v57 = vsel %vm240_vm14, %v4100_v40, %v887_v18  ;;  %v481_v46 = vperm.slane %v479_v19, 0  ;;  %v761_v42 = vsel %vm262_vm1, %v4101_v54, %v760_v7 }
 0x1fe   :  { %v1429_v59 = vmul.f32 %v1428_v51, %v3416_v16  ;;  %v1419_v35 = vmul.f32 %v1418_v25, %v3416_v16  ;;  %v870_v26 = vadd.f32 %v868_v1, %v860_v44  ;;  %v629_v28 = vperm.slane %v626_v27, 1 }
 0x1ff   :  { %v897_v34 = vrot.slane %v4103_v12, 1  ;;  %v771_v23 = vsel %vm273_vm2, %v4102_v10, %v770_v11  ;;  %v483_v53 = vperm.slane %v479_v19, 2  ;;  %v763_v2 = vadd.f32 %v761_v42, %v753_v47 }
 0x200   :  { %486 = vrot.lane.b32.xlu0 %v482_v48, %s2749_s16  ;;  %1431 = vrot.lane.b32.xlu2 %v1429_v59, %s2746_s3  ;;  %v880_v17 = vadd.f32 %v878_v31, %v870_v26  ;;  %v907_v60 = vrot.slane %v4104_v55, 1  ;;  %v917_v33 = vrot.slane %v4105_v13, 1  ;;  %v628_v19 = vperm.slane %v626_v27, 0 }
 0x201   :  { %1421 = vrot.lane.b32.xlu1 %v1419_v35, %s2745_s27  ;;  %v773_v5 = vadd.f32 %v771_v23, %v763_v2  ;;  %v898_v29 = vsel %vm251_vm15, %v4103_v12, %v897_v34  ;;  %v630_v25 = vperm.slane %v626_v27, 2  ;;  %v1064_v4 = vrot.slane %v3245_v30, 1 }
 0x202   :  { %v890_v15 = vadd.f32 %v888_v57, %v880_v17  ;;  %v908_v21 = vsel %vm262_vm1, %v4104_v55, %v907_v60  ;;  %v918_v51 = vsel %vm273_vm2, %v4105_v13, %v917_v33  ;;  %v1201_v59 = vrot.slane %v3321_v24, 1 }
 0x203   :  { %v776_v58 = vperm.slane %v773_v5, 1  ;;  %v775_v45 = vperm.slane %v773_v5, 0  ;;  %v1065_v50 = vsel %vm273_vm2, %v3245_v30, %v1064_v4  ;;  %v777_v14 = vperm.slane %v773_v5, 2 }
 0x204   :  { %v900_v49 = vadd.f32 %v898_v29, %v890_v15  ;;  %v1067_v48 = vadd.f32 %v1065_v50, %v3243_v39  ;;  %v1211_v35 = vrot.slane %v1210_v20, 1  ;;  %v1202_v0 = vsel %vm262_vm1, %v3321_v24, %v1201_v59 }
 0x205   :  { %v1204_v36 = vadd.f32 %v1202_v0, %v3399_v43  ;;  %v1438_v24 = vstv %s2539_s21  ;;  %v1468_v40 = vstv %s2542_s23  ;;  %v1458_v18 = vstv %s2541_s24  ;;  %s205_s21 = sld [smem:[#allocation3]]  ;;  %v4108_v0 = vld [vmem:[#allocation12_spill] sm:$0xff] }
 0x206   :  { %v910_v32 = vadd.f32 %v908_v21, %v900_v49  ;;  %v1070_v8 = vperm.slane %v1067_v48, 1  ;;  %v1212_v30 = vsel %vm273_vm2, %v1210_v20, %v1211_v35  ;;  %v1069_v62 = vperm.slane %v1067_v48, 0  ;;  %s1345_s23 = sld [smem:[#allocation3]]  ;;  %v1346_v20 = vld [vmem:[#allocation2] ss:$2 sm:$0x3] }
 0x207   :  { %v1214_v39 = vadd.f32 %v1212_v30, %v1204_v36  ;;  %v1071_v9 = vperm.slane %v1067_v48, 2  ;;  %v1439_v43 = vmul.f32 %v1438_v24, %v3416_v16  ;;  %v1448_v44 = vstv %s2540_s28  ;;  %s2536_s24 = sld [smem:[#allocation3 + $0x31]] }
 0x208   :  { %633 = vrot.lane.b32.xlu0 %v629_v28, %s2750_s17  ;;  %484 = vrot.lane.b32.xlu2 %v481_v46, %s2749_s16  ;;  %v920_v56 = vadd.f32 %v918_v51, %v910_v32  ;;  %v1469_v27 = vmul.f32 %v1468_v40, %v3416_v16  ;;  %v1459_v22 = vmul.f32 %v1458_v18, %v3416_v16  ;;  %v1511_v7 = vstv %s2546_s29  ;;  %v4106_v51 = vld [vmem:[#allocation15_spill] sm:$0xff]  ;;  %s2437_s28 = sld [smem:[#allocation3 + $0x31]] }
 0x209   :  { %488 = vrot.lane.b32.xlu1 %v483_v53, %s2749_s16  ;;  %v1217_v63 = vperm.slane %v1214_v39, 1  ;;  %v1216_v41 = vperm.slane %v1214_v39, 0  ;;  %v1218_v1 = vperm.slane %v1214_v39, 2  ;;  %v1449_v54 = vmul.f32 %v1448_v44, %v3416_v16  ;;  %s2543_s29 = sld [smem:[#allocation3 + $0x1]] }
 0x20a   :  { %v923_v38 = vperm.slane %v920_v56, 1  ;;  %v922_v61 = vperm.slane %v920_v56, 0  ;;  %v924_v52 = vperm.slane %v920_v56, 2  ;;  %v1501_v31 = vstv %s2545_s30  ;;  %v4107_v56 = vld [vmem:[#allocation16_spill] sm:$0xff]  ;;  %s3674_s30 = sld [smem:[#allocation3 + $0x32]] }
 0x20b   :  { %v1491_v10 = vstv %s2544_s5  ;;  %v1512_v11 = vmul.f32 %v1511_v7, %v3339_v37  ;;  %v1502_v26 = vmul.f32 %v1501_v31, %v3339_v37  ;;  %v1541_v57 = vstv %s2549_s6  ;;  %s2560_s5 = sld [smem:[#allocation3 + $0x17]] }
 0x20c   :  { %v1492_v47 = vmul.f32 %v1491_v10, %v3339_v37  ;;  %v1531_v17 = vstv %s2548_s7  ;;  %v1521_v28 = vstv %s2547_s9  ;;  %v1542_v46 = vmul.f32 %v1541_v57, %v3339_v37  ;;  %v4110_v10 = vld [vmem:[#allocation14_spill] sm:$0xff]  ;;  %s2559_s6 = sld [smem:[#allocation3 + $0x10]] }
 0x20d   :  { %v1532_v42 = vmul.f32 %v1531_v17, %v3339_v37  ;;  %v1522_v12 = vmul.f32 %v1521_v28, %v3339_v37  ;;  %v1575_v23 = vstv %s2553_s10  ;;  %v1565_v53 = vstv %s2552_s11  ;;  %v4111_v17 = vld [vmem:[#allocation17_spill] sm:$0xff]  ;;  %s2558_s7 = sld [smem:[#allocation3 + $0x9]] }
 0x20e   :  { %v1555_v2 = vstv %s2551_s12  ;;  %v1576_v15 = vmul.f32 %v1575_v23, %v3416_v16  ;;  %v1566_v5 = vmul.f32 %v1565_v53, %v3416_v16  ;;  %v1605_v60 = vstv %s2556_s13  ;;  %s2563_s9 = sld [smem:[#allocation3 + $0x2c]] }
 0x20f   :  { %v1556_v29 = vmul.f32 %v1555_v2, %v3416_v16  ;;  %v1595_v13 = vstv %s2555_s14  ;;  %v1585_v33 = vstv %s2554_s15  ;;  %v1606_v49 = vmul.f32 %v1605_v60, %v3416_v16  ;;  %s2562_s10 = sld [smem:[#allocation3 + $0x25]] }
 0x210   :  { %780 = vrot.lane.b32.xlu0 %v776_v58, %s2751_s0  ;;  %631 = vrot.lane.b32.xlu2 %v628_v19, %s2750_s17  ;;  %v1596_v58 = vmul.f32 %v1595_v13, %v3416_v16  ;;  %v1586_v19 = vmul.f32 %v1585_v33, %v3416_v16  ;;  %v207_v32 = vstv %s205_s21  ;;  %v228_v4 = vrot.slane %v4107_v56, 1  ;;  %s2561_s11 = sld [smem:[#allocation3 + $0x1e]] }
 0x211   :  { %635 = vrot.lane.b32.xlu1 %v630_v25, %s2750_s17  ;;  %v217_v25 = vrot.slane %v4106_v51, 1  ;;  %v239_v30 = vrot.slane %v4108_v0, 1  ;;  %v272_v28 = vrot.slane %v4111_v17, 1  ;;  %v1413_v23 = vstv %s2536_s24  ;;  %s2566_s12 = sld [smem:[#allocation3 + $0x41]] }
 0x212   :  { %v230_v48 = vsel %vm4048_vm13, %v4107_v56, %v228_v4  ;;  %vm4057_vm10 = vcmask 1006592   ;;  %s2565_s13 = sld [smem:[#allocation3 + $0x3a]] }
 0x213   :  { %v241_v24 = vsel %vm240_vm14, %v4108_v0, %v239_v30  ;;  %v274_v60 = vsel %vm273_vm2, %v4111_v17, %v272_v28  ;;  %s2570_s14 = sld [smem:[#allocation3 + $0x5d]] }
 0x214   :  { %s2569_s15 = sld [smem:[#allocation3 + $0x56]] }
 0x215   :  { %s2568_s21 = sld [smem:[#allocation3 + $0x4f]] }
 0x216   :  { %s2564_s24 = sld [smem:[#allocation3 + $0x33]] }
 0x218   :  { %927 = vrot.lane.b32.xlu0 %v923_v38, %s2752_s1  ;;  %778 = vrot.lane.b32.xlu2 %v775_v45, %s2751_s0  ;;  %v219_v38 = vsel %vm218_vm12, %v4106_v51, %v217_v25  ;;  %v208_v45 = vmul.f32 %v207_v32, %v3296_v3  ;;  %v4112_v51 = vld [vmem:[#allocation18_spill] sm:$0xff] }
 0x219   :  { %782 = vrot.lane.b32.xlu1 %v777_v14, %s2751_s0  ;;  %v1347_v14 = vstv %s1345_s23  ;;  %v289_v25 = vrot.slane %v4112_v51, 1  ;;  %s2557_s23 = sld [smem:[#allocation3 + $0x2]] }
 0x21a   :  { %v221_v35 = vadd.f32 %v219_v38, %v208_v45  ;;  %v1348_v36 = vmul.f32 %v1347_v14, %v1346_v20  ;;  %v4113_v38 = vld [vmem:[#allocation19_spill] sm:$0xff] }
 0x21b   :  { %v299_v45 = vrot.slane %v4113_v38, 1 }
 0x21c   :  { %v232_v39 = vadd.f32 %v230_v48, %v221_v35  ;;  %v290_v48 = vsel %vm218_vm12, %v4112_v51, %v289_v25 }
 0x21e   :  { %v243_v40 = vadd.f32 %v241_v24, %v232_v39 }
 0x220   :  { %1074 = vrot.lane.b32.xlu0 %v1070_v8, %s2753_s20  ;;  %925 = vrot.lane.b32.xlu2 %v922_v61, %s2752_s1 }
 0x221   :  { %929 = vrot.lane.b32.xlu1 %v924_v52, %s2752_s1 }
 0x228   :  { %1221 = vrot.lane.b32.xlu0 %v1217_v63, %s2754_s22  ;;  %1072 = vrot.lane.b32.xlu2 %v1069_v62, %s2753_s20 }
 0x229   :  { %1076 = vrot.lane.b32.xlu1 %v1071_v9, %s2753_s20 }
 0x230   :  { %1441 = vrot.lane.b32.xlu0 %v1439_v43, %s2744_s26  ;;  %1219 = vrot.lane.b32.xlu2 %v1216_v41, %s2754_s22  ;;  %v4109_v43 = vld [vmem:[#allocation13_spill] sm:$0xff] }
 0x231   :  { %1223 = vrot.lane.b32.xlu1 %v1218_v1, %s2754_s22  ;;  %v250_v41 = vrot.slane %v4109_v43, 1 }
 0x233   :  { %v252_v31 = vsel %vm251_vm15, %v4109_v43, %v250_v41  ;;  %v4116_v41 = vld [vmem:[#allocation21_spill] sm:$0xff] }
 0x238   :  { %1471 = vrot.lane.b32.xlu0 %v1469_v27, %s2748_s8  ;;  %1461 = vrot.lane.b32.xlu2 %v1459_v22, %s2743_s25 }
 0x239   :  { %1451 = vrot.lane.b32.xlu1 %v1449_v54, %s2747_s4 }
 0x240   :  { %1514 = vrot.lane.b32.xlu0 %v1512_v11, %s2744_s26  ;;  %1504 = vrot.lane.b32.xlu2 %v1502_v26, %s2746_s3  ;;  %v261_v11 = vrot.slane %v4110_v10, 1  ;;  %v254_v26 = vadd.f32 %v252_v31, %v243_v40  ;;  %v4117_v40 = vld [vmem:[#allocation23_spill] sm:$0xff] }
 0x241   :  { %1494 = vrot.lane.b32.xlu1 %v1492_v47, %s2745_s27 }
 0x242   :  { %v263_v53 = vsel %vm262_vm1, %v4110_v10, %v261_v11 }
 0x248   :  { %1544 = vrot.lane.b32.xlu0 %v1542_v46, %s2748_s8  ;;  %1534 = vrot.lane.b32.xlu2 %v1532_v42, %s2743_s25 }
 0x249   :  { %1524 = vrot.lane.b32.xlu1 %v1522_v12, %s2747_s4 }
 0x24a   :  { %v1366_v34 = vpop.permute.xlu2 %1365 }
 0x24b   :  { %v1367_v8 = vrot.slane %v1366_v34, 1 }
 0x24d   :  { %v1368_v9 = vsel %vm4048_vm13, %v1366_v34, %v1367_v8  ;;  %v1412_v34 = vld [vmem:[#allocation2 + $0x1] ss:$2 sm:$0x3] }
 0x24e   :  { %v1414_v13 = vmul.f32 %v1413_v23, %v1412_v34 }
 0x250   :  { %1578 = vrot.lane.b32.xlu0 %v1576_v15, %s2744_s26  ;;  %1568 = vrot.lane.b32.xlu2 %v1566_v5, %s2746_s3  ;;  %v265_v15 = vadd.f32 %v263_v53, %v254_v26 }
 0x251   :  { %1558 = vrot.lane.b32.xlu1 %v1556_v29, %s2745_s27 }
 0x252   :  { %v1396_v55 = vpop.permute.xlu2 %1395  ;;  %v276_v56 = vadd.f32 %v274_v60, %v265_v15 }
 0x253   :  { %v1397_v54 = vrot.slane %v1396_v55, 1 }
 0x255   :  { %v1398_v12 = vsel %vm262_vm1, %v1396_v55, %v1397_v54  ;;  %v4118_v54 = vlaneseq }
 0x258   :  { %1608 = vrot.lane.b32.xlu0 %v1606_v49, %s2748_s8  ;;  %1598 = vrot.lane.b32.xlu2 %v1596_v58, %s2743_s25 }
 0x259   :  { %1588 = vrot.lane.b32.xlu1 %v1586_v19, %s2747_s4  ;;  %v279_v19 = vstv %s2437_s28  ;;  %s2574_s28 = sld [smem:[#allocation3 + $0x18]] }
 0x25a   :  { %v3512_v21 = vpop.permute.xlu2 %1431  ;;  %v280_v14 = vmul.f32 %v279_v19, %v3375_v6 }
 0x25b   :  { %v1433_v58 = vrot.slane %v3512_v21, 1 }
 0x25c   :  { %v281_v0 = vadd.f32 %v280_v14, %v276_v56 }
 0x25d   :  { %v1434_v20 = vsel %vm4048_vm13, %v3512_v21, %v1433_v58 }
 0x262   :  { %v1376_v50 = vpop.permute.xlu0 %1375  ;;  %v3522_v52 = vpop.permute.xlu2 %484 }
 0x263   :  { %v1356_v59 = vpop.permute.xlu1 %1355  ;;  %v1377_v63 = vrot.slane %v1376_v50, 1 }
 0x264   :  { %v1357_v61 = vrot.slane %v1356_v59, 1 }
 0x265   :  { %v1378_v18 = vsel %vm240_vm14, %v1376_v50, %v1377_v63  ;;  %v292_v63 = vadd.f32 %v290_v48, %v281_v0 }
 0x266   :  { %v1358_v62 = vsel %vm218_vm12, %v1356_v59, %v1357_v61  ;;  %v4114_v59 = vld [vmem:[#allocation22_spill] sm:$0xff] }
 0x267   :  { %v1360_v3 = vadd.f32 %v1358_v62, %v1348_v36  ;;  %v309_v35 = vrot.slane %v4114_v59, 1  ;;  %v300_v36 = vsel %vm4048_vm13, %v4113_v38, %v299_v45  ;;  %v4115_v62 = vld [vmem:[#allocation20_spill] sm:$0xff]  ;;  %vm4054_vm13 = vcmask 998400  }
 0x268   :  { %v302_v21 = vadd.f32 %v300_v36, %v292_v63 }
 0x269   :  { %v1370_v1 = vadd.f32 %v1368_v9, %v1360_v3  ;;  %v310_v6 = vsel %vm240_vm14, %v4114_v59, %v309_v35  ;;  %v319_v3 = vrot.slane %v4115_v62, 1 }
 0x26a   :  { %v1406_v44 = vpop.permute.xlu0 %1405  ;;  %v3535_v46 = vpop.permute.xlu2 %631  ;;  %v312_v9 = vadd.f32 %v310_v6, %v302_v21 }
 0x26b   :  { %v1386_v27 = vpop.permute.xlu1 %1385  ;;  %v1380_v22 = vadd.f32 %v1378_v18, %v1370_v1  ;;  %v1407_v47 = vrot.slane %v1406_v44, 1  ;;  %v320_v43 = vsel %vm251_vm15, %v4115_v62, %v319_v3  ;;  %v329_v1 = vrot.slane %v4116_v41, 1 }
 0x26c   :  { %v1387_v7 = vrot.slane %v1386_v27, 1  ;;  %v339_v18 = vrot.slane %v4117_v40, 1 }
 0x26d   :  { %v1408_v5 = vsel %vm273_vm2, %v1406_v44, %v1407_v47  ;;  %v330_v10 = vsel %vm262_vm1, %v4116_v41, %v329_v1 }
 0x26e   :  { %v1388_v57 = vsel %vm251_vm15, %v1386_v27, %v1387_v7  ;;  %v48_v7 = vand.u32 127, %v4118_v54  ;;  %v340_v11 = vsel %vm273_vm2, %v4117_v40, %v339_v18 }
 0x26f   :  { %v1390_v42 = vadd.f32 %v1388_v57, %v1380_v22  ;;  %v322_v22 = vadd.f32 %v320_v43, %v312_v9 }
 0x270   :  { %v54_v31 = vand.u32 15, %v48_v7  ;;  %v49_v47 = vadd.s32 128, %v48_v7 }
 0x271   :  { %v1400_v2 = vadd.f32 %v1398_v12, %v1390_v42  ;;  %v332_v26 = vadd.f32 %v330_v10, %v322_v22 }
 0x272   :  { %v3541_v29 = vpop.permute.xlu0 %486  ;;  %v779_v8 = vpop.permute.xlu2 %778  ;;  %v3575_v57 = vadd.s32 4294967294, %v54_v31  ;;  %v3577_v42 = vadd.s32 4294967293, %v54_v31  ;;  %v3579_v12 = vadd.s32 4294967295, %v54_v31  ;;  %v61_v53 = vand.u32 15, %v49_v47 }
 0x273   :  { %v1422_v33 = vpop.permute.xlu1 %1421  ;;  %v1410_v49 = vadd.f32 %v1408_v5, %v1400_v2  ;;  %v342_v17 = vadd.f32 %v340_v11, %v332_v26  ;;  %v491_v23 = vsel %vm490_vm3, %v3522_v52, %v3541_v29  ;;  %v3590_v60 = vadd.s32 1, %v54_v31 }
 0x274   :  { %v1423_v55 = vrot.slane %v1422_v33, 1  ;;  %vm4044_vm5 = vcmp.ge.s32.totalorder %v3575_v57, 0  ;;  %vm4046_vm6 = vcmp.ge.s32.totalorder %v3577_v42, 0  ;;  %vm4045_vm7 = vcmp.ge.s32.totalorder %v3579_v12, 0 }
 0x275   :  { %v1415_v32 = vadd.f32 %v1414_v13, %v1410_v49  ;;  %v344_v15 = vperm.slane %v342_v17, 0  ;;  %v495_v13 = vsel %vm4044_vm5, %v491_v23, 0.0  ;;  %v3596_v52 = vadd.s32 2, %v54_v31 }
 0x276   :  { %v1424_v4 = vsel %vm218_vm12, %v1422_v33, %v1423_v55  ;;  %v3594_v33 = vadd.s32 4294967293, %v61_v53  ;;  %v3602_v55 = vadd.s32 4294967294, %v61_v53  ;;  %v3604_v51 = vadd.s32 4294967295, %v61_v53 }
 0x277   :  { %v1426_v50 = vadd.f32 %v1424_v4, %v1415_v32  ;;  %v348_v49 = vsel %vm4046_vm6, %v344_v15, 0.0  ;;  %vm4049_vm11 = vcmp.lt.s32.totalorder %v3590_v60, 16  ;;  %vm4050_vm5 = vcmp.lt.s32.totalorder %v3596_v52, 16 }
 0x278   :  { %v497_v19 = vadd.f32 %v495_v13, %v348_v49  ;;  %v3612_v45 = vadd.s32 3, %v54_v31  ;;  %vm77_vm6 = vcmp.ge.s32.totalorder %v3594_v33, 0  ;;  %vm93_vm0 = vcmp.ge.s32.totalorder %v3604_v51, 0 }
 0x279   :  { %v3555_v61 = vadd.f32 %v1434_v20, %v1426_v50  ;;  %v345_v20 = vperm.slane %v342_v17, 1  ;;  %v3625_v0 = vadd.s32 1, %v61_v53  ;;  %v3630_v63 = vadd.s32 2, %v61_v53 }
 0x27a   :  { %v3557_v30 = vpop.permute.xlu0 %633  ;;  %v926_v44 = vpop.permute.xlu2 %925 }
 0x27b   :  { %v489_v39 = vpop.permute.xlu1 %488  ;;  %v638_v5 = vsel %vm4051_vm4, %v3535_v46, %v3557_v30  ;;  %v349_v6 = vsel %vm77_vm6, %v345_v20, 0.0 }
 0x27c   :  { %v642_v58 = vsel %vm4045_vm7, %v638_v5, 0.0  ;;  %vm85_vm7 = vcmp.ge.s32.totalorder %v3602_v55, 0  ;;  %v492_v50 = vsel %vm490_vm3, %v3541_v29, %v489_v39 }
 0x27d   :  { %v644_v4 = vadd.f32 %v642_v58, %v497_v19  ;;  %v496_v29 = vsel %vm85_vm7, %v492_v50, 0.0 }
 0x27e   :  { %v498_v9 = vadd.f32 %v496_v29, %v349_v6 }
 0x282   :  { %v3564_v24 = vpop.permute.xlu0 %780  ;;  %v1073_v2 = vpop.permute.xlu2 %1072 }
 0x283   :  { %v636_v27 = vpop.permute.xlu1 %635  ;;  %v785_v56 = vsel %vm4058_vm9, %v779_v8, %v3564_v24 }
 0x284   :  { %v791_v48 = vadd.f32 %v785_v56, %v644_v4  ;;  %v639_v35 = vsel %vm4051_vm4, %v3557_v30, %v636_v27  ;;  %vm4055_vm4 = vcmp.lt.s32.totalorder %v3630_v63, 16  ;;  %v3645_v27 = vadd.s32 3, %v61_v53 }
 0x285   :  { %v643_v30 = vsel %vm93_vm0, %v639_v35, 0.0  ;;  %v1487_v35 = vstv %s2543_s29  ;;  %s2573_s29 = sld [smem:[#allocation3 + $0x11]] }
 0x286   :  { %v645_v18 = vadd.f32 %v643_v30, %v498_v9 }
 0x28a   :  { %v928_v28 = vpop.permute.xlu0 %927  ;;  %v1220_v59 = vpop.permute.xlu2 %1219 }
 0x28b   :  { %v783_v34 = vpop.permute.xlu1 %782  ;;  %v932_v25 = vsel %vm4059_vm8, %v926_v44, %v928_v28 }
 0x28c   :  { %v936_v14 = vsel %vm4049_vm11, %v932_v25, 0.0  ;;  %vm4052_vm11 = vcmp.lt.s32.totalorder %v3612_v45, 16  ;;  %v786_v1 = vsel %vm4058_vm9, %v3564_v24, %v783_v34 }
 0x28d   :  { %v938_v36 = vadd.f32 %v936_v14, %v791_v48  ;;  %v792_v7 = vadd.f32 %v786_v1, %v645_v18 }
 0x292   :  { %v1075_v46 = vpop.permute.xlu0 %1074  ;;  %v1462_v31 = vpop.permute.xlu2 %1461 }
 0x293   :  { %v930_v32 = vpop.permute.xlu1 %929  ;;  %v1079_v38 = vsel %vm4057_vm10, %v1073_v2, %v1075_v46  ;;  %v1463_v19 = vrot.slane %v1462_v31, 1 }
 0x294   :  { %v1083_v8 = vsel %vm4050_vm5, %v1079_v38, 0.0  ;;  %vm4056_vm5 = vcmp.lt.s32.totalorder %v3625_v0, 16  ;;  %v933_v43 = vsel %vm4059_vm8, %v928_v28, %v930_v32 }
 0x295   :  { %v1085_v21 = vadd.f32 %v1083_v8, %v938_v36  ;;  %v937_v22 = vsel %vm4056_vm5, %v933_v43, 0.0 }
 0x296   :  { %v939_v11 = vadd.f32 %v937_v22, %v792_v7 }
 0x29a   :  { %v1222_v39 = vpop.permute.xlu0 %1221  ;;  %v1505_v58 = vpop.permute.xlu2 %1504 }
 0x29b   :  { %v1226_v62 = vsel %vm4054_vm13, %v1220_v59, %v1222_v39  ;;  %v1077_v3 = vpop.permute.xlu1 %1076 }
 0x29c   :  { %v1230_v41 = vsel %vm4052_vm11, %v1226_v62, 0.0  ;;  %v1080_v44 = vsel %vm4057_vm10, %v1075_v46, %v1077_v3  ;;  %vm4053_vm11 = vcmp.lt.s32.totalorder %v3645_v27, 16 }
 0x29d   :  { %v1232_v40 = vadd.f32 %v1230_v41, %v1085_v21  ;;  %v1084_v10 = vsel %vm4055_vm4, %v1080_v44, 0.0  ;;  %v1488_v21 = vmul.f32 %v1487_v35, %v3339_v37 }
 0x29e   :  { %v1086_v17 = vadd.f32 %v1084_v10, %v939_v11 }
 0x29f   :  { %v2528_v54 = vmul.f32 -1.442695, %v1232_v40 }
 0x2a1   :  { %2651 = vpow2.f32 %v2528_v54 }
 0x2a2   :  { %v1442_v24 = vpop.permute.xlu0 %1441  ;;  %v1535_v30 = vpop.permute.xlu2 %1534 }
 0x2a3   :  { %v1443_v26 = vrot.slane %v1442_v24, 1  ;;  %v1224_v47 = vpop.permute.xlu1 %1223  ;;  %v1536_v44 = vrot.slane %v1535_v30, 1 }
 0x2a4   :  { %v1227_v28 = vsel %vm4054_vm13, %v1222_v39, %v1224_v47  ;;  %v1506_v39 = vrot.slane %v1505_v58, 1  ;;  %v1551_v47 = vstv %s3674_s30  ;;  %s2572_s30 = sld [smem:[#allocation3 + $0xa]] }
 0x2a5   :  { %v1444_v34 = vsel %vm240_vm14, %v1442_v24, %v1443_v26  ;;  %v1231_v23 = vsel %vm4053_vm11, %v1227_v28, 0.0  ;;  %vm4119_vm11 = vcmask 785408  }
 0x2a6   :  { %v1446_v53 = vadd.f32 %v1444_v34, %v3555_v61  ;;  %v1233_v2 = vadd.f32 %v1231_v23, %v1086_v17  ;;  %v1464_v61 = vsel %vm262_vm1, %v1462_v31, %v1463_v19  ;;  %v1507_v43 = vsel %vm4119_vm11, %v1505_v58, %v1506_v39 }
 0x2a7   :  { %v2652_v15 = vpop.eup %2651  ;;  %v1537_v17 = vsel %vm262_vm1, %v1535_v30, %v1536_v44 }
 0x2a8   :  { %v3657_v5 = vadd.f32 1.0, %v2652_v15  ;;  %v2529_v13 = vmul.f32 -1.442695, %v1233_v2 }
 0x2aa   :  { %2653 = vrcp.f32 %v3657_v5  ;;  %v1472_v49 = vpop.permute.xlu0 %1471  ;;  %v1569_v28 = vpop.permute.xlu2 %1568  ;;  %vm1247_vm13 = vweird.f32 %v3657_v5  ;;  %v1253_v2 = vand.u32 2147483648, %v3657_v5 }
 0x2ab   :  { %2655 = vpow2.f32 %v2529_v13  ;;  %v1452_v46 = vpop.permute.xlu1 %1451  ;;  %v1473_v32 = vrot.slane %v1472_v49, 1 }
 0x2ac   :  { %v1453_v25 = vrot.slane %v1452_v46, 1 }
 0x2ad   :  { %v1474_v48 = vsel %vm273_vm2, %v1472_v49, %v1473_v32  ;;  %v1667_v32 = vstv %s2561_s11  ;;  %s2600_s11 = sld [smem:[#allocation3 + $0xc]] }
 0x2ae   :  { %v1454_v56 = vsel %vm251_vm15, %v1452_v46, %v1453_v25  ;;  %v1552_v25 = vmul.f32 %v1551_v47, %v3416_v16 }
 0x2af   :  { %v1456_v4 = vadd.f32 %v1454_v56, %v1446_v53  ;;  %v1251_v53 = vand.u32 2147483647, %v3657_v5 }
 0x2b0   :  { %v3661_v38 = vpop.eup %2653 }
 0x2b1   :  { %v2656_v50 = vpop.eup %2655  ;;  %v1466_v14 = vadd.f32 %v1464_v61, %v1456_v4  ;;  %v1243_v8 = vmul.f32 %v3661_v38, %v3657_v5  ;;  %vm1248_vm11 = vweird.f32 %v3661_v38  ;;  %vm1252_vm8 = vcmp.eq.f32.partialorder %v1251_v53, 8.507059e+37 }
 0x2b2   :  { %v3664_v20 = vadd.f32 1.0, %v2656_v50  ;;  %v1515_v59 = vpop.permute.xlu0 %1514  ;;  %vm3692_vm5 = vmor %vm1247_vm13, %vm1248_vm11  ;;  %v1570_v50 = vrot.slane %v1569_v28, 1  ;;  %vm4122_vm11 = vcmask 785408   ;;  %v1657_v53 = vstv %s2560_s5  ;;  %s2577_s5 = sld [smem:[#allocation3 + $0x2d]] }
 0x2b3   :  { %v3669_v29 = vadd.f32 %v1474_v48, %v1466_v14  ;;  %v1495_v36 = vpop.permute.xlu1 %1494  ;;  %v1244_v3 = vsub.f32 1.0, %v1243_v8  ;;  %v1516_v41 = vrot.slane %v1515_v59, 1  ;;  %v1254_v48 = vor.u32 1.1754944e-38, %v1253_v2 }
 0x2b4   :  { %2657 = vrcp.f32 %v3664_v20  ;;  %v1496_v6 = vrot.slane %v1495_v36, 1  ;;  %v1268_v15 = vand.u32 2147483648, %v3664_v20  ;;  %v1266_v58 = vand.u32 2147483647, %v3664_v20 }
 0x2b5   :  { %v1245_v7 = vmul.f32 %v3661_v38, %v1244_v3  ;;  %v1517_v37 = vsel %vm240_vm14, %v1515_v59, %v1516_v41  ;;  %vm1262_vm10 = vweird.f32 %v3664_v20  ;;  %v1599_v3 = vpop.permute.xlu2 %1598  ;;  %v1647_v2 = vstv %s2559_s6  ;;  %s2576_s6 = sld [smem:[#allocation3 + $0x26]] }
 0x2b6   :  { %v1497_v62 = vsel %vm218_vm12, %v1495_v36, %v1496_v6  ;;  %v1269_v59 = vor.u32 1.1754944e-38, %v1268_v15  ;;  %vm1267_vm13 = vcmp.eq.f32.partialorder %v1266_v58, 8.507059e+37  ;;  %v1637_v15 = vstv %s2558_s7  ;;  %s2575_s7 = sld [smem:[#allocation3 + $0x1f]] }
 0x2b7   :  { %v1499_v9 = vadd.f32 %v1497_v62, %v1488_v21  ;;  %v1246_v23 = vadd.f32 %v3661_v38, %v1245_v7 }
 0x2b9   :  { %v1509_v1 = vadd.f32 %v1507_v43, %v1499_v9  ;;  %v1250_v5 = vsel %vm3692_vm5, %v3661_v38, %v1246_v23  ;;  %v1571_v38 = vsel %vm4122_vm11, %v1569_v28, %v1570_v50  ;;  %v1711_v50 = vstv %s2566_s12  ;;  %s2586_s12 = sld [smem:[#allocation3 + $0xb]] }
 0x2ba   :  { %v2658_v40 = vpop.eup %2657  ;;  %v1545_v18 = vpop.permute.xlu0 %1544  ;;  %v1255_v39 = vsel %vm1252_vm8, %v1254_v48, %v1250_v5  ;;  %vm4124_vm5 = vcmp.ge.s32.totalorder %v3577_v42, 0  ;;  %vm4125_vm8 = vcmp.ge.s32.totalorder %v3575_v57, 0 }
 0x2bb   :  { %v1258_v22 = vmul.f32 %v2658_v40, %v3664_v20  ;;  %v1525_v54 = vpop.permute.xlu1 %1524  ;;  %v1519_v11 = vadd.f32 %v1517_v37, %v1509_v1  ;;  %v1546_v24 = vrot.slane %v1545_v18, 1  ;;  %vm1263_vm4 = vweird.f32 %v2658_v40 }
 0x2bc   :  { %v1526_v31 = vrot.slane %v1525_v54, 1  ;;  %vm1264_vm9 = vmor %vm1262_vm10, %vm1263_vm4  ;;  %v1273_v9 = vperm.slane %v1255_v39, 0  ;;  %vm4123_vm4 = vcmask 1043456   ;;  %v1731_v39 = vstv %s2568_s21  ;;  %s2615_s21 = sld [smem:[#allocation3 + $0x14]] }
 0x2bd   :  { %v1259_v10 = vsub.f32 1.0, %v1258_v22  ;;  %v1547_v46 = vsel %vm273_vm2, %v1545_v18, %v1546_v24  ;;  %v1272_v18 = vld [vmem:[#allocation7] sm:$0xff]  ;;  %vm4130_vm10 = vcmp.ge.s32.totalorder %v3579_v12, 0 }
 0x2be   :  { %v1527_v26 = vsel %vm251_vm15, %v1525_v54, %v1526_v31 }
 0x2bf   :  { %v1529_v34 = vadd.f32 %v1527_v26, %v1519_v11  ;;  %v1260_v49 = vmul.f32 %v2658_v40, %v1259_v10 }
 0x2c1   :  { %v1539_v13 = vadd.f32 %v1537_v17, %v1529_v34  ;;  %v1261_v61 = vadd.f32 %v2658_v40, %v1260_v49 }
 0x2c2   :  { %v1579_v19 = vpop.permute.xlu0 %1578 }
 0x2c3   :  { %v1549_v56 = vadd.f32 %v1547_v46, %v1539_v13  ;;  %v1559_v4 = vpop.permute.xlu1 %1558  ;;  %v1265_v8 = vsel %vm1264_vm9, %v2658_v40, %v1261_v61  ;;  %v1580_v62 = vrot.slane %v1579_v19, 1  ;;  %v1600_v40 = vrot.slane %v1599_v3, 1  ;;  %v3710_v13 = vld [vmem:[#allocation2] ss:$2 sm:$0x7] }
 0x2c4   :  { %v1560_v14 = vrot.slane %v1559_v4, 1  ;;  %v1270_v6 = vsel %vm1267_vm13, %v1269_v59, %v1265_v8  ;;  %v1658_v49 = vmul.f32 %v3710_v13, %v1657_v53  ;;  %v1648_v58 = vmul.f32 %v3710_v13, %v1647_v2 }
 0x2c5   :  { %v1553_v35 = vadd.f32 %v1552_v25, %v1549_v56  ;;  %v1274_v21 = vperm.slane %v1270_v6, 0  ;;  %v1581_v22 = vsel %vm240_vm14, %v1579_v19, %v1580_v62  ;;  %v1601_v24 = vsel %vm262_vm1, %v1599_v3, %v1600_v40 }
 0x2c6   :  { %v1561_v36 = vsel %vm218_vm12, %v1559_v4, %v1560_v14  ;;  %v1638_v46 = vmul.f32 %v3710_v13, %v1637_v15  ;;  %v1687_v19 = vstv %s2563_s9  ;;  %v1677_v25 = vstv %s2562_s10  ;;  %s2581_s9 = sld [smem:[#allocation3 + $0x49]] }
 0x2c7   :  { %v1563_v30 = vadd.f32 %v1561_v36, %v1553_v35  ;;  %v1277_v43 = vrot.slane %v1274_v21, 4  ;;  %v1688_v56 = vmul.f32 %v3710_v13, %v1687_v19  ;;  %v1678_v4 = vmul.f32 %v3710_v13, %v1677_v25  ;;  %s2579_s10 = sld [smem:[#allocation3 + $0x3b]] }
 0x2c8   :  { %v1668_v5 = vmul.f32 %v3710_v13, %v1667_v32  ;;  %v1701_v14 = vstv %s2565_s13  ;;  %v1712_v59 = vmul.f32 %v1711_v50, %v3416_v16  ;;  %v1751_v8 = vstv %s2570_s14  ;;  %s2614_s13 = sld [smem:[#allocation3 + $0xd]] }
 0x2c9   :  { %v1573_v20 = vadd.f32 %v1571_v38, %v1563_v30  ;;  %v1278_v44 = vsel %vm4123_vm4, %v1273_v9, %v1277_v43  ;;  %v1702_v35 = vmul.f32 %v1701_v14, %v3416_v16  ;;  %v1741_v36 = vstv %s2569_s15  ;;  %s2601_s14 = sld [smem:[#allocation3 + $0x13]] }
 0x2ca   :  { %v1609_v41 = vpop.permute.xlu0 %1608  ;;  %v1280_v7 = vmul.f32 %v1278_v44, %v1272_v18  ;;  %v1752_v6 = vmul.f32 %v1751_v8, %v3416_v16  ;;  %v1742_v30 = vmul.f32 %v1741_v36, %v3416_v16  ;;  %v1732_v21 = vmul.f32 %v1731_v39, %v3416_v16  ;;  %s2588_s15 = sld [smem:[#allocation3 + $0x19]] }
 0x2cb   :  { %v1589_v1 = vpop.permute.xlu1 %1588  ;;  %v1583_v37 = vadd.f32 %v1581_v22, %v1573_v20  ;;  %v1610_v31 = vrot.slane %v1609_v41, 1  ;;  %v1479_v62 = vperm.slane %v3669_v29, 1  ;;  %v1478_v3 = vperm.slane %v3669_v29, 0 }
 0x2cc   :  { %v1590_v54 = vrot.slane %v1589_v1, 1  ;;  %1281 = vst [vmem:[#allocation8] sm:$0xff] %v1280_v7  ;;  %v1633_v7 = vstv %s2557_s23  ;;  %v1697_v19 = vstv %s2564_s24  ;;  %s2602_s23 = sld [smem:[#allocation3 + $0x1a]] }
 0x2cd   :  { %v1611_v47 = vsel %vm273_vm2, %v1609_v41, %v1610_v31  ;;  %v1482_v40 = vsel %vm4124_vm5, %v1478_v3, 0.0  ;;  %v1634_v55 = vmul.f32 %v3710_v13, %v1633_v7  ;;  %s2589_s24 = sld [smem:[#allocation3 + $0x20]] }
 0x2ce   :  { %v1591_v10 = vsel %vm251_vm15, %v1589_v1, %v1590_v54 }
 0x2cf   :  { %v1593_v11 = vadd.f32 %v1591_v10, %v1583_v37 }
 0x2d1   :  { %v1603_v26 = vadd.f32 %v1601_v24, %v1593_v11 }
 0x2d3   :  { %v1613_v17 = vadd.f32 %v1611_v47, %v1603_v26 }
 0x2d5   :  { %v1617_v28 = vperm.slane %v1613_v17, 2  ;;  %v1616_v34 = vperm.slane %v1613_v17, 1  ;;  %v1615_v23 = vperm.slane %v1613_v17, 0 }
 0x2d7   :  { %1622 = vrot.lane.b32.xlu0 %v1617_v28, %s2749_s16  ;;  %1620 = vrot.lane.b32.xlu2 %v1616_v34, %s2749_s16 }
 0x2d8   :  { %1618 = vrot.lane.b32.xlu1 %v1615_v23, %s2749_s16  ;;  %s2567_s16 = sld [smem:[#allocation3 + $0x48]] }
 0x2de   :  { %v1721_v61 = vstv %s2567_s16  ;;  %s2587_s16 = sld [smem:[#allocation3 + $0x12]] }
 0x2df   :  { %1660 = vrot.lane.b32.xlu0 %v1658_v49, %s2744_s26  ;;  %1650 = vrot.lane.b32.xlu2 %v1648_v58, %s2746_s3  ;;  %v1722_v48 = vmul.f32 %v1721_v61, %v3416_v16  ;;  %v1483_v16 = vsel %vm77_vm6, %v1479_v62, 0.0 }
 0x2e0   :  { %1640 = vrot.lane.b32.xlu1 %v1638_v46, %s2745_s27 }
 0x2e7   :  { %1690 = vrot.lane.b32.xlu0 %v1688_v56, %s2748_s8  ;;  %1680 = vrot.lane.b32.xlu2 %v1678_v4, %s2743_s25 }
 0x2e8   :  { %1670 = vrot.lane.b32.xlu1 %v1668_v5, %s2747_s4  ;;  %v3759_v5 = vld [vmem:[#allocation2 + $0x1] ss:$2 sm:$0x7] }
 0x2e9   :  { %v1698_v61 = vmul.f32 %v3759_v5, %v1697_v19  ;;  %v1929_v19 = vstv %s2586_s12  ;;  %s2619_s12 = sld [smem:[#allocation3 + $0x30]] }
 0x2ef   :  { %1724 = vrot.lane.b32.xlu0 %v1722_v48, %s2744_s26  ;;  %1714 = vrot.lane.b32.xlu2 %v1712_v59, %s2746_s3 }
 0x2f0   :  { %1704 = vrot.lane.b32.xlu1 %v1702_v35, %s2745_s27 }
 0x2f7   :  { %1754 = vrot.lane.b32.xlu0 %v1752_v6, %s2748_s8  ;;  %1744 = vrot.lane.b32.xlu2 %v1742_v30, %s2743_s25 }
 0x2f8   :  { %1734 = vrot.lane.b32.xlu1 %v1732_v21, %s2747_s4 }
 0x331   :  { %v1621_v38 = vpop.permute.xlu2 %1620 }
 0x339   :  { %v1651_v9 = vpop.permute.xlu2 %1650 }
 0x33a   :  { %v1652_v33 = vrot.slane %v1651_v9, 1 }
 0x341   :  { %v1681_v10 = vpop.permute.xlu2 %1680 }
 0x342   :  { %v1682_v28 = vrot.slane %v1681_v10, 1 }
 0x344   :  { %v1683_v46 = vsel %vm262_vm1, %v1681_v10, %v1682_v28  ;;  %v1783_v10 = vstv %s2572_s30  ;;  %s2590_s30 = sld [smem:[#allocation3 + $0x27]] }
 0x349   :  { %v1623_v20 = vpop.permute.xlu0 %1622  ;;  %v1715_v49 = vpop.permute.xlu2 %1714 }
 0x34a   :  { %v1625_v43 = vsel %vm490_vm3, %v1621_v38, %v1623_v20  ;;  %v1619_v41 = vpop.permute.xlu1 %1618  ;;  %v1716_v14 = vrot.slane %v1715_v49, 1 }
 0x34b   :  { %v1629_v1 = vsel %vm85_vm7, %v1625_v43, 0.0  ;;  %v1624_v18 = vsel %vm490_vm3, %v1619_v41, %v1621_v38  ;;  %vm4126_vm3 = vmmov %vm4122_vm11  ;;  %vm4128_vm7 = vcmask 1031168  }
 0x34c   :  { %v3744_v44 = vadd.f32 %v1629_v1, %v1483_v16  ;;  %v1628_v29 = vsel %vm4125_vm8, %v1624_v18, 0.0  ;;  %v1653_v26 = vsel %vm4126_vm3, %v1651_v9, %v1652_v33  ;;  %vm4127_vm6 = vmmov %vm4126_vm3  ;;  %v1803_v33 = vstv %s2574_s28  ;;  %s2616_s28 = sld [smem:[#allocation3 + $0x1b]] }
 0x34d   :  { %v3750_v22 = vadd.f32 %v1628_v29, %v1482_v40  ;;  %v1717_v36 = vsel %vm4127_vm6, %v1715_v49, %v1716_v14  ;;  %vm4129_vm9 = vmmov %vm4128_vm7 }
 0x351   :  { %v1661_v54 = vpop.permute.xlu0 %1660  ;;  %v1745_v6 = vpop.permute.xlu2 %1744 }
 0x352   :  { %v1641_v37 = vpop.permute.xlu1 %1640  ;;  %v1662_v42 = vrot.slane %v1661_v54, 1  ;;  %v1746_v62 = vrot.slane %v1745_v6, 1 }
 0x353   :  { %v1642_v31 = vrot.slane %v1641_v37, 1 }
 0x354   :  { %v1663_v34 = vsel %vm240_vm14, %v1661_v54, %v1662_v42  ;;  %v1747_v1 = vsel %vm262_vm1, %v1745_v6, %v1746_v62  ;;  %v1823_v42 = vstv %s2576_s6  ;;  %s2604_s6 = sld [smem:[#allocation3 + $0x28]]  ;;  %v1969_v62 = vstv %s2590_s30 }
 0x355   :  { %v1643_v11 = vsel %vm218_vm12, %v1641_v37, %v1642_v31  ;;  %v1793_v31 = vstv %s2573_s29  ;;  %s2603_s29 = sld [smem:[#allocation3 + $0x21]] }
 0x356   :  { %v1645_v24 = vadd.f32 %v1643_v11, %v1634_v55  ;;  %v1804_v55 = vmul.f32 %v3710_v13, %v1803_v33  ;;  %v1794_v11 = vmul.f32 %v3710_v13, %v1793_v31  ;;  %s2622_s30 = sld [smem:[#allocation3 + $0x45]] }
 0x358   :  { %v1655_v47 = vadd.f32 %v1653_v26, %v1645_v24  ;;  %v1784_v24 = vmul.f32 %v3710_v13, %v1783_v10  ;;  %v1833_v26 = vstv %s2577_s5  ;;  %s2617_s5 = sld [smem:[#allocation3 + $0x22]] }
 0x359   :  { %v1691_v57 = vpop.permute.xlu0 %1690 }
 0x35a   :  { %v1671_v17 = vpop.permute.xlu1 %1670  ;;  %v1665_v53 = vadd.f32 %v1663_v34, %v1655_v47  ;;  %v1692_v2 = vrot.slane %v1691_v57, 1  ;;  %v1813_v47 = vstv %s2575_s7  ;;  %v1867_v34 = vstv %s2581_s9  ;;  %s2591_s7 = sld [smem:[#allocation3 + $0x2e]] }
 0x35b   :  { %v1672_v23 = vrot.slane %v1671_v17, 1  ;;  %v1814_v28 = vmul.f32 %v3710_v13, %v1813_v47  ;;  %s2593_s9 = sld [smem:[#allocation3 + $0x3c]] }
 0x35c   :  { %v1693_v32 = vsel %vm273_vm2, %v1691_v57, %v1692_v2  ;;  %v1834_v57 = vmul.f32 %v3710_v13, %v1833_v26  ;;  %v1868_v2 = vmul.f32 %v3759_v5, %v1867_v34 }
 0x35d   :  { %v1673_v15 = vsel %vm251_vm15, %v1671_v17, %v1672_v23  ;;  %v1824_v17 = vmul.f32 %v3710_v13, %v1823_v42 }
 0x35e   :  { %v1675_v58 = vadd.f32 %v1673_v15, %v1665_v53  ;;  %v1847_v53 = vstv %s2579_s10  ;;  %s2605_s10 = sld [smem:[#allocation3 + $0x2f]] }
 0x35f   :  { %v1848_v49 = vmul.f32 %v3759_v5, %v1847_v53 }
 0x360   :  { %v1685_v25 = vadd.f32 %v1683_v46, %v1675_v58  ;;  %v2075_v58 = vstv %s2600_s11  ;;  %v1939_v46 = vstv %s2587_s16  ;;  %s2607_s11 = sld [smem:[#allocation3 + $0x3d]] }
 0x361   :  { %v1725_v56 = vpop.permute.xlu0 %1724  ;;  %s2594_s16 = sld [smem:[#allocation3 + $0x43]] }
 0x362   :  { %v1695_v4 = vadd.f32 %v1693_v32, %v1685_v25  ;;  %v1705_v50 = vpop.permute.xlu1 %1704  ;;  %v1726_v39 = vrot.slane %v1725_v56, 1  ;;  %v2076_v25 = vmul.f32 %v3710_v13, %v2075_v58  ;;  %v1940_v32 = vmul.f32 %v3710_v13, %v1939_v46 }
 0x363   :  { %v1706_v48 = vrot.slane %v1705_v50, 1 }
 0x364   :  { %v1699_v59 = vadd.f32 %v1698_v61, %v1695_v4  ;;  %v1727_v3 = vsel %vm240_vm14, %v1725_v56, %v1726_v39  ;;  %v1930_v56 = vmul.f32 %v3710_v13, %v1929_v19  ;;  %v2221_v4 = vstv %s2614_s13  ;;  %s2621_s13 = sld [smem:[#allocation3 + $0x3e]] }
 0x365   :  { %v1707_v35 = vsel %vm218_vm12, %v1705_v50, %v1706_v48  ;;  %v2085_v61 = vstv %s2601_s14  ;;  %v1949_v50 = vstv %s2588_s15  ;;  %v2222_v14 = vmul.f32 %v3710_v13, %v2221_v4  ;;  %s2608_s14 = sld [smem:[#allocation3 + $0x44]] }
 0x366   :  { %v1709_v8 = vadd.f32 %v1707_v35, %v1699_v59  ;;  %v2086_v48 = vmul.f32 %v3710_v13, %v2085_v61  ;;  %v1950_v59 = vmul.f32 %v3710_v13, %v1949_v50  ;;  %v2231_v35 = vstv %s2615_s21  ;;  %s2595_s15 = sld [smem:[#allocation3 + $0x4a]] }
 0x367   :  { %v2232_v39 = vmul.f32 %v3710_v13, %v2231_v35  ;;  %v2139_v10 = vstv %s2607_s11  ;;  %s2609_s21 = sld [smem:[#allocation3 + $0x4b]]  ;;  %v2295_v4 = vstv %s2622_s30 }
 0x368   :  { %v1719_v30 = vadd.f32 %v1717_v36, %v1709_v8  ;;  %v2095_v8 = vstv %s2602_s23  ;;  %v1959_v36 = vstv %s2589_s24  ;;  %s2596_s23 = sld [smem:[#allocation3 + $0x51]] }
 0x369   :  { %v1755_v21 = vpop.permute.xlu0 %1754  ;;  %v2096_v6 = vmul.f32 %v3710_v13, %v2095_v8  ;;  %s2582_s24 = sld [smem:[#allocation3 + $0x50]] }
 0x36a   :  { %v1735_v38 = vpop.permute.xlu1 %1734  ;;  %v1729_v9 = vadd.f32 %v1727_v3, %v1719_v30  ;;  %v1756_v43 = vrot.slane %v1755_v21, 1  ;;  %v1960_v30 = vmul.f32 %v3710_v13, %v1959_v36  ;;  %v2285_v47 = vstv %s2621_s13  ;;  %s2625_s11 = sld [smem:[#allocation3 + $0x5a]] }
 0x36b   :  { %v1736_v20 = vrot.slane %v1735_v38, 1  ;;  %s2606_s13 = sld [smem:[#allocation3 + $0x36]] }
 0x36c   :  { %v1757_v40 = vsel %vm273_vm2, %v1755_v21, %v1756_v43  ;;  %v2241_v21 = vstv %s2616_s28  ;;  %v2251_v43 = vstv %s2617_s5  ;;  %s2597_s28 = sld [smem:[#allocation3 + $0x58]] }
 0x36d   :  { %v1737_v41 = vsel %vm251_vm15, %v1735_v38, %v1736_v20  ;;  %v2105_v38 = vstv %s2603_s29  ;;  %v2242_v3 = vmul.f32 %v3710_v13, %v2241_v21  ;;  %s2583_s29 = sld [smem:[#allocation3 + $0x57]] }
 0x36e   :  { %v1739_v16 = vadd.f32 %v1737_v41, %v1729_v9  ;;  %v2106_v20 = vmul.f32 %v3710_v13, %v2105_v38  ;;  %v1970_v9 = vmul.f32 %v3710_v13, %v1969_v62  ;;  %v2115_v41 = vstv %s2604_s6  ;;  %s2623_s5 = sld [smem:[#allocation3 + $0x4c]] }
 0x36f   :  { %s2610_s6 = sld [smem:[#allocation3 + $0x52]] }
 0x370   :  { %v1749_v18 = vadd.f32 %v1747_v1, %v1739_v16  ;;  %v1979_v16 = vstv %s2591_s7  ;;  %v2252_v1 = vmul.f32 %v3710_v13, %v2251_v43  ;;  %s2624_s7 = sld [smem:[#allocation3 + $0x53]] }
 0x372   :  { %v1759_v29 = vadd.f32 %v1757_v40, %v1749_v18  ;;  %v2116_v18 = vmul.f32 %v3710_v13, %v2115_v41  ;;  %v1980_v40 = vmul.f32 %v3710_v13, %v1979_v16 }
 0x374   :  { %v1763_v54 = vperm.slane %v1759_v29, 2  ;;  %v1762_v7 = vperm.slane %v1759_v29, 1  ;;  %v1761_v37 = vperm.slane %v1759_v29, 0  ;;  %v1993_v29 = vstv %s2593_s9  ;;  %s2611_s9 = sld [smem:[#allocation3 + $0x59]] }
 0x375   :  { %v2305_v35 = vstv %s2623_s5  ;;  %v2169_v8 = vstv %s2610_s6 }
 0x376   :  { %1768 = vrot.lane.b32.xlu0 %v1763_v54, %s2750_s17  ;;  %1766 = vrot.lane.b32.xlu2 %v1762_v7, %s2750_s17  ;;  %v2125_v7 = vstv %s2605_s10  ;;  %s3863_s10 = sld [smem:[#allocation3 + $0x61]] }
 0x377   :  { %1764 = vrot.lane.b32.xlu1 %v1761_v37, %s2750_s17  ;;  %s2580_s17 = sld [smem:[#allocation3 + $0x42]]  ;;  %v1994_v37 = vmul.f32 %v3759_v5, %v1993_v29  ;;  %v2126_v31 = vmul.f32 %v3710_v13, %v2125_v7 }
 0x37d   :  { %v1857_v23 = vstv %s2580_s17  ;;  %s2618_s17 = sld [smem:[#allocation3 + $0x29]] }
 0x37e   :  { %1806 = vrot.lane.b32.xlu0 %v1804_v55, %s2744_s26  ;;  %1796 = vrot.lane.b32.xlu2 %v1794_v11, %s2746_s3  ;;  %v1858_v15 = vmul.f32 %v3759_v5, %v1857_v23  ;;  %v2003_v55 = vstv %s2594_s16  ;;  %v2271_v11 = vstv %s2619_s12  ;;  %s2613_s16 = sld [smem:[#allocation3 + $0x6]] }
 0x37f   :  { %1786 = vrot.lane.b32.xlu1 %v1784_v24, %s2745_s27  ;;  %v2140_v24 = vmul.f32 %v3759_v5, %v2139_v10  ;;  %v2004_v26 = vmul.f32 %v3759_v5, %v2003_v55  ;;  %v2272_v42 = vmul.f32 %v3710_v13, %v2271_v11  ;;  %s2592_s12 = sld [smem:[#allocation3 + $0x35]] }
 0x383   :  { %v2261_v54 = vstv %s2618_s17  ;;  %s2598_s17 = sld [smem:[#allocation3 + $0x5f]] }
 0x384   :  { %v2262_v33 = vmul.f32 %v3710_v13, %v2261_v54 }
 0x386   :  { %1836 = vrot.lane.b32.xlu0 %v1834_v57, %s2748_s8  ;;  %1826 = vrot.lane.b32.xlu2 %v1824_v17, %s2743_s25  ;;  %v2149_v57 = vstv %s2608_s14  ;;  %v2013_v17 = vstv %s2595_s15  ;;  %s2620_s14 = sld [smem:[#allocation3 + $0x37]]  ;;  %s2417_s15 = sshll.u32 %s4015_s2, 4  ;;  %s2418_s15 = int_to_ptr.hbm [resolvable:$true] %s2417_s15 }
 0x387   :  { %1816 = vrot.lane.b32.xlu1 %v1814_v28, %s2747_s4  ;;  %v2286_v28 = vmul.f32 %v3759_v5, %v2285_v47  ;;  %v2150_v34 = vmul.f32 %v3759_v5, %v2149_v57  ;;  %v2014_v23 = vmul.f32 %v3759_v5, %v2013_v17 }
 0x389   :  { %v2043_v41 = vstv %s2598_s17 }
 0x38a   :  { %v2044_v29 = vmul.f32 %v3759_v5, %v2043_v41 }
 0x38e   :  { %1870 = vrot.lane.b32.xlu0 %v1868_v2, %s2744_s26  ;;  %1860 = vrot.lane.b32.xlu2 %v1858_v15, %s2746_s3  ;;  %v2159_v2 = vstv %s2609_s21  ;;  %v2023_v15 = vstv %s2596_s23 }
 0x38f   :  { %1850 = vrot.lane.b32.xlu1 %v1848_v49, %s2745_s27  ;;  %v1877_v49 = vstv %s2582_s24  ;;  %v2160_v58 = vmul.f32 %v3759_v5, %v2159_v2  ;;  %v2024_v46 = vmul.f32 %v3759_v5, %v2023_v15 }
 0x390   :  { %v1878_v19 = vmul.f32 %v3759_v5, %v1877_v49 }
 0x396   :  { %2078 = vrot.lane.b32.xlu0 %v2076_v25, %s2745_s27  ;;  %1942 = vrot.lane.b32.xlu2 %v1940_v32, %s2746_s3  ;;  %v2033_v32 = vstv %s2597_s28 }
 0x397   :  { %1932 = vrot.lane.b32.xlu1 %v1930_v56, %s2745_s27  ;;  %v1887_v56 = vstv %s2583_s29  ;;  %v2034_v61 = vmul.f32 %v3759_v5, %v2033_v32 }
 0x398   :  { %v1888_v50 = vmul.f32 %v3759_v5, %v1887_v56 }
 0x39e   :  { %2224 = vrot.lane.b32.xlu0 %v2222_v14, %s2745_s27  ;;  %2088 = vrot.lane.b32.xlu2 %v2086_v48, %s2746_s3  ;;  %v2296_v14 = vmul.f32 %v3759_v5, %v2295_v4 }
 0x39f   :  { %1952 = vrot.lane.b32.xlu1 %v1950_v59, %s2744_s26 }
 0x3a6   :  { %2234 = vrot.lane.b32.xlu0 %v2232_v39, %s2746_s3  ;;  %2098 = vrot.lane.b32.xlu2 %v2096_v6, %s2744_s26  ;;  %v2306_v39 = vmul.f32 %v3759_v5, %v2305_v35  ;;  %v2170_v6 = vmul.f32 %v3759_v5, %v2169_v8 }
 0x3a7   :  { %1962 = vrot.lane.b32.xlu1 %v1960_v30, %s2747_s4 }
 0x3ae   :  { %2244 = vrot.lane.b32.xlu0 %v2242_v3, %s2744_s26  ;;  %2108 = vrot.lane.b32.xlu2 %v2106_v20, %s2747_s4  ;;  %v2315_v3 = vstv %s2624_s7  ;;  %v2179_v20 = vstv %s2611_s9 }
 0x3af   :  { %1972 = vrot.lane.b32.xlu1 %v1970_v9, %s2743_s25  ;;  %v2180_v51 = vmul.f32 %v3759_v5, %v2179_v20 }
 0x3b6   :  { %2254 = vrot.lane.b32.xlu0 %v2252_v1, %s2747_s4  ;;  %2118 = vrot.lane.b32.xlu2 %v2116_v18, %s2743_s25 }
 0x3b7   :  { %1982 = vrot.lane.b32.xlu1 %v1980_v40, %s2748_s8  ;;  %v2316_v40 = vmul.f32 %v3759_v5, %v2315_v3 }
 0x3be   :  { %1996 = vrot.lane.b32.xlu0 %v1994_v37, %s2745_s27  ;;  %2264 = vrot.lane.b32.xlu2 %v2262_v33, %s2743_s25  ;;  %v2335_v37 = vstv %s3863_s10 }
 0x3bf   :  { %2128 = vrot.lane.b32.xlu1 %v2126_v31, %s2748_s8 }
 0x3c6   :  { %2142 = vrot.lane.b32.xlu0 %v2140_v24, %s2745_s27  ;;  %2006 = vrot.lane.b32.xlu2 %v2004_v26, %s2746_s3  ;;  %v2336_v26 = vmul.f32 %v3759_v5, %v2335_v37 }
 0x3c7   :  { %2274 = vrot.lane.b32.xlu1 %v2272_v42, %s2748_s8 }
 0x3ce   :  { %2288 = vrot.lane.b32.xlu0 %v2286_v28, %s2745_s27  ;;  %2152 = vrot.lane.b32.xlu2 %v2150_v34, %s2746_s3  ;;  %s2584_s27 = sld [smem:[#allocation3 + $0x5e]] }
 0x3cf   :  { %2016 = vrot.lane.b32.xlu1 %v2014_v23, %s2744_s26 }
 0x3d0   :  { %v1767_v53 = vpop.permute.xlu2 %1766 }
 0x3d4   :  { %v1897_v59 = vstv %s2584_s27 }
 0x3d5   :  { %v1898_v36 = vmul.f32 %v3759_v5, %v1897_v59 }
 0x3d6   :  { %2162 = vrot.lane.b32.xlu0 %v2160_v58, %s2744_s26  ;;  %2026 = vrot.lane.b32.xlu2 %v2024_v46, %s2747_s4 }
 0x3d7   :  { %1880 = vrot.lane.b32.xlu1 %v1878_v19, %s2747_s4 }
 0x3d8   :  { %v3843_v25 = vpop.permute.xlu2 %1796 }
 0x3d9   :  { %v1798_v33 = vrot.slane %v3843_v25, 1 }
 0x3de   :  { %2036 = vrot.lane.b32.xlu0 %v2034_v61, %s2743_s25  ;;  %1890 = vrot.lane.b32.xlu2 %v1888_v50, %s2743_s25 }
 0x3df   :  { %2298 = vrot.lane.b32.xlu1 %v2296_v14, %s2746_s3  ;;  %s3859_s3 = sld [smem:[#allocation3 + $0x3]] }
 0x3e0   :  { %v3851_v48 = vpop.permute.xlu2 %1826 }
 0x3e1   :  { %v1828_v15 = vrot.slane %v3851_v48, 1 }
 0x3e3   :  { %v1829_v32 = vsel %vm262_vm1, %v3851_v48, %v1828_v15 }
 0x3e5   :  { %v1779_v12 = vstv %s3859_s3 }
 0x3e6   :  { %1900 = vrot.lane.b32.xlu0 %v1898_v36, %s2748_s8  ;;  %2308 = vrot.lane.b32.xlu2 %v2306_v39, %s2744_s26  ;;  %s2612_s26 = sld [smem:[#allocation3 + $0x60]]  ;;  %v1780_v55 = vmul.f32 %v3710_v13, %v1779_v12 }
 0x3e7   :  { %2172 = vrot.lane.b32.xlu1 %v2170_v6, %s2747_s4 }
 0x3e8   :  { %v1769_v30 = vpop.permute.xlu0 %1768  ;;  %v3861_v21 = vpop.permute.xlu2 %1860 }
 0x3e9   :  { %v1771_v38 = vsel %vm4128_vm7, %v1767_v53, %v1769_v30  ;;  %v1765_v62 = vpop.permute.xlu1 %1764  ;;  %v1862_v8 = vrot.slane %v3861_v21, 1 }
 0x3ea   :  { %v1775_v9 = vsel %vm93_vm0, %v1771_v38, 0.0  ;;  %v1770_v43 = vsel %vm4129_vm9, %v1765_v62, %v1767_v53  ;;  %vm4131_vm0 = vmmov %vm4126_vm3 }
 0x3eb   :  { %v3870_v16 = vadd.f32 %v1775_v9, %v3744_v44  ;;  %v1774_v1 = vsel %vm4130_vm10, %v1770_v43, 0.0  ;;  %v1799_v17 = vsel %vm4131_vm0, %v3843_v25, %v1798_v33  ;;  %vm4132_vm13 = vmmov %vm4131_vm0  ;;  %vm4146_vm10 = vcmask 998400  }
 0x3ec   :  { %v3875_v18 = vadd.f32 %v1774_v1, %v3750_v22  ;;  %v2325_v22 = vstv %s2625_s11  ;;  %v2189_v10 = vstv %s2612_s26  ;;  %v1863_v62 = vsel %vm4132_vm13, %v3861_v21, %v1862_v8  ;;  %vm4133_vm11 = vmmov %vm4131_vm0 }
 0x3ed   :  { %v2326_v42 = vmul.f32 %v3759_v5, %v2325_v22  ;;  %v2190_v57 = vmul.f32 %v3759_v5, %v2189_v10  ;;  %vm4134_vm4 = vmmov %vm4131_vm0  ;;  %vm4148_vm13 = vcmp.lt.s32.totalorder %v3645_v27, 16 }
 0x3ee   :  { %2318 = vrot.lane.b32.xlu0 %v2316_v40, %s2747_s4  ;;  %2182 = vrot.lane.b32.xlu2 %v2180_v51, %s2743_s25  ;;  %s2578_s4 = sld [smem:[#allocation3 + $0x34]]  ;;  %vm4135_vm5 = vmmov %vm4131_vm0 }
 0x3ef   :  { %2046 = vrot.lane.b32.xlu1 %v2044_v29, %s2748_s8  ;;  %vm4136_vm8 = vmmov %vm4131_vm0 }
 0x3f0   :  { %v1807_v44 = vpop.permute.xlu0 %1806  ;;  %v3883_v54 = vpop.permute.xlu2 %1942  ;;  %vm4137_vm3 = vmmov %vm4131_vm0 }
 0x3f1   :  { %v1787_v7 = vpop.permute.xlu1 %1786  ;;  %v1808_v11 = vrot.slane %v1807_v44, 1  ;;  %vm4138_vm6 = vmmov %vm4131_vm0 }
 0x3f2   :  { %v1788_v31 = vrot.slane %v1787_v7, 1 }
 0x3f3   :  { %v1809_v34 = vsel %vm240_vm14, %v1807_v44, %v1808_v11 }
 0x3f4   :  { %v1789_v24 = vsel %vm218_vm12, %v1787_v7, %v1788_v31  ;;  %v1843_v56 = vstv %s2578_s4  ;;  %v2217_v31 = vstv %s2613_s16 }
 0x3f5   :  { %v1791_v47 = vadd.f32 %v1789_v24, %v1780_v55  ;;  %v1844_v59 = vmul.f32 %v3759_v5, %v1843_v56  ;;  %v2218_v24 = vmul.f32 %v3710_v13, %v2217_v31 }
 0x3f6   :  { %2338 = vrot.lane.b32.xlu0 %v2336_v26, %s2748_s8  ;;  %2328 = vrot.lane.b32.xlu2 %v2326_v42, %s2743_s25  ;;  %s2599_s25 = sld [smem:[#allocation3 + $0x5]] }
 0x3f7   :  { %v1801_v28 = vadd.f32 %v1799_v17, %v1791_v47  ;;  %2192 = vrot.lane.b32.xlu1 %v2190_v57, %s2748_s8  ;;  %s2585_s8 = sld [smem:[#allocation3 + $0x4]] }
 0x3f8   :  { %v1837_v23 = vpop.permute.xlu0 %1836  ;;  %v3900_v49 = vpop.permute.xlu2 %2088 }
 0x3f9   :  { %v1811_v53 = vadd.f32 %v1809_v34, %v1801_v28  ;;  %v1817_v2 = vpop.permute.xlu1 %1816  ;;  %v1838_v46 = vrot.slane %v1837_v23, 1 }
 0x3fa   :  { %v1818_v58 = vrot.slane %v1817_v2, 1 }
 0x3fb   :  { %v1839_v61 = vsel %vm273_vm2, %v1837_v23, %v1838_v46  ;;  %v2090_v46 = vrot.slane %v3900_v49, 1 }
 0x3fc   :  { %v1819_v19 = vsel %vm251_vm15, %v1817_v2, %v1818_v58  ;;  %v2071_v20 = vstv %s2599_s25 }
 0x3fd   :  { %v1821_v25 = vadd.f32 %v1819_v19, %v1811_v53  ;;  %v1925_v43 = vstv %s2585_s8  ;;  %v2072_v51 = vmul.f32 %v3710_v13, %v2071_v20  ;;  %v1944_v53 = vrot.slane %v3883_v54, 1 }
 0x3fe   :  { %v1926_v7 = vmul.f32 %v3710_v13, %v1925_v43 }
 0x3ff   :  { %v1831_v4 = vadd.f32 %v1829_v32, %v1821_v25  ;;  %v1945_v13 = vsel %vm4134_vm4, %v3883_v54, %v1944_v53  ;;  %vm4150_vm4 = vcmp.lt.s32.totalorder %v3596_v52, 16 }
 0x400   :  { %v1871_v50 = vpop.permute.xlu0 %1870  ;;  %v2099_v6 = vpop.permute.xlu2 %2098 }
 0x401   :  { %v1841_v14 = vadd.f32 %v1839_v61, %v1831_v4  ;;  %v1851_v35 = vpop.permute.xlu1 %1850  ;;  %v1872_v38 = vrot.slane %v1871_v50, 1  ;;  %v2091_v61 = vsel %vm4135_vm5, %v3900_v49, %v2090_v46  ;;  %vm4151_vm5 = vmmov %vm4146_vm10 }
 0x402   :  { %v1852_v36 = vrot.slane %v1851_v35, 1 }
 0x403   :  { %v1845_v39 = vadd.f32 %v1844_v59, %v1841_v14  ;;  %v1873_v41 = vsel %vm240_vm14, %v1871_v50, %v1872_v38  ;;  %v2100_v50 = vrot.slane %v2099_v6, 1 }
 0x404   :  { %v1853_v30 = vsel %vm218_vm12, %v1851_v35, %v1852_v36 }
 0x405   :  { %v1855_v48 = vadd.f32 %v1853_v30, %v1845_v39  ;;  %v2101_v38 = vsel %vm240_vm14, %v2099_v6, %v2100_v50 }
 0x407   :  { %v1865_v3 = vadd.f32 %v1863_v62, %v1855_v48  ;;  %v1989_v62 = vstv %s2592_s12 }
 0x408   :  { %v2079_v9 = vpop.permute.xlu0 %2078  ;;  %v2109_v33 = vpop.permute.xlu2 %2108 }
 0x409   :  { %v2080_v1 = vrot.slane %v2079_v9, 1  ;;  %v1933_v40 = vpop.permute.xlu1 %1932  ;;  %v3913_v44 = vadd.f32 %v1873_v41, %v1865_v3  ;;  %v2110_v54 = vrot.slane %v2109_v33, 1 }
 0x40a   :  { %v1934_v29 = vrot.slane %v1933_v40, 1 }
 0x40b   :  { %v2081_v12 = vsel %vm218_vm12, %v2079_v9, %v2080_v1  ;;  %v1990_v1 = vmul.f32 %v3759_v5, %v1989_v62 }
 0x40c   :  { %v2083_v37 = vadd.f32 %v2081_v12, %v2072_v51  ;;  %v1935_v21 = vsel %vm218_vm12, %v1933_v40, %v1934_v29  ;;  %v2111_v40 = vsel %vm251_vm15, %v2109_v33, %v2110_v54 }
 0x40d   :  { %v1937_v22 = vadd.f32 %v1935_v21, %v1926_v7 }
 0x40e   :  { %v2093_v59 = vadd.f32 %v2091_v61, %v2083_v37 }
 0x40f   :  { %v1947_v4 = vadd.f32 %v1945_v13, %v1937_v22 }
 0x410   :  { %v2225_v10 = vpop.permute.xlu0 %2224  ;;  %v2119_v47 = vpop.permute.xlu2 %2118  ;;  %v2103_v3 = vadd.f32 %v2101_v38, %v2093_v59 }
 0x411   :  { %v2226_v55 = vrot.slane %v2225_v10, 1  ;;  %v1953_v11 = vpop.permute.xlu1 %1952  ;;  %v2120_v9 = vrot.slane %v2119_v47, 1 }
 0x412   :  { %v1954_v2 = vrot.slane %v1953_v11, 1  ;;  %v2113_v29 = vadd.f32 %v2111_v40, %v2103_v3 }
 0x413   :  { %v2227_v26 = vsel %vm218_vm12, %v2225_v10, %v2226_v55  ;;  %v2121_v6 = vsel %vm262_vm1, %v2119_v47, %v2120_v9  ;;  %v2135_v10 = vstv %s2606_s13 }
 0x414   :  { %v2229_v42 = vadd.f32 %v2227_v26, %v2218_v24  ;;  %v1955_v32 = vsel %vm240_vm14, %v1953_v11, %v1954_v2  ;;  %v2123_v55 = vadd.f32 %v2121_v6, %v2113_v29 }
 0x415   :  { %v1957_v35 = vadd.f32 %v1955_v32, %v1947_v4 }
 0x418   :  { %v2235_v57 = vpop.permute.xlu0 %2234  ;;  %v2265_v19 = vpop.permute.xlu2 %2264 }
 0x419   :  { %v2236_v17 = vrot.slane %v2235_v57, 1  ;;  %v1963_v28 = vpop.permute.xlu1 %1962 }
 0x41a   :  { %v1964_v25 = vrot.slane %v1963_v28, 1 }
 0x41b   :  { %v2237_v34 = vsel %vm4133_vm11, %v2235_v57, %v2236_v17  ;;  %v2266_v57 = vrot.slane %v2265_v19, 1  ;;  %vm4149_vm11 = vcmp.lt.s32.totalorder %v3590_v60, 16 }
 0x41c   :  { %v2239_v23 = vadd.f32 %v2237_v34, %v2229_v42  ;;  %v1965_v14 = vsel %vm251_vm15, %v1963_v28, %v1964_v25  ;;  %v2136_v42 = vmul.f32 %v3759_v5, %v2135_v10 }
 0x41d   :  { %v1967_v39 = vadd.f32 %v1965_v14, %v1957_v35  ;;  %v2267_v2 = vsel %vm262_vm1, %v2265_v19, %v2266_v57 }
 0x420   :  { %v2245_v15 = vpop.permute.xlu0 %2244  ;;  %v2007_v49 = vpop.permute.xlu2 %2006 }
 0x421   :  { %v1973_v58 = vpop.permute.xlu1 %1972  ;;  %v2246_v51 = vrot.slane %v2245_v15, 1 }
 0x422   :  { %v1974_v56 = vrot.slane %v1973_v58, 1 }
 0x423   :  { %v2247_v22 = vsel %vm240_vm14, %v2245_v15, %v2246_v51 }
 0x424   :  { %v1975_v8 = vsel %vm262_vm1, %v1973_v58, %v1974_v56  ;;  %v2249_v26 = vadd.f32 %v2247_v22, %v2239_v23  ;;  %v2281_v58 = vstv %s2620_s14 }
 0x425   :  { %v1977_v20 = vadd.f32 %v1975_v8, %v1967_v39  ;;  %v2282_v23 = vmul.f32 %v3759_v5, %v2281_v58 }
 0x428   :  { %v2255_v36 = vpop.permute.xlu0 %2254  ;;  %v3939_v17 = vpop.permute.xlu2 %2152 }
 0x429   :  { %v1983_v30 = vpop.permute.xlu1 %1982  ;;  %v2256_v7 = vrot.slane %v2255_v36, 1 }
 0x42a   :  { %v1984_v48 = vrot.slane %v1983_v30, 1 }
 0x42b   :  { %v2257_v11 = vsel %vm251_vm15, %v2255_v36, %v2256_v7 }
 0x42c   :  { %v1985_v43 = vsel %vm273_vm2, %v1983_v30, %v1984_v48  ;;  %v2259_v47 = vadd.f32 %v2257_v11, %v2249_v26  ;;  %v2008_v48 = vrot.slane %v2007_v49, 1 }
 0x42d   :  { %v1987_v41 = vadd.f32 %v1985_v43, %v1977_v20 }
 0x42e   :  { %v2269_v46 = vadd.f32 %v2267_v2, %v2259_v47  ;;  %v2009_v40 = vsel %vm4136_vm8, %v2007_v49, %v2008_v48  ;;  %vm4152_vm8 = vcmp.lt.s32.totalorder %v3612_v45, 16 }
 0x42f   :  { %v1991_v12 = vadd.f32 %v1990_v1, %v1987_v41 }
 0x430   :  { %v1997_v37 = vpop.permute.xlu0 %1996  ;;  %v2027_v56 = vpop.permute.xlu2 %2026 }
 0x431   :  { %v2129_v21 = vpop.permute.xlu1 %2128  ;;  %v1998_v8 = vrot.slane %v1997_v37, 1 }
 0x432   :  { %v2130_v31 = vrot.slane %v2129_v21, 1 }
 0x433   :  { %v1999_v30 = vsel %vm218_vm12, %v1997_v37, %v1998_v8  ;;  %v2028_v37 = vrot.slane %v2027_v56, 1 }
 0x434   :  { %v2131_v24 = vsel %vm273_vm2, %v2129_v21, %v2130_v31  ;;  %v2001_v3 = vadd.f32 %v1999_v30, %v1991_v12  ;;  %v2154_v12 = vrot.slane %v3939_v17, 1 }
 0x435   :  { %v2133_v33 = vadd.f32 %v2131_v24, %v2123_v55 }
 0x436   :  { %v2011_v6 = vadd.f32 %v2009_v40, %v2001_v3 }
 0x437   :  { %v2137_v28 = vadd.f32 %v2136_v42, %v2133_v33  ;;  %v2029_v33 = vsel %vm251_vm15, %v2027_v56, %v2028_v37 }
 0x438   :  { %v2143_v34 = vpop.permute.xlu0 %2142  ;;  %v1891_v59 = vpop.permute.xlu2 %1890 }
 0x439   :  { %v2275_v53 = vpop.permute.xlu1 %2274  ;;  %v1892_v54 = vrot.slane %v1891_v59, 1  ;;  %v2144_v20 = vrot.slane %v2143_v34, 1 }
 0x43a   :  { %v2276_v15 = vrot.slane %v2275_v53, 1 }
 0x43b   :  { %v1893_v43 = vsel %vm262_vm1, %v1891_v59, %v1892_v54  ;;  %v2145_v21 = vsel %vm218_vm12, %v2143_v34, %v2144_v20 }
 0x43c   :  { %v2277_v25 = vsel %vm273_vm2, %v2275_v53, %v2276_v15  ;;  %v2147_v49 = vadd.f32 %v2145_v21, %v2137_v28  ;;  %v2155_v15 = vsel %vm4137_vm3, %v3939_v17, %v2154_v12 }
 0x43d   :  { %v2279_v13 = vadd.f32 %v2277_v25, %v2269_v46 }
 0x43e   :  { %v2157_v25 = vadd.f32 %v2155_v15, %v2147_v49 }
 0x43f   :  { %v2283_v32 = vadd.f32 %v2282_v23, %v2279_v13 }
 0x440   :  { %v2289_v4 = vpop.permute.xlu0 %2288  ;;  %v3946_v38 = vpop.permute.xlu2 %2308 }
 0x441   :  { %v2017_v61 = vpop.permute.xlu1 %2016  ;;  %v2290_v10 = vrot.slane %v2289_v4, 1  ;;  %v2310_v8 = vrot.slane %v3946_v38, 1 }
 0x442   :  { %v2018_v5 = vrot.slane %v2017_v61, 1 }
 0x443   :  { %v2291_v58 = vsel %vm218_vm12, %v2289_v4, %v2290_v10  ;;  %vm4139_vm12 = vcmask 1014784  }
 0x444   :  { %v2019_v51 = vsel %vm240_vm14, %v2017_v61, %v2018_v5  ;;  %v2311_v5 = vsel %vm240_vm14, %v3946_v38, %v2310_v8  ;;  %vm4144_vm7 = vmmov %vm4139_vm12 }
 0x445   :  { %v2021_v31 = vadd.f32 %v2019_v51, %v2011_v6 }
 0x447   :  { %v2031_v34 = vadd.f32 %v2029_v33, %v2021_v31 }
 0x448   :  { %v2163_v50 = vpop.permute.xlu0 %2162  ;;  %v2183_v11 = vpop.permute.xlu2 %2182 }
 0x449   :  { %v1881_v14 = vpop.permute.xlu1 %1880  ;;  %v2164_v55 = vrot.slane %v2163_v50, 1 }
 0x44a   :  { %v1882_v35 = vrot.slane %v1881_v14, 1 }
 0x44b   :  { %v2165_v28 = vsel %vm240_vm14, %v2163_v50, %v2164_v55  ;;  %vm4140_vm14 = vcmask 1022976  }
 0x44c   :  { %v1883_v19 = vsel %vm251_vm15, %v1881_v14, %v1882_v35  ;;  %v2293_v14 = vadd.f32 %v2291_v58, %v2283_v32  ;;  %v2167_v59 = vadd.f32 %v2165_v28, %v2157_v25  ;;  %vm4145_vm9 = vmmov %vm4140_vm14 }
 0x44d   :  { %v1885_v62 = vadd.f32 %v1883_v19, %v3913_v44 }
 0x44f   :  { %v1895_v29 = vadd.f32 %v1893_v43, %v1885_v62 }
 0x450   :  { %v2037_v36 = vpop.permute.xlu0 %2036  ;;  %v2329_v48 = vpop.permute.xlu2 %2328 }
 0x451   :  { %v2299_v39 = vpop.permute.xlu1 %2298  ;;  %v2038_v22 = vrot.slane %v2037_v36, 1 }
 0x452   :  { %v2300_v57 = vrot.slane %v2299_v39, 1 }
 0x453   :  { %v2039_v42 = vsel %vm262_vm1, %v2037_v36, %v2038_v22  ;;  %v2184_v36 = vrot.slane %v2183_v11, 1 }
 0x454   :  { %v2041_v13 = vadd.f32 %v2039_v42, %v2031_v34  ;;  %v2301_v23 = vsel %vm4138_vm6, %v2299_v39, %v2300_v57 }
 0x455   :  { %v2303_v4 = vadd.f32 %v2301_v23, %v2293_v14  ;;  %v2185_v62 = vsel %vm262_vm1, %v2183_v11, %v2184_v36 }
 0x458   :  { %v1901_v9 = vpop.permute.xlu0 %1900 }
 0x459   :  { %v1902_v41 = vrot.slane %v1901_v9, 1  ;;  %v2173_v1 = vpop.permute.xlu1 %2172 }
 0x45a   :  { %v2174_v47 = vrot.slane %v2173_v1, 1 }
 0x45b   :  { %v1903_v7 = vsel %vm273_vm2, %v1901_v9, %v1902_v41  ;;  %v2313_v9 = vadd.f32 %v2311_v5, %v2303_v4  ;;  %v2330_v41 = vrot.slane %v2329_v48, 1 }
 0x45c   :  { %v1905_v44 = vadd.f32 %v1903_v7, %v1895_v29  ;;  %v2175_v56 = vsel %vm251_vm15, %v2173_v1, %v2174_v47 }
 0x45d   :  { %v2177_v30 = vadd.f32 %v2175_v56, %v2167_v59  ;;  %v2331_v21 = vsel %vm262_vm1, %v2329_v48, %v2330_v41  ;;  %vm4142_vm1 = vcmp.lt.s32.totalorder %v3625_v0, 16 }
 0x45e   :  { %v1908_v24 = vperm.slane %v1905_v44, 1  ;;  %v1909_v26 = vperm.slane %v1905_v44, 2  ;;  %v1907_v17 = vperm.slane %v1905_v44, 0 }
 0x45f   :  { %v2187_v43 = vadd.f32 %v2185_v62, %v2177_v30 }
 0x460   :  { %v2319_v53 = vpop.permute.xlu0 %2318  ;;  %1914 = vrot.lane.b32.xlu2 %v1909_v26, %s2751_s0  ;;  %1912 = vrot.lane.b32.xlu1 %v1908_v24, %s2751_s0 }
 0x461   :  { %v2047_v2 = vpop.permute.xlu1 %2046  ;;  %v2320_v19 = vrot.slane %v2319_v53, 1 }
 0x462   :  { %v2048_v46 = vrot.slane %v2047_v2, 1 }
 0x463   :  { %v2321_v3 = vsel %vm251_vm15, %v2319_v53, %v2320_v19  ;;  %vm4141_vm15 = vcmask 1006592  }
 0x464   :  { %v2049_v61 = vsel %vm273_vm2, %v2047_v2, %v2048_v46  ;;  %v2323_v51 = vadd.f32 %v2321_v3, %v2313_v9  ;;  %vm4147_vm0 = vmmov %vm4141_vm15 }
 0x465   :  { %v2051_v35 = vadd.f32 %v2049_v61, %v2041_v13 }
 0x466   :  { %v2333_v22 = vadd.f32 %v2331_v21, %v2323_v51 }
 0x467   :  { %v2054_v50 = vperm.slane %v2051_v35, 1  ;;  %v2055_v54 = vperm.slane %v2051_v35, 2  ;;  %v2053_v6 = vperm.slane %v2051_v35, 0 }
 0x468   :  { %1910 = vrot.lane.b32.xlu2 %v1907_v17, %s2751_s0  ;;  %v2339_v39 = vpop.permute.xlu0 %2338  ;;  %s2755_s0 = smov [#allocation8]  }
 0x469   :  { %2060 = vrot.lane.b32.xlu1 %v2055_v54, %s2752_s1  ;;  %2058 = vrot.lane.b32.xlu0 %v2054_v50, %s2752_s1  ;;  %v2193_v32 = vpop.permute.xlu1 %2192  ;;  %v2340_v1 = vrot.slane %v2339_v39, 1 }
 0x46a   :  { %v2194_v20 = vrot.slane %v2193_v32, 1 }
 0x46b   :  { %v2341_v38 = vsel %vm273_vm2, %v2339_v39, %v2340_v1 }
 0x46c   :  { %v2195_v40 = vsel %vm273_vm2, %v2193_v32, %v2194_v20  ;;  %v2343_v44 = vadd.f32 %v2341_v38, %v2333_v22  ;;  %vm4143_vm2 = vcmp.lt.s32.totalorder %v3630_v63, 16 }
 0x46d   :  { %v2197_v29 = vadd.f32 %v2195_v40, %v2187_v43 }
 0x46e   :  { %v2347_v12 = vperm.slane %v2343_v44, 2  ;;  %v2346_v10 = vperm.slane %v2343_v44, 1  ;;  %v2345_v55 = vperm.slane %v2343_v44, 0 }
 0x46f   :  { %v2200_v7 = vperm.slane %v2197_v29, 1  ;;  %v2201_v37 = vperm.slane %v2197_v29, 2  ;;  %v2199_v31 = vperm.slane %v2197_v29, 0 }
 0x471   :  { %2056 = vrot.lane.b32.xlu0 %v2053_v6, %s2752_s1  ;;  %2206 = vrot.lane.b32.xlu2 %v2201_v37, %s2753_s20  ;;  %s2415_s1 = sshll.u32 %s2755_s0, 4  ;;  %s2416_s1 = int_to_ptr.vmem [resolvable:$true] %s2415_s1 }
 0x472   :  { %2204 = vrot.lane.b32.xlu1 %v2200_v7, %s2753_s20 }
 0x479   :  { %2352 = vrot.lane.b32.xlu2 %v2347_v12, %s2754_s22  ;;  %2202 = vrot.lane.b32.xlu0 %v2199_v31, %s2753_s20  ;;  %v2400_v31 = vld [vmem:[#allocation7 + $0x8] sm:$0xff] }
 0x47a   :  { %2350 = vrot.lane.b32.xlu1 %v2346_v10, %s2754_s22 }
 0x481   :  { %2348 = vrot.lane.b32.xlu0 %v2345_v55, %s2754_s22 }
 0x4ba   :  { %v1915_v11 = vpop.permute.xlu2 %1914 }
 0x4c2   :  { %v1911_v26 = vpop.permute.xlu2 %1910 }
 0x4cb   :  { %v2207_v42 = vpop.permute.xlu2 %2206 }
 0x4d2   :  { %v1913_v24 = vpop.permute.xlu1 %1912 }
 0x4d3   :  { %v1917_v34 = vsel %vm4140_vm14, %v1913_v24, %v1915_v11  ;;  %v2353_v13 = vpop.permute.xlu2 %2352  ;;  %v1916_v61 = vsel %vm4145_vm9, %v1911_v26, %v1913_v24  ;;  %vm4153_vm9 = vcmask 1043456  }
 0x4d4   :  { %v1923_v58 = vadd.f32 %v1917_v34, %v3870_v16  ;;  %v1922_v8 = vadd.f32 %v1916_v61, %v3875_v18 }
 0x4db   :  { %v2059_v49 = vpop.permute.xlu0 %2058  ;;  %v2061_v33 = vpop.permute.xlu1 %2060 }
 0x4dc   :  { %v2063_v53 = vsel %vm4139_vm12, %v2059_v49, %v2061_v33 }
 0x4dd   :  { %v2067_v15 = vsel %vm4142_vm1, %v2063_v53, 0.0 }
 0x4de   :  { %v2069_v46 = vadd.f32 %v2067_v15, %v1923_v58 }
 0x4e3   :  { %v2057_v57 = vpop.permute.xlu0 %2056 }
 0x4e4   :  { %v2205_v47 = vpop.permute.xlu1 %2204  ;;  %v2062_v23 = vsel %vm4144_vm7, %v2057_v57, %v2059_v49 }
 0x4e5   :  { %v2209_v2 = vsel %vm4141_vm15, %v2205_v47, %v2207_v42  ;;  %v2066_v63 = vsel %vm4149_vm11, %v2062_v23, 0.0 }
 0x4e6   :  { %v2213_v28 = vsel %vm4143_vm2, %v2209_v2, 0.0  ;;  %v2068_v19 = vadd.f32 %v2066_v63, %v1922_v8 }
 0x4e7   :  { %v2215_v14 = vadd.f32 %v2213_v28, %v2069_v46 }
 0x4eb   :  { %v2203_v25 = vpop.permute.xlu0 %2202 }
 0x4ec   :  { %v2351_v56 = vpop.permute.xlu1 %2350  ;;  %v2208_v35 = vsel %vm4147_vm0, %v2203_v25, %v2205_v47 }
 0x4ed   :  { %v2355_v59 = vsel %vm4146_vm10, %v2351_v56, %v2353_v13  ;;  %v2212_v36 = vsel %vm4150_vm4, %v2208_v35, 0.0 }
 0x4ee   :  { %v2359_v0 = vsel %vm4148_vm13, %v2355_v59, 0.0  ;;  %v2214_v30 = vadd.f32 %v2212_v36, %v2068_v19 }
 0x4ef   :  { %v2361_v16 = vadd.f32 %v2359_v0, %v2215_v14 }
 0x4f1   :  { %v2628_v17 = vmul.f32 -1.442695, %v2361_v16 }
 0x4f3   :  { %2659 = vpow2.f32 %v2628_v17  ;;  %v2349_v4 = vpop.permute.xlu0 %2348 }
 0x4f4   :  { %v2354_v50 = vsel %vm4151_vm5, %v2349_v4, %v2351_v56 }
 0x4f5   :  { %v2358_v27 = vsel %vm4152_vm8, %v2354_v50, 0.0 }
 0x4f6   :  { %v2360_v54 = vadd.f32 %v2358_v27, %v2214_v30 }
 0x4f8   :  { %v2627_v48 = vmul.f32 -1.442695, %v2360_v54 }
 0x4f9   :  { %v2660_v60 = vpop.eup %2659 }
 0x4fa   :  { %v2369_v39 = vadd.f32 1.0, %v2660_v60  ;;  %2661 = vpow2.f32 %v2627_v48 }
 0x4fc   :  { %2663 = vrcp.f32 %v2369_v39  ;;  %v2396_v20 = vand.u32 2147483648, %v2369_v39  ;;  %v2394_v9 = vand.u32 2147483647, %v2369_v39  ;;  %vm2390_vm6 = vweird.f32 %v2369_v39 }
 0x4fe   :  { %v2397_v40 = vor.u32 1.1754944e-38, %v2396_v20  ;;  %vm2395_vm14 = vcmp.eq.f32.partialorder %v2394_v9, 8.507059e+37 }
 0x500   :  { %v2662_v18 = vpop.eup %2661 }
 0x501   :  { %v2368_v32 = vadd.f32 1.0, %v2662_v18 }
 0x502   :  { %v2664_v52 = vpop.eup %2663 }
 0x503   :  { %v2386_v5 = vmul.f32 %v2664_v52, %v2369_v39  ;;  %2665 = vrcp.f32 %v2368_v32  ;;  %vm2391_vm3 = vweird.f32 %v2664_v52  ;;  %v2381_v29 = vand.u32 2147483648, %v2368_v32 }
 0x504   :  { %vm2392_vm12 = vmor %vm2390_vm6, %vm2391_vm3  ;;  %v2379_v37 = vand.u32 2147483647, %v2368_v32  ;;  %vm2375_vm1 = vweird.f32 %v2368_v32 }
 0x505   :  { %v2387_v62 = vsub.f32 1.0, %v2386_v5  ;;  %v2382_v22 = vor.u32 1.1754944e-38, %v2381_v29 }
 0x506   :  { %vm2380_vm7 = vcmp.eq.f32.partialorder %v2379_v37, 8.507059e+37 }
 0x507   :  { %v2388_v3 = vmul.f32 %v2664_v52, %v2387_v62 }
 0x509   :  { %v2666_v43 = vpop.eup %2665  ;;  %v2389_v41 = vadd.f32 %v2664_v52, %v2388_v3 }
 0x50a   :  { %v2371_v45 = vmul.f32 %v2666_v43, %v2368_v32  ;;  %vm2376_vm15 = vweird.f32 %v2666_v43 }
 0x50b   :  { %v2393_v1 = vsel %vm2392_vm12, %v2664_v52, %v2389_v41  ;;  %vm2377_vm2 = vmor %vm2375_vm1, %vm2376_vm15 }
 0x50c   :  { %v2372_v51 = vsub.f32 1.0, %v2371_v45  ;;  %v2398_v6 = vsel %vm2395_vm14, %v2397_v40, %v2393_v1 }
 0x50d   :  { %v2402_v38 = vperm.slane %v2398_v6, 0 }
 0x50e   :  { %v2373_v7 = vmul.f32 %v2666_v43, %v2372_v51 }
 0x50f   :  { %v2405_v55 = vrot.slane %v2402_v38, 4 }
 0x510   :  { %v2374_v21 = vadd.f32 %v2666_v43, %v2373_v7 }
 0x512   :  { %v2378_v44 = vsel %vm2377_vm2, %v2666_v43, %v2374_v21 }
 0x513   :  { %v2383_v12 = vsel %vm2380_vm7, %v2382_v22, %v2378_v44 }
 0x514   :  { %v2401_v10 = vperm.slane %v2383_v12, 0 }
 0x516   :  { %v2406_v11 = vsel %vm4153_vm9, %v2401_v10, %v2405_v55 }
 0x517   :  { %v2408_v24 = vmul.f32 %v2406_v11, %v2400_v31 }
 0x519   :  { %2410 = vst [vmem:[#allocation8 + $0x8] sm:$0xff] %v2408_v24 }
 0x51a   :  { %2423 = dma.vmem_to_hbm [thread:$0]  %s2416_s1, 256, %s2418_s15, [#allocation5], %s2738_s18, %s2738_s18, %s2739_s19  }
 0x51b   :  { %2734 = dma.done.wait [#allocation5], 256  }
 0x51c   :  { %2735 = vsyncadd [#allocation5], 4294967040 }
 0x51d   :  { %2428 = vsyncpa [#allocation4], 1 }
 0x51e   :  { %2429 = vsyncpa [#allocation5], 1 }
 0x51f   :  { %2430 = vsyncpa [#allocation6], 1 }

</bundles_post_ra>
